<compile_context>
chip_gen: v7x
topology: tpu7x:2x2x1
jax: 0.10.0
libtpu: 0.0.40
codegen_flags: <defaults>
</compile_context>

<pallas_src>
import functools

import jax
import jax.numpy as jnp
from jax import lax
from jax.experimental import pallas as pl
from jax.experimental.pallas import tpu as pltpu


# --------------------------------------------------------------------------- utilities
def _round_up(n, m):
    return ((n + m - 1) // m) * m


def _nbytes(a):
    return int(a.size) * int(a.dtype.itemsize)


def _vmem_budget_bytes():
    """Generation-aware VMEM budget: ~75% of per-core capacity (v5e/v6e 128 MiB -> 96 MiB,
    v7x 64 MiB -> 48 MiB). Falls back to a conservative 24 MiB if the query fails."""
    try:
        cap = int(pltpu.get_tpu_info().vmem_capacity_bytes)
    except Exception:  # pragma: no cover - older jax / non-TPU trace environments
        cap = 32 * 1024 * 1024
    return max(int(cap * 0.75), 16 * 1024 * 1024)


def _weight_spec(shape, n_grid_axes, single_buffer):
    """BlockSpec for a loop-invariant (constant index_map) weight. Single-buffered when
    supported: double-buffering a constant operand is pure VMEM waste (matters on v7x)."""
    index_map = (lambda i: (0, 0)) if n_grid_axes == 1 else (lambda b, t: (0, 0))
    if single_buffer and hasattr(pl, "Buffered"):
        try:
            return pl.BlockSpec(shape, index_map, pipeline_mode=pl.Buffered(1))
        except TypeError:  # pipeline_mode kwarg not available in this jax version
            pass
    return pl.BlockSpec(shape, index_map)


def _sigmoid_via_tanh(x):
    # sigmoid(x) == 0.5 * tanh(0.5 * x) + 0.5 : one EUP op instead of exp + reciprocal;
    # the extra mul/add ride free VALU slots.
    return 0.5 * jnp.tanh(0.5 * x) + 0.5


# ----------------------------------------------------------------------------- kernel A
def _input_proj_kernel(x_ref, w_in_ref, b_in_ref, w_ih_ref, b_g_ref, gx_ref):
    """One (TM, nx) tile: gx = ReLU(x @ W_in + b_in) @ W_ih_packed + (b_ih + b_hh)."""
    x0 = jnp.dot(x_ref[...].astype(w_in_ref.dtype), w_in_ref[...],
                 preferred_element_type=jnp.float32) + b_in_ref[...]
    x0 = jnp.maximum(x0, 0.0)                                   # ReLU (f32)
    gx = jnp.dot(x0.astype(w_ih_ref.dtype), w_ih_ref[...],
                 preferred_element_type=jnp.float32) + b_g_ref[...]
    gx_ref[...] = gx.astype(gx_ref.dtype)


# ----------------------------------------------------------------------------- kernel B
def _lstm_recurrence_kernel(gx_ref, w_hh_ref, h_out_ref, h_sc, c_sc, *,
                            hidden, chunk, unroll):
    """Serial LSTM recurrence over one (tc, tb, 4Hp) chunk of precomputed input gates."""
    t_chunk = pl.program_id(1)          # innermost, "arbitrary" (serial) time axis
    H = hidden                          # padded hidden (multiple of 128 -> lane-aligned)

    # hx, cx default to zeros in the module: (re)initialize at the start of every
    # batch tile's time sweep.
    @pl.when(t_chunk == 0)
    def _():
        h_sc[...] = jnp.zeros_like(h_sc)
        c_sc[...] = jnp.zeros_like(c_sc)

    w_hh = w_hh_ref[...]                # hoisted, loop-invariant

    def step(t, carry):
        h, c = carry
        # One wide (tb, Hp) @ (Hp, 4Hp) matmul; gate order i, f, g, o along lanes.
        gates = gx_ref[t].astype(jnp.float32) + jnp.dot(
            h.astype(w_hh.dtype), w_hh, preferred_element_type=jnp.float32)
        i_g = _sigmoid_via_tanh(gates[:, 0 * H:1 * H])
        f_g = _sigmoid_via_tanh(gates[:, 1 * H:2 * H])
        g_g = jnp.tanh(gates[:, 2 * H:3 * H])
        o_g = _sigmoid_via_tanh(gates[:, 3 * H:4 * H])
        c_new = f_g * c + i_g * g_g
        h_new = o_g * jnp.tanh(c_new)
        h_out_ref[t] = h_new.astype(h_out_ref.dtype)            # lane-dense (tb, Hp) store
        return h_new, c_new

    h, c = lax.fori_loop(0, chunk, step, (h_sc[...], c_sc[...]), unroll=unroll)
    h_sc[...] = h
    c_sc[...] = c


# ----------------------------------------------------------------------------- wrapper
def cudnn_lstm_model_forward(x, params, *, time_chunk=16, batch_tile=None,
                             gx_dtype=None, single_buffer_weights=True):
    """x: (T, B, nx) time-major (torch LSTM convention).  Returns (T, B, ny).

    batch_tile=None -> one tile = whole (padded) batch (best for v5e/v6e single TC);
    on v7x pass batch_tile = B//2 so each TensorCore gets one batch tile.
    """
    T, B, nx = x.shape
    w_in_t = params["w_in_t"]        # (nx, Hp)
    b_in = params["b_in"]            # (1, Hp)    f32
    w_ih_p = params["w_ih_p"]        # (Hp, 4Hp)  gate-fused [i|f|g|o]
    w_hh_p = params["w_hh_p"]        # (Hp, 4Hp)
    b_g = params["b_g"]              # (1, 4Hp)   f32, b_ih + b_hh
    w_out_t = params["w_out_t"]      # (Hp, ny)   f32
    b_out = params["b_out"]          # (1, ny)    f32
    Hp = w_hh_p.shape[0]
    ny = w_out_t.shape[1]
    assert Hp % 128 == 0, "pack_params pads the hidden size to a lane-width multiple"

    if gx_dtype is None:
        gx_dtype = w_ih_p.dtype      # bf16 gx when weights are bf16 (halves gx HBM traffic)
    gx_bytes = jnp.dtype(gx_dtype).itemsize
    budget = _vmem_budget_bytes()

    # ---- padded sizes (padding + cdiv grids instead of divisor fallbacks) -------------
    if batch_tile is None:
        tb = _round_up(B, 8)
    else:
        tb = _round_up(max(1, min(batch_tile, B)), 8)
    B_pad = _round_up(B, tb)

    # Shrink the time chunk until Kernel B's working set fits the VMEM budget.
    tc = max(1, min(time_chunk, T))
    w_hh_bytes = _nbytes(w_hh_p)
    scratch_bytes = 2 * tb * Hp * 4

    def _b_need(tc_):
        gx_blk = 2 * tc_ * tb * 4 * Hp * gx_bytes                       # double-buffered in
        out_blk = 2 * tc_ * tb * Hp * int(x.dtype.itemsize)             # double-buffered out
        return gx_blk + out_blk + w_hh_bytes + scratch_bytes

    while tc > 1 and _b_need(tc) > budget * 0.8:
        tc = max(1, tc // 2)
    T_pad = _round_up(T, tc)

    # Kernel A M-tile: big (cap 1024), VMEM-gated, sublane-aligned.
    m_rows = T_pad * B_pad
    wA_bytes = _nbytes(w_in_t) + _nbytes(w_ih_p) + _nbytes(b_in) + _nbytes(b_g)
    tm = min(1024, _round_up(m_rows, 8))

    def _a_need(tm_):
        return (2 * tm_ * nx * int(x.dtype.itemsize)
                + 2 * tm_ * 4 * Hp * gx_bytes + wA_bytes)

    while tm > 8 and _a_need(tm) > budget * 0.8:
        tm = max(8, ((tm // 2) // 8) * 8)
    M_pad = _round_up(m_rows, tm)

    # ---- Kernel A: input projection + gate pre-compute, parallel over T*B -------------
    xp = x
    if T_pad != T or B_pad != B:
        xp = jnp.pad(x, ((0, T_pad - T), (0, B_pad - B), (0, 0)))
    x2d = xp.reshape(T_pad * B_pad, nx)
    if M_pad != m_rows:
        x2d = jnp.pad(x2d, ((0, M_pad - m_rows), (0, 0)))

    gx = pl.pallas_call(
        _input_proj_kernel,
        out_shape=jax.ShapeDtypeStruct((M_pad, 4 * Hp), gx_dtype),
        grid_spec=pltpu.PrefetchScalarGridSpec(
            num_scalar_prefetch=0,
            grid=(M_pad // tm,),
            in_specs=[
                pl.BlockSpec((tm, nx), lambda i: (i, 0)),
                _weight_spec(w_in_t.shape, 1, single_buffer_weights),
                _weight_spec(b_in.shape, 1, single_buffer_weights),
                _weight_spec(w_ih_p.shape, 1, single_buffer_weights),
                _weight_spec(b_g.shape, 1, single_buffer_weights),
            ],
            out_specs=pl.BlockSpec((tm, 4 * Hp), lambda i: (i, 0)),
        ),
        compiler_params=pltpu.CompilerParams(
            dimension_semantics=("parallel",),
            vmem_limit_bytes=budget),
    )(x2d, w_in_t, b_in, w_ih_p, b_g)
    gx = gx[:m_rows].reshape(T_pad, B_pad, 4 * Hp)           # free reshape in XLA

    # ---- Kernel B: serial recurrence, full-batch tiles, time chunks (innermost) -------
    # Cap the unroll for large tiles to avoid vreg spill; full unroll only for small Hp*tb.
    unroll = tc if tb * Hp <= 4096 else max(1, min(tc, 4))
    kernel_b = functools.partial(_lstm_recurrence_kernel, hidden=Hp, chunk=tc,
                                 unroll=unroll)
    hs = pl.pallas_call(
        kernel_b,
        out_shape=jax.ShapeDtypeStruct((T_pad, B_pad, Hp), x.dtype),
        grid_spec=pltpu.PrefetchScalarGridSpec(
            num_scalar_prefetch=0,
            # Time MUST be the innermost ("arbitrary") axis: the h/c scratch carry
            # depends on visiting every time chunk of a batch tile consecutively.
            grid=(B_pad // tb, T_pad // tc),
            in_specs=[
                pl.BlockSpec((tc, tb, 4 * Hp), lambda b, t: (t, b, 0)),
                _weight_spec(w_hh_p.shape, 2, single_buffer_weights),
            ],
            out_specs=pl.BlockSpec((tc, tb, Hp), lambda b, t: (t, b, 0)),
            scratch_shapes=[
                pltpu.VMEM((tb, Hp), jnp.float32),   # h state (f32 carry)
                pltpu.VMEM((tb, Hp), jnp.float32),   # c state (f32 carry)
            ],
        ),
        compiler_params=pltpu.CompilerParams(
            dimension_semantics=("parallel", "arbitrary"),
            vmem_limit_bytes=budget),
    )(gx, w_hh_p)

    # ---- linearOut: one batched (T*B, Hp) @ (Hp, ny) matmul off the serial path -------
    hs = hs[:T, :B]
    out = hs.reshape(T * B, Hp).astype(jnp.float32) @ w_out_t + b_out
    return out.reshape(T, B, ny).astype(x.dtype)


# ----------------------------------------------------------------------------- params
def pack_params(raw, *, weight_dtype=jnp.bfloat16, lane_align=128):
    """Fuse the 4 gate matrices and zero-pad the hidden size to a multiple of 128.

    Zero-padded weight columns/rows + zero biases keep the padded hidden units exactly
    zero throughout the recurrence, so the padding is numerically invisible."""
    H, nx = raw["w_in"].shape
    ny = raw["w_out"].shape[0]
    Hp = _round_up(H, lane_align)

    w_in_t = jnp.zeros((nx, Hp), jnp.float32).at[:, :H].set(raw["w_in"].T)
    b_in = jnp.zeros((1, Hp), jnp.float32).at[0, :H].set(raw["b_in"])

    def pack_gates(w):  # torch layout (4H, H), gate order i,f,g,o -> (Hp, 4Hp)
        out = jnp.zeros((Hp, 4 * Hp), jnp.float32)
        for k in range(4):
            out = out.at[:H, k * Hp:k * Hp + H].set(w[k * H:(k + 1) * H, :].T)
        return out

    w_ih_p = pack_gates(raw["w_ih"])
    w_hh_p = pack_gates(raw["w_hh"])

    bsum = raw["b_ih"] + raw["b_hh"]
    b_g = jnp.zeros((1, 4 * Hp), jnp.float32)
    for k in range(4):
        b_g = b_g.at[0, k * Hp:k * Hp + H].set(bsum[k * H:(k + 1) * H])

    w_out_t = jnp.zeros((Hp, ny), jnp.float32).at[:H, :].set(raw["w_out"].T)
    b_out = raw["b_out"].reshape(1, ny)

    return {
        "w_in_t": w_in_t.astype(weight_dtype),
        "b_in": b_in,
        "w_ih_p": w_ih_p.astype(weight_dtype),
        "w_hh_p": w_hh_p.astype(weight_dtype),
        "b_g": b_g,
        "w_out_t": w_out_t,
        "b_out": b_out,
    }


def init_params(key, nx, ny, hidden, *, weight_dtype=jnp.bfloat16):
    """Deterministic synthetic parameters matching the torch module's init."""
    ks = jax.random.split(key, 8)
    stdv = 1.0 / jnp.sqrt(float(hidden))
    u = lambda k, shp: jax.random.uniform(k, shp, jnp.float32, -stdv, stdv)
    raw = dict(
        w_in=u(ks[0], (hidden, nx)),          # linearIn.weight (H, nx)
        b_in=u(ks[1], (hidden,)),
        w_ih=u(ks[2], (4 * hidden, hidden)),  # lstm.w_ih (4H, H), gate order i,f,g,o
        w_hh=u(ks[3], (4 * hidden, hidden)),
        b_ih=u(ks[4], (4 * hidden,)),
        b_hh=u(ks[5], (4 * hidden,)),
        w_out=u(ks[6], (ny, hidden)),         # linearOut.weight (ny, H)
        b_out=u(ks[7], (ny,)),
    )
    return pack_params(raw, weight_dtype=weight_dtype), raw


def reference_forward(x, raw, hidden):
    """Pure-JAX reference reproducing the PyTorch forward (no dropout)."""
    hp = lax.Precision.HIGHEST
    x0 = jax.nn.relu(jnp.einsum("tbi,hi->tbh", x, raw["w_in"], precision=hp) + raw["b_in"])

    def step(carry, xt):
        h, c = carry
        gates = (jnp.dot(xt, raw["w_ih"].T, precision=hp) + raw["b_ih"]
                 + jnp.dot(h, raw["w_hh"].T, precision=hp) + raw["b_hh"])
        i, f, g, o = jnp.split(gates, 4, axis=-1)
        c = jax.nn.sigmoid(f) * c + jax.nn.sigmoid(i) * jnp.tanh(g)
        h = jax.nn.sigmoid(o) * jnp.tanh(c)
        return (h, c), h

    B = x.shape[1]
    h0 = jnp.zeros((B, hidden), jnp.float32)
    c0 = jnp.zeros((B, hidden), jnp.float32)
    _, hs = lax.scan(step, (h0, c0), x0)
    return jnp.einsum("tbh,oh->tbo", hs, raw["w_out"], precision=hp) + raw["b_out"]


if __name__ == "__main__":
    T, B, nx, hidden, ny = 32, 16, 8, 32, 4
    key = jax.random.PRNGKey(0)
    kx, kp = jax.random.split(key)
    x = jax.random.normal(kx, (T, B, nx), jnp.float32)

    # f32 weights + f32 gx: check against the pure-JAX reference (tolerance accounts for
    # MXU matmul-pass precision differences vs the HIGHEST-precision XLA reference).
    params_f32, raw = init_params(kp, nx, ny, hidden, weight_dtype=jnp.float32)
    single_buf = True
    try:
        out = jax.block_until_ready(cudnn_lstm_model_forward(x, params_f32))
    except Exception:
        # Compatibility fallback if single-buffered weight BlockSpecs are rejected.
        single_buf = False
        out = jax.block_until_ready(
            cudnn_lstm_model_forward(x, params_f32, single_buffer_weights=False))
    ref = jax.block_until_ready(reference_forward(x, raw, hidden))
    assert out.shape == (T, B, ny)
    err = float(jnp.max(jnp.abs(out - ref)))
    assert err < 2e-2, f"f32 path max|err|={err}"

    # Default path: bf16 packed weights + bf16 gx intermediate (f32 MXU accumulation,
    # f32 h/c carry, f32 gate nonlinearities): loose numerical check.
    params_bf16, _ = init_params(kp, nx, ny, hidden, weight_dtype=jnp.bfloat16)
    out_bf16 = jax.block_until_ready(
        cudnn_lstm_model_forward(x, params_bf16, single_buffer_weights=single_buf))
    err_bf16 = float(jnp.max(jnp.abs(out_bf16 - ref)))
    assert err_bf16 < 0.25, f"bf16 path max|err|={err_bf16}"

    print("KERNEL_OK")
</pallas_src>

<mosaic_0001>
module attributes {stable_mosaic.version = 11 : i64} {
  func.func @_input_proj_kernel(%arg0: i32, %arg1: memref<512x8xf32, #tpu.memory_space<vmem>>, %arg2: memref<8x128xf32, #tpu.memory_space<vmem>>, %arg3: memref<1x128xf32, #tpu.memory_space<vmem>>, %arg4: memref<128x512xf32, #tpu.memory_space<vmem>>, %arg5: memref<1x512xf32, #tpu.memory_space<vmem>>, %arg6: memref<512x512xf32, #tpu.memory_space<vmem>>) attributes {dimension_semantics = [#tpu.dimension_semantics<parallel>], iteration_bounds = array<i64: 1>, scalar_prefetch = 0 : i64, scratch_operands = 0 : i64, tpu.core_type = #tpu.core_type<tc>, window_params = [{transform_indices = @transform_0, window_bounds = array<i64: 512, 8>}, {pipeline_mode = #tpu.pipeline_mode<synchronous>, transform_indices = @transform_1, window_bounds = array<i64: 8, 128>}, {pipeline_mode = #tpu.pipeline_mode<synchronous>, transform_indices = @transform_2, window_bounds = array<i64: 1, 128>}, {pipeline_mode = #tpu.pipeline_mode<synchronous>, transform_indices = @transform_3, window_bounds = array<i64: 128, 512>}, {pipeline_mode = #tpu.pipeline_mode<synchronous>, transform_indices = @transform_4, window_bounds = array<i64: 1, 512>}, {transform_indices = @transform_5, window_bounds = array<i64: 512, 512>}]} {
    %c0 = arith.constant 0 : index
    %c0_0 = arith.constant 0 : index
    %0 = vector.load %arg1[%c0, %c0_0] : memref<512x8xf32, #tpu.memory_space<vmem>>, vector<512x8xf32>
    %c0_1 = arith.constant 0 : index
    %c0_2 = arith.constant 0 : index
    %1 = vector.load %arg2[%c0_1, %c0_2] : memref<8x128xf32, #tpu.memory_space<vmem>>, vector<8x128xf32>
    %cst = arith.constant dense<0.000000e+00> : vector<512x128xf32>
    %2 = tpu.matmul %0, %1, %cst {dimension_numbers = #tpu.dot_dimension_numbers<[1], [0], [0], [1], [0, 0, 1, 1], [], []>} : vector<512x8xf32>, vector<8x128xf32>, vector<512x128xf32> -> vector<512x128xf32>
    %c0_3 = arith.constant 0 : index
    %c0_4 = arith.constant 0 : index
    %3 = vector.load %arg3[%c0_3, %c0_4] : memref<1x128xf32, #tpu.memory_space<vmem>>, vector<1x128xf32>
    %4 = vector.broadcast %3 : vector<1x128xf32> to vector<512x128xf32>
    %5 = arith.addf %2, %4 : vector<512x128xf32>
    %cst_5 = arith.constant 0.000000e+00 : f32
    %6 = vector.broadcast %cst_5 : f32 to vector<512x128xf32>
    %7 = arith.maximumf %5, %6 : vector<512x128xf32>
    %c0_6 = arith.constant 0 : index
    %c0_7 = arith.constant 0 : index
    %8 = vector.load %arg4[%c0_6, %c0_7] : memref<128x512xf32, #tpu.memory_space<vmem>>, vector<128x512xf32>
    %cst_8 = arith.constant dense<0.000000e+00> : vector<512x512xf32>
    %9 = tpu.matmul %7, %8, %cst_8 {dimension_numbers = #tpu.dot_dimension_numbers<[1], [0], [0], [1], [0, 0, 1, 1], [], []>} : vector<512x128xf32>, vector<128x512xf32>, vector<512x512xf32> -> vector<512x512xf32>
    %c0_9 = arith.constant 0 : index
    %c0_10 = arith.constant 0 : index
    %10 = vector.load %arg5[%c0_9, %c0_10] : memref<1x512xf32, #tpu.memory_space<vmem>>, vector<1x512xf32>
    %11 = vector.broadcast %10 : vector<1x512xf32> to vector<512x512xf32>
    %12 = arith.addf %9, %11 : vector<512x512xf32>
    %c0_11 = arith.constant 0 : index
    %c0_12 = arith.constant 0 : index
    %13 = vector.load %arg6[%c0_11, %c0_12] : memref<512x512xf32, #tpu.memory_space<vmem>>, vector<512x512xf32>
    tpu.vector_store %arg6[%c0_11, %c0_12], %12 {strides = array<i32>} : memref<512x512xf32, #tpu.memory_space<vmem>>, vector<512x512xf32>,
    return
  }
  func.func @transform_0(%arg0: i32) -> (i32, i32) {
    %c0_i32 = arith.constant 0 : i32
    %c0_i32_0 = arith.constant 0 : i32
    return %arg0, %c0_i32 : i32, i32
  }
  func.func @transform_1(%arg0: i32) -> (i32, i32) {
    %c0_i32 = arith.constant 0 : i32
    %c0_i32_0 = arith.constant 0 : i32
    %c0_i32_1 = arith.constant 0 : i32
    return %c0_i32, %c0_i32_0 : i32, i32
  }
  func.func @transform_2(%arg0: i32) -> (i32, i32) {
    %c0_i32 = arith.constant 0 : i32
    %c0_i32_0 = arith.constant 0 : i32
    %c0_i32_1 = arith.constant 0 : i32
    return %c0_i32, %c0_i32_0 : i32, i32
  }
  func.func @transform_3(%arg0: i32) -> (i32, i32) {
    %c0_i32 = arith.constant 0 : i32
    %c0_i32_0 = arith.constant 0 : i32
    %c0_i32_1 = arith.constant 0 : i32
    return %c0_i32, %c0_i32_0 : i32, i32
  }
  func.func @transform_4(%arg0: i32) -> (i32, i32) {
    %c0_i32 = arith.constant 0 : i32
    %c0_i32_0 = arith.constant 0 : i32
    %c0_i32_1 = arith.constant 0 : i32
    return %c0_i32, %c0_i32_0 : i32, i32
  }
  func.func @transform_5(%arg0: i32) -> (i32, i32) {
    %c0_i32 = arith.constant 0 : i32
    %c0_i32_0 = arith.constant 0 : i32
    return %arg0, %c0_i32 : i32, i32
  }
}

module attributes {stable_mosaic.version = 11 : i64} {
  func.func @_input_proj_kernel(%arg0: i32, %arg1: memref<512x8xf32, #tpu.memory_space<vmem>>, %arg2: memref<8x128xf32, #tpu.memory_space<vmem>>, %arg3: memref<1x128xf32, #tpu.memory_space<vmem>>, %arg4: memref<128x512xf32, #tpu.memory_space<vmem>>, %arg5: memref<1x512xf32, #tpu.memory_space<vmem>>, %arg6: memref<512x512xf32, #tpu.memory_space<vmem>>) attributes {dimension_semantics = [#tpu.dimension_semantics<parallel>], iteration_bounds = array<i64: 1>, scalar_prefetch = 0 : i64, scratch_operands = 0 : i64, tpu.core_type = #tpu.core_type<tc>, window_params = [{transform_indices = @transform_0, window_bounds = array<i64: 512, 8>}, {pipeline_mode = #tpu.pipeline_mode<synchronous>, transform_indices = @transform_1, window_bounds = array<i64: 8, 128>}, {pipeline_mode = #tpu.pipeline_mode<synchronous>, transform_indices = @transform_2, window_bounds = array<i64: 1, 128>}, {pipeline_mode = #tpu.pipeline_mode<synchronous>, transform_indices = @transform_3, window_bounds = array<i64: 128, 512>}, {pipeline_mode = #tpu.pipeline_mode<synchronous>, transform_indices = @transform_4, window_bounds = array<i64: 1, 512>}, {transform_indices = @transform_5, window_bounds = array<i64: 512, 512>}]} {
    %c0 = arith.constant 0 : index
    %c0_0 = arith.constant 0 : index
    %0 = vector.load %arg1[%c0, %c0_0] : memref<512x8xf32, #tpu.memory_space<vmem>>, vector<512x8xf32>
    %c0_1 = arith.constant 0 : index
    %c0_2 = arith.constant 0 : index
    %1 = vector.load %arg2[%c0_1, %c0_2] : memref<8x128xf32, #tpu.memory_space<vmem>>, vector<8x128xf32>
    %cst = arith.constant dense<0.000000e+00> : vector<512x128xf32>
    %2 = tpu.matmul %0, %1, %cst {dimension_numbers = #tpu.dot_dimension_numbers<[1], [0], [0], [1], [0, 0, 1, 1], [], []>} : vector<512x8xf32>, vector<8x128xf32>, vector<512x128xf32> -> vector<512x128xf32>
    %c0_3 = arith.constant 0 : index
    %c0_4 = arith.constant 0 : index
    %3 = vector.load %arg3[%c0_3, %c0_4] : memref<1x128xf32, #tpu.memory_space<vmem>>, vector<1x128xf32>
    %4 = vector.broadcast %3 : vector<1x128xf32> to vector<512x128xf32>
    %5 = arith.addf %2, %4 : vector<512x128xf32>
    %cst_5 = arith.constant 0.000000e+00 : f32
    %6 = vector.broadcast %cst_5 : f32 to vector<512x128xf32>
    %7 = arith.maximumf %5, %6 : vector<512x128xf32>
    %c0_6 = arith.constant 0 : index
    %c0_7 = arith.constant 0 : index
    %8 = vector.load %arg4[%c0_6, %c0_7] : memref<128x512xf32, #tpu.memory_space<vmem>>, vector<128x512xf32>
    %cst_8 = arith.constant dense<0.000000e+00> : vector<512x512xf32>
    %9 = tpu.matmul %7, %8, %cst_8 {dimension_numbers = #tpu.dot_dimension_numbers<[1], [0], [0], [1], [0, 0, 1, 1], [], []>} : vector<512x128xf32>, vector<128x512xf32>, vector<512x512xf32> -> vector<512x512xf32>
    %c0_9 = arith.constant 0 : index
    %c0_10 = arith.constant 0 : index
    %10 = vector.load %arg5[%c0_9, %c0_10] : memref<1x512xf32, #tpu.memory_space<vmem>>, vector<1x512xf32>
    %11 = vector.broadcast %10 : vector<1x512xf32> to vector<512x512xf32>
    %12 = arith.addf %9, %11 : vector<512x512xf32>
    %c0_11 = arith.constant 0 : index
    %c0_12 = arith.constant 0 : index
    %13 = vector.load %arg6[%c0_11, %c0_12] : memref<512x512xf32, #tpu.memory_space<vmem>>, vector<512x512xf32>
    tpu.vector_store %arg6[%c0_11, %c0_12], %12 {strides = array<i32>} : memref<512x512xf32, #tpu.memory_space<vmem>>, vector<512x512xf32>,
    return
  }
  func.func @transform_0(%arg0: i32) -> (i32, i32) {
    %c0_i32 = arith.constant 0 : i32
    %c0_i32_0 = arith.constant 0 : i32
    return %arg0, %c0_i32 : i32, i32
  }
  func.func @transform_1(%arg0: i32) -> (i32, i32) {
    %c0_i32 = arith.constant 0 : i32
    %c0_i32_0 = arith.constant 0 : i32
    %c0_i32_1 = arith.constant 0 : i32
    return %c0_i32, %c0_i32_0 : i32, i32
  }
  func.func @transform_2(%arg0: i32) -> (i32, i32) {
    %c0_i32 = arith.constant 0 : i32
    %c0_i32_0 = arith.constant 0 : i32
    %c0_i32_1 = arith.constant 0 : i32
    return %c0_i32, %c0_i32_0 : i32, i32
  }
  func.func @transform_3(%arg0: i32) -> (i32, i32) {
    %c0_i32 = arith.constant 0 : i32
    %c0_i32_0 = arith.constant 0 : i32
    %c0_i32_1 = arith.constant 0 : i32
    return %c0_i32, %c0_i32_0 : i32, i32
  }
  func.func @transform_4(%arg0: i32) -> (i32, i32) {
    %c0_i32 = arith.constant 0 : i32
    %c0_i32_0 = arith.constant 0 : i32
    %c0_i32_1 = arith.constant 0 : i32
    return %c0_i32, %c0_i32_0 : i32, i32
  }
  func.func @transform_5(%arg0: i32) -> (i32, i32) {
    %c0_i32 = arith.constant 0 : i32
    %c0_i32_0 = arith.constant 0 : i32
    return %arg0, %c0_i32 : i32, i32
  }
}

</mosaic_0001>

<bundles_post_ra>
// kernel: tpu_custom_call.1
= control target key start
LH: loop header
LB: loop body
LE: loop exit
PB: predicated region body
PF: predicated region fallthrough
CT: control target
= control target key end

     0   :  { %vm93_vm0 = vcmask 64512   ;;  %s3425_s0 = inlined_call_operand.vmem [shape: f32[512,8], index: 0, kind: input, shape index: {}]   ;;  %s3426_s1 = inlined_call_operand.vmem [shape: f32[8,128], index: 1, kind: input, shape index: {}]   ;;  %s3427_s2 = inlined_call_operand.vmem [shape: f32[1,128], index: 2, kind: input, shape index: {}]   ;;  %s3428_s3 = inlined_call_operand.vmem [shape: f32[128,512], index: 3, kind: input, shape index: {}]   ;;  %s3429_s4 = inlined_call_operand.vmem [shape: f32[1,512], index: 4, kind: input, shape index: {}]   ;;  %s3430_s5 = inlined_call_operand.hbm [shape: f32[512,512], index: 5, kind: output, shape index: {}]  }
   0x1   :  { %v85_v0 = vld [vmem:[%s3426_s1] sm:$0xff]  ;;  %v22_v2 = vld [vmem:[%s3425_s0 + $0x8] sm:$0xff]  ;;  %v23_v3 = vld [vmem:[%s3425_s0 + $0x10] sm:$0xff] }
   0x2   :  { %v21_v1 = vld [vmem:[%s3425_s0] sm:$0xff]  ;;  %2121 = vmatprep.subr.mxu0 %v85_v0  ;;  %2283 = vmatprep.subr.mxu1 %v85_v0  ;;  %v24_v4 = vld [vmem:[%s3425_s0 + $0x18] sm:$0xff]  ;;  %v26_v6 = vld [vmem:[%s3425_s0 + $0x28] sm:$0xff] }
   0x3   :  { %2123 = vmatprep.mubr.msk.f32.mxu0 %vm93_vm0, %v21_v1  ;;  %2122 = vmatpush3.msra.mxu0 %v85_v0  ;;  %v25_v5 = vld [vmem:[%s3425_s0 + $0x20] sm:$0xff]  ;;  %v27_v7 = vld [vmem:[%s3425_s0 + $0x30] sm:$0xff]  ;;  %v54_v9 = vld [vmem:[%s3425_s0 + $0x108] sm:$0xff] }
   0x4   :  { %2124 = vmatmul.mubr.msk.f32.vlgmr.msra.gmra.mrb[0].mxu0 %vm93_vm0, %v22_v2  ;;  %2284 = vmatpush3.msra.mxu1 %v85_v0  ;;  %v53_v8 = vld [vmem:[%s3425_s0 + $0x100] sm:$0xff]  ;;  %v55_v10 = vld [vmem:[%s3425_s0 + $0x110] sm:$0xff]  ;;  %v28_v11 = vld [vmem:[%s3425_s0 + $0x38] sm:$0xff] }
   0x5   :  { %2126 = vmatprep.mubr.msk.f32.mxu0 %vm93_vm0, %v23_v3  ;;  %v29_v12 = vld [vmem:[%s3425_s0 + $0x40] sm:$0xff]  ;;  %2171 = vmatprep.mubr.msk.f32.mxu1 %vm93_vm0, %v53_v8  ;;  %v56_v13 = vld [vmem:[%s3425_s0 + $0x118] sm:$0xff]  ;;  %v736_v15 = vld [vmem:[%s3428_s3 + $0x8] sm:$0xff] }
   0x6   :  { %2172 = vmatmul.mubr.msk.f32.vlgmr.msra.gmra.mrb[0].mxu1 %vm93_vm0, %v54_v9  ;;  %v57_v14 = vld [vmem:[%s3425_s0 + $0x120] sm:$0xff]  ;;  %v30_v16 = vld [vmem:[%s3425_s0 + $0x48] sm:$0xff]  ;;  %v738_v18 = vld [vmem:[%s3428_s3 + $0x18] sm:$0xff] }
   0x7   :  { %2174 = vmatprep.mubr.msk.f32.mxu1 %vm93_vm0, %v55_v10  ;;  %v740_v17 = vld [vmem:[%s3428_s3 + $0x28] sm:$0xff]  ;;  %v742_v19 = vld [vmem:[%s3428_s3 + $0x38] sm:$0xff]  ;;  %v735_v22 = vld [vmem:[%s3428_s3] sm:$0xff] }
   0x8   :  { %2127 = vmatmul.mubr.msk.f32.gmra.mrb[2].mxu0 %vm93_vm0, %v24_v4  ;;  %v2219_v20 = vpack.c.bf16 %v740_v17, %v736_v15  ;;  %v2251_v21 = vpack.c.bf16 %v742_v19, %v738_v18  ;;  %v739_v23 = vld [vmem:[%s3428_s3 + $0x20] sm:$0xff]  ;;  %v737_v24 = vld [vmem:[%s3428_s3 + $0x10] sm:$0xff]  ;;  %v58_v26 = vld [vmem:[%s3425_s0 + $0x128] sm:$0xff] }
   0x9   :  { %2129 = vmatprep.mubr.msk.f32.mxu0 %vm93_vm0, %v25_v5  ;;  %v31_v25 = vld [vmem:[%s3425_s0 + $0x50] sm:$0xff]  ;;  %v2221_v27 = vpack.c.bf16 %v739_v23, %v735_v22  ;;  %v744_v30 = vld [vmem:[%s3428_s3 + $0x48] sm:$0xff]  ;;  %v746_v32 = vld [vmem:[%s3428_s3 + $0x58] sm:$0xff] }
   0xa   :  { %v741_v28 = vld [vmem:[%s3428_s3 + $0x30] sm:$0xff]  ;;  %2175 = vmatmul.mubr.msk.f32.gmra.mrb[2].mxu1 %vm93_vm0, %v56_v13  ;;  %2220 = vmatprep.subr.bf16.mxu1 %v2219_v20  ;;  %v748_v31 = vld [vmem:[%s3428_s3 + $0x68] sm:$0xff]  ;;  %v32_v33 = vld [vmem:[%s3425_s0 + $0x58] sm:$0xff] }
   0xb   :  { %v2253_v29 = vpack.c.bf16 %v741_v28, %v737_v24  ;;  %2177 = vmatprep.mubr.msk.f32.mxu1 %vm93_vm0, %v57_v14  ;;  %2252 = vmatprep.subr.bf16.mxu0 %v2251_v21  ;;  %v2223_v34 = vpack.c.bf16 %v748_v31, %v744_v30  ;;  %v750_v35 = vld [vmem:[%s3428_s3 + $0x78] sm:$0xff]  ;;  %v743_v36 = vld [vmem:[%s3428_s3 + $0x40] sm:$0xff]  ;;  %v59_v39 = vld [vmem:[%s3425_s0 + $0x130] sm:$0xff] }
   0xc   :  { %2130 = vmatmul.mubr.msk.f32.gmra.mrb[4].mxu0 %vm93_vm0, %v26_v6  ;;  %v747_v37 = vld [vmem:[%s3428_s3 + $0x60] sm:$0xff]  ;;  %2222 = vmatpush1.bf16.msra.mxu1 %v2221_v27  ;;  %v2255_v40 = vpack.c.bf16 %v750_v35, %v746_v32  ;;  %v745_v42 = vld [vmem:[%s3428_s3 + $0x50] sm:$0xff]  ;;  %v60_v44 = vld [vmem:[%s3425_s0 + $0x138] sm:$0xff] }
   0xd   :  { %2132 = vmatprep.mubr.msk.f32.mxu0 %vm93_vm0, %v27_v7  ;;  %v33_v38 = vld [vmem:[%s3425_s0 + $0x60] sm:$0xff]  ;;  %v2225_v41 = vpack.c.bf16 %v747_v37, %v743_v36  ;;  %v749_v43 = vld [vmem:[%s3428_s3 + $0x70] sm:$0xff]  ;;  %2254 = vmatpush1.bf16.msra.mxu0 %v2253_v29  ;;  %v752_v46 = vld [vmem:[%s3428_s3 + $0x88] sm:$0xff] }
   0xe   :  { %v2257_v45 = vpack.c.bf16 %v749_v43, %v745_v42  ;;  %v756_v47 = vld [vmem:[%s3428_s3 + $0xa8] sm:$0xff]  ;;  %2178 = vmatmul.mubr.msk.f32.gmra.mrb[4].mxu1 %vm93_vm0, %v58_v26  ;;  %2224 = vmatprep.subr.bf16.mxu1 %v2223_v34  ;;  %v754_v49 = vld [vmem:[%s3428_s3 + $0x98] sm:$0xff]  ;;  %v751_v51 = vld [vmem:[%s3428_s3 + $0x80] sm:$0xff] }
   0xf   :  { %v2227_v48 = vpack.c.bf16 %v756_v47, %v752_v46  ;;  %v758_v50 = vld [vmem:[%s3428_s3 + $0xb8] sm:$0xff]  ;;  %v34_v52 = vld [vmem:[%s3425_s0 + $0x68] sm:$0xff]  ;;  %2180 = vmatprep.mubr.msk.f32.mxu1 %vm93_vm0, %v59_v39  ;;  %2256 = vmatprep.subr.bf16.mxu0 %v2255_v40  ;;  %v755_v54 = vld [vmem:[%s3428_s3 + $0xa0] sm:$0xff] }
  0x10   :  { %2133 = vmatmul.mubr.msk.f32.gmra.mrb[6].mxu0 %vm93_vm0, %v28_v11  ;;  %v2259_v53 = vpack.c.bf16 %v758_v50, %v754_v49  ;;  %v753_v55 = vld [vmem:[%s3428_s3 + $0x90] sm:$0xff]  ;;  %v61_v58 = vld [vmem:[%s3425_s0 + $0x140] sm:$0xff]  ;;  %2226 = vmatpush1.bf16.msra.mxu1 %v2225_v41  ;;  %v2229_v59 = vpack.c.bf16 %v755_v54, %v751_v51  ;;  %v760_v60 = vld [vmem:[%s3428_s3 + $0xc8] sm:$0xff] }
  0x11   :  { %2135 = vmatprep.mubr.msk.f32.mxu0 %vm93_vm0, %v29_v12  ;;  %v757_v56 = vld [vmem:[%s3428_s3 + $0xb0] sm:$0xff]  ;;  %2258 = vmatpush1.bf16.msra.mxu0 %v2257_v45  ;;  %v764_v62 = vld [vmem:[%s3428_s3 + $0xe8] sm:$0xff]  ;;  %v762_v63 = vld [vmem:[%s3428_s3 + $0xd8] sm:$0xff] }
  0x12   :  { %v35_v57 = vld [vmem:[%s3425_s0 + $0x70] sm:$0xff]  ;;  %v2261_v61 = vpack.c.bf16 %v757_v56, %v753_v55  ;;  %v766_v0 = vld [vmem:[%s3428_s3 + $0xf8] sm:$0xff]  ;;  %2181 = vmatmul.mubr.msk.f32.gmra.mrb[6].mxu1 %vm93_vm0, %v60_v44  ;;  %2228 = vmatprep.subr.bf16.mxu1 %v2227_v48  ;;  %v2231_v1 = vpack.c.bf16 %v764_v62, %v760_v60  ;;  %v759_v2 = vld [vmem:[%s3428_s3 + $0xc0] sm:$0xff] }
  0x13   :  { %v763_v3 = vld [vmem:[%s3428_s3 + $0xe0] sm:$0xff]  ;;  %v761_v4 = vld [vmem:[%s3428_s3 + $0xd0] sm:$0xff]  ;;  %v36_v5 = vld [vmem:[%s3425_s0 + $0x78] sm:$0xff]  ;;  %2183 = vmatprep.mubr.msk.f32.mxu1 %vm93_vm0, %v61_v58  ;;  %2260 = vmatprep.subr.bf16.mxu0 %v2259_v53  ;;  %v2263_v7 = vpack.c.bf16 %v766_v0, %v762_v63 }
  0x14   :  { %2136 = vmatmul.mubr.msk.f32.gmra.mrb[8].mxu0 %vm93_vm0, %v30_v16  ;;  %v62_v6 = vld [vmem:[%s3425_s0 + $0x148] sm:$0xff]  ;;  %v765_v8 = vld [vmem:[%s3428_s3 + $0xf0] sm:$0xff]  ;;  %v37_v9 = vld [vmem:[%s3425_s0 + $0x80] sm:$0xff]  ;;  %2230 = vmatpush1.bf16.msra.mxu1 %v2229_v59  ;;  %v2233_v11 = vpack.c.bf16 %v763_v3, %v759_v2 }
  0x15   :  { %2138 = vmatprep.mubr.msk.f32.mxu0 %vm93_vm0, %v31_v25  ;;  %v63_v10 = vld [vmem:[%s3425_s0 + $0x150] sm:$0xff]  ;;  %v768_v12 = vld [vmem:[%s3428_s3 + $0x108] sm:$0xff]  ;;  %2262 = vmatpush1.bf16.msra.mxu0 %v2261_v61  ;;  %v2265_v13 = vpack.c.bf16 %v765_v8, %v761_v4  ;;  %v770_v15 = vld [vmem:[%s3428_s3 + $0x118] sm:$0xff] }
  0x16   :  { %v772_v14 = vld [vmem:[%s3428_s3 + $0x128] sm:$0xff]  ;;  %v774_v16 = vld [vmem:[%s3428_s3 + $0x138] sm:$0xff]  ;;  %2184 = vmatmul.mubr.msk.f32.gmra.mrb[8].mxu1 %vm93_vm0, %v62_v6  ;;  %2232 = vmatprep.subr.bf16.mxu1 %v2231_v1  ;;  %v767_v18 = vld [vmem:[%s3428_s3 + $0x100] sm:$0xff] }
  0x17   :  { %v2235_v17 = vpack.c.bf16 %v772_v14, %v768_v12  ;;  %v771_v19 = vld [vmem:[%s3428_s3 + $0x120] sm:$0xff]  ;;  %v769_v20 = vld [vmem:[%s3428_s3 + $0x110] sm:$0xff]  ;;  %v38_v21 = vld [vmem:[%s3425_s0 + $0x88] sm:$0xff]  ;;  %2186 = vmatprep.mubr.msk.f32.mxu1 %vm93_vm0, %v63_v10  ;;  %2264 = vmatprep.subr.bf16.mxu0 %v2263_v7  ;;  %v2267_v23 = vpack.c.bf16 %v774_v16, %v770_v15 }
  0x18   :  { %2139 = vmatmul.mubr.msk.f32.gmra.mrb[10].mxu0 %vm93_vm0, %v32_v33  ;;  %v64_v22 = vld [vmem:[%s3425_s0 + $0x158] sm:$0xff]  ;;  %v773_v24 = vld [vmem:[%s3428_s3 + $0x130] sm:$0xff]  ;;  %v65_v26 = vld [vmem:[%s3425_s0 + $0x160] sm:$0xff]  ;;  %2234 = vmatpush1.bf16.msra.mxu1 %v2233_v11  ;;  %v2237_v27 = vpack.c.bf16 %v771_v19, %v767_v18 }
  0x19   :  { %2141 = vmatprep.mubr.msk.f32.mxu0 %vm93_vm0, %v33_v38  ;;  %v39_v25 = vld [vmem:[%s3425_s0 + $0x90] sm:$0xff]  ;;  %v776_v28 = vld [vmem:[%s3428_s3 + $0x148] sm:$0xff]  ;;  %2266 = vmatpush1.bf16.msra.mxu0 %v2265_v13  ;;  %v2269_v29 = vpack.c.bf16 %v773_v24, %v769_v20  ;;  %v778_v31 = vld [vmem:[%s3428_s3 + $0x158] sm:$0xff] }
  0x1a   :  { %v780_v30 = vld [vmem:[%s3428_s3 + $0x168] sm:$0xff]  ;;  %v782_v32 = vld [vmem:[%s3428_s3 + $0x178] sm:$0xff]  ;;  %2187 = vmatmul.mubr.msk.f32.gmra.mrb[10].mxu1 %vm93_vm0, %v64_v22  ;;  %2236 = vmatprep.subr.bf16.mxu1 %v2235_v17  ;;  %v775_v34 = vld [vmem:[%s3428_s3 + $0x140] sm:$0xff] }
  0x1b   :  { %v2239_v33 = vpack.c.bf16 %v780_v30, %v776_v28  ;;  %v779_v35 = vld [vmem:[%s3428_s3 + $0x160] sm:$0xff]  ;;  %v777_v36 = vld [vmem:[%s3428_s3 + $0x150] sm:$0xff]  ;;  %v40_v37 = vld [vmem:[%s3425_s0 + $0x98] sm:$0xff]  ;;  %2189 = vmatprep.mubr.msk.f32.mxu1 %vm93_vm0, %v65_v26  ;;  %2268 = vmatprep.subr.bf16.mxu0 %v2267_v23  ;;  %v2271_v39 = vpack.c.bf16 %v782_v32, %v778_v31 }
  0x1c   :  { %2142 = vmatmul.mubr.msk.f32.gmra.mrb[12].mxu0 %vm93_vm0, %v34_v52  ;;  %v66_v38 = vld [vmem:[%s3425_s0 + $0x168] sm:$0xff]  ;;  %v781_v40 = vld [vmem:[%s3428_s3 + $0x170] sm:$0xff]  ;;  %v41_v41 = vld [vmem:[%s3425_s0 + $0xa0] sm:$0xff]  ;;  %2238 = vmatpush1.bf16.msra.mxu1 %v2237_v27  ;;  %v2241_v43 = vpack.c.bf16 %v779_v35, %v775_v34 }
  0x1d   :  { %2144 = vmatprep.mubr.msk.f32.mxu0 %vm93_vm0, %v35_v57  ;;  %v67_v42 = vld [vmem:[%s3425_s0 + $0x170] sm:$0xff]  ;;  %v784_v44 = vld [vmem:[%s3428_s3 + $0x188] sm:$0xff]  ;;  %2270 = vmatpush1.bf16.msra.mxu0 %v2269_v29  ;;  %v2273_v45 = vpack.c.bf16 %v781_v40, %v777_v36  ;;  %v786_v47 = vld [vmem:[%s3428_s3 + $0x198] sm:$0xff] }
  0x1e   :  { %v788_v46 = vld [vmem:[%s3428_s3 + $0x1a8] sm:$0xff]  ;;  %v790_v48 = vld [vmem:[%s3428_s3 + $0x1b8] sm:$0xff]  ;;  %2190 = vmatmul.mubr.msk.f32.gmra.mrb[12].mxu1 %vm93_vm0, %v66_v38  ;;  %2240 = vmatprep.subr.bf16.mxu1 %v2239_v33  ;;  %v783_v50 = vld [vmem:[%s3428_s3 + $0x180] sm:$0xff] }
  0x1f   :  { %v2243_v49 = vpack.c.bf16 %v788_v46, %v784_v44  ;;  %v787_v51 = vld [vmem:[%s3428_s3 + $0x1a0] sm:$0xff]  ;;  %v785_v52 = vld [vmem:[%s3428_s3 + $0x190] sm:$0xff]  ;;  %v42_v53 = vld [vmem:[%s3425_s0 + $0xa8] sm:$0xff]  ;;  %2192 = vmatprep.mubr.msk.f32.mxu1 %vm93_vm0, %v67_v42  ;;  %2272 = vmatprep.subr.bf16.mxu0 %v2271_v39  ;;  %v2275_v55 = vpack.c.bf16 %v790_v48, %v786_v47 }
  0x20   :  { %2145 = vmatmul.mubr.msk.f32.gmra.mrb[14].mxu0 %vm93_vm0, %v36_v5  ;;  %v68_v54 = vld [vmem:[%s3425_s0 + $0x178] sm:$0xff]  ;;  %v789_v56 = vld [vmem:[%s3428_s3 + $0x1b0] sm:$0xff]  ;;  %v69_v58 = vld [vmem:[%s3425_s0 + $0x180] sm:$0xff]  ;;  %2242 = vmatpush1.bf16.msra.mxu1 %v2241_v43  ;;  %v2245_v59 = vpack.c.bf16 %v787_v51, %v783_v50 }
  0x21   :  { %2147 = vmatprep.mubr.msk.f32.mxu0 %vm93_vm0, %v37_v9  ;;  %v43_v57 = vld [vmem:[%s3425_s0 + $0xb0] sm:$0xff]  ;;  %v792_v60 = vld [vmem:[%s3428_s3 + $0x1c8] sm:$0xff]  ;;  %2274 = vmatpush1.bf16.msra.mxu0 %v2273_v45  ;;  %v2277_v61 = vpack.c.bf16 %v789_v56, %v785_v52  ;;  %v794_v63 = vld [vmem:[%s3428_s3 + $0x1d8] sm:$0xff] }
  0x22   :  { %v796_v62 = vld [vmem:[%s3428_s3 + $0x1e8] sm:$0xff]  ;;  %v798_v0 = vld [vmem:[%s3428_s3 + $0x1f8] sm:$0xff]  ;;  %2193 = vmatmul.mubr.msk.f32.gmra.mrb[14].mxu1 %vm93_vm0, %v68_v54  ;;  %2244 = vmatprep.subr.bf16.mxu1 %v2243_v49  ;;  %v791_v2 = vld [vmem:[%s3428_s3 + $0x1c0] sm:$0xff] }
  0x23   :  { %v2247_v1 = vpack.c.bf16 %v796_v62, %v792_v60  ;;  %v795_v3 = vld [vmem:[%s3428_s3 + $0x1e0] sm:$0xff]  ;;  %v793_v4 = vld [vmem:[%s3428_s3 + $0x1d0] sm:$0xff]  ;;  %2195 = vmatprep.mubr.msk.f32.mxu1 %vm93_vm0, %v69_v58  ;;  %v70_v5 = vld [vmem:[%s3425_s0 + $0x188] sm:$0xff]  ;;  %2276 = vmatprep.subr.bf16.mxu0 %v2275_v55  ;;  %v2279_v6 = vpack.c.bf16 %v798_v0, %v794_v63 }
  0x24   :  { %2148 = vmatmul.mubr.msk.f32.gmra.mrb[16].mxu0 %vm93_vm0, %v38_v21  ;;  %v797_v7 = vld [vmem:[%s3428_s3 + $0x1f0] sm:$0xff] }
  0x25   :  { %2150 = vmatprep.mubr.msk.f32.mxu0 %vm93_vm0, %v39_v25 }
  0x28   :  { %2151 = vmatmul.mubr.msk.f32.gmra.mrb[18].mxu0 %vm93_vm0, %v40_v37 }
  0x29   :  { %2153 = vmatprep.mubr.msk.f32.mxu0 %vm93_vm0, %v41_v41 }
  0x2a   :  { %10 = vsyncpa [#allocation3], 0  ;;  %v71_v8 = vld [vmem:[%s3425_s0 + $0x190] sm:$0xff]  ;;  %2246 = vmatpush1.bf16.msra.mxu1 %v2245_v59  ;;  %v2249_v9 = vpack.c.bf16 %v795_v3, %v791_v2  ;;  %v44_v10 = vld [vmem:[%s3425_s0 + $0xb8] sm:$0xff]  ;;  %2278 = vmatpush1.bf16.msra.mxu0 %v2277_v61  ;;  %v2281_v11 = vpack.c.bf16 %v797_v7, %v793_v4  ;;  %v2314_v33 = vmov 0.0  }
  0x2b   :  { %v45_v12 = vld [vmem:[%s3425_s0 + $0xc0] sm:$0xff]  ;;  %2196 = vmatmul.mubr.msk.f32.gmra.mrb[16].mxu1 %vm93_vm0, %v70_v5  ;;  %2248 = vmatprep.subr.bf16.mxu1 %v2247_v1  ;;  %v72_v13 = vld [vmem:[%s3425_s0 + $0x198] sm:$0xff]  ;;  %v46_v15 = vld [vmem:[%s3425_s0 + $0xc8] sm:$0xff] }
  0x2c   :  { %2154 = vmatmul.mubr.msk.f32.gmra.mrb[20].mxu0 %vm93_vm0, %v42_v53  ;;  %2198 = vmatprep.mubr.msk.f32.mxu1 %vm93_vm0, %v71_v8  ;;  %v73_v14 = vld [vmem:[%s3425_s0 + $0x1a0] sm:$0xff]  ;;  %v47_v16 = vld [vmem:[%s3425_s0 + $0xd0] sm:$0xff]  ;;  %v74_v17 = vld [vmem:[%s3425_s0 + $0x1a8] sm:$0xff] }
  0x2d   :  { %2156 = vmatprep.mubr.msk.f32.mxu0 %vm93_vm0, %v43_v57  ;;  %2280 = vmatprep.subr.bf16.mxu0 %v2279_v6  ;;  %v75_v18 = vld [vmem:[%s3425_s0 + $0x1b0] sm:$0xff]  ;;  %v48_v19 = vld [vmem:[%s3425_s0 + $0xd8] sm:$0xff]  ;;  %v49_v20 = vld [vmem:[%s3425_s0 + $0xe0] sm:$0xff] }
  0x2e   :  { %2250 = vmatpush1.bf16.msra.mxu1 %v2249_v9  ;;  %2282 = vmatpush1.bf16.msra.mxu0 %v2281_v11  ;;  %v76_v21 = vld [vmem:[%s3425_s0 + $0x1b8] sm:$0xff]  ;;  %v77_v22 = vld [vmem:[%s3425_s0 + $0x1c0] sm:$0xff]  ;;  %v50_v23 = vld [vmem:[%s3425_s0 + $0xe8] sm:$0xff] }
  0x2f   :  { %2199 = vmatmul.mubr.msk.f32.gmra.mrb[18].mxu1 %vm93_vm0, %v72_v13  ;;  %v51_v24 = vld [vmem:[%s3425_s0 + $0xf0] sm:$0xff]  ;;  %v78_v25 = vld [vmem:[%s3425_s0 + $0x1c8] sm:$0xff]  ;;  %v52_v27 = vld [vmem:[%s3425_s0 + $0xf8] sm:$0xff] }
  0x30   :  { %2157 = vmatmul.mubr.msk.f32.gmra.mrb[22].mxu0 %vm93_vm0, %v44_v10  ;;  %2201 = vmatprep.mubr.msk.f32.mxu1 %vm93_vm0, %v73_v14  ;;  %v79_v26 = vld [vmem:[%s3425_s0 + $0x1d0] sm:$0xff]  ;;  %v80_v28 = vld [vmem:[%s3425_s0 + $0x1d8] sm:$0xff]  ;;  %v81_v29 = vld [vmem:[%s3425_s0 + $0x1e0] sm:$0xff] }
  0x31   :  { %2159 = vmatprep.mubr.msk.f32.mxu0 %vm93_vm0, %v45_v12  ;;  %v82_v30 = vld [vmem:[%s3425_s0 + $0x1e8] sm:$0xff]  ;;  %v83_v31 = vld [vmem:[%s3425_s0 + $0x1f0] sm:$0xff]  ;;  %v84_v32 = vld [vmem:[%s3425_s0 + $0x1f8] sm:$0xff] }
  0x32   :  { %v2804_v34 = vld [vmem:[%s3427_s2] ss:$0 sm:$0xff] }
  0x33   :  { %2202 = vmatmul.mubr.msk.f32.gmra.mrb[20].mxu1 %vm93_vm0, %v74_v17 }
  0x34   :  { %2160 = vmatmul.mubr.msk.f32.gmra.mrb[24].mxu0 %vm93_vm0, %v46_v15  ;;  %2204 = vmatprep.mubr.msk.f32.mxu1 %vm93_vm0, %v75_v18 }
  0x35   :  { %2162 = vmatprep.mubr.msk.f32.mxu0 %vm93_vm0, %v47_v16 }
  0x37   :  { %2205 = vmatmul.mubr.msk.f32.gmra.mrb[22].mxu1 %vm93_vm0, %v76_v21 }
  0x38   :  { %2163 = vmatmul.mubr.msk.f32.gmra.mrb[26].mxu0 %vm93_vm0, %v48_v19  ;;  %2207 = vmatprep.mubr.msk.f32.mxu1 %vm93_vm0, %v77_v22 }
  0x39   :  { %2165 = vmatprep.mubr.msk.f32.mxu0 %vm93_vm0, %v49_v20 }
  0x3b   :  { %2208 = vmatmul.mubr.msk.f32.gmra.mrb[24].mxu1 %vm93_vm0, %v78_v25 }
  0x3c   :  { %2166 = vmatmul.mubr.msk.f32.gmra.mrb[28].mxu0 %vm93_vm0, %v50_v23  ;;  %2210 = vmatprep.mubr.msk.f32.mxu1 %vm93_vm0, %v79_v26 }
  0x3d   :  { %2168 = vmatprep.mubr.msk.f32.mxu0 %vm93_vm0, %v51_v24 }
  0x3f   :  { %2211 = vmatmul.mubr.msk.f32.gmra.mrb[26].mxu1 %vm93_vm0, %v80_v28 }
  0x40   :  { %2169 = vmatmul.mubr.msk.f32.gmra.mrb[30].mxu0 %vm93_vm0, %v52_v27  ;;  %2213 = vmatprep.mubr.msk.f32.mxu1 %vm93_vm0, %v81_v29 }
  0x41   :  { %1334 = vmatprep.mubr.f32.mxu0 %v2314_v33 }
  0x43   :  { %2214 = vmatmul.mubr.msk.f32.gmra.mrb[28].mxu1 %vm93_vm0, %v82_v30 }
  0x44   :  { %2216 = vmatprep.mubr.msk.f32.mxu1 %vm93_vm0, %v83_v31 }
  0x47   :  { %2217 = vmatmul.mubr.msk.f32.gmra.mrb[30].mxu1 %vm93_vm0, %v84_v32 }
  0x48   :  { %885 = vmatprep.mubr.f32.mxu1 %v2314_v33 }
  0xd7   :  { %v2125_v35 = vpop.f32.mrb[0].mxu0 }
  0xd8   :  { %v352_v36 = vpop.f32.mrb[1].mxu0  ;;  %v358_v38 = vadd.f32 %v2125_v35, %v2804_v34 }
  0xd9   :  { %v353_v37 = vadd.f32 %v2804_v34, %v352_v36  ;;  %v2811_v47 = vpop.f32.mrb[0].mxu1 }
  0xda   :  { %v672_v43 = vmax.f32 %v358_v38, 0.0  ;;  %v2815_v48 = vpop.f32.mrb[1].mxu1 }
  0xdb   :  { %v671_v39 = vmax.f32 %v353_v37, 0.0  ;;  %v2128_v40 = vpop.f32.mrb[2].mxu0 }
  0xdc   :  { %v362_v41 = vpop.f32.mrb[3].mxu0  ;;  %v368_v49 = vadd.f32 %v2128_v40, %v2804_v34 }
  0xdd   :  { %886 = vmatmul.mubr.f32.vlgmr.msra.gmra.mrb[32].mxu1 %v671_v39  ;;  %1335 = vmatmul.mubr.f32.vlgmr.msra.gmra.mrb[32].mxu0 %v671_v39  ;;  %v363_v42 = vadd.f32 %v2804_v34, %v362_v41  ;;  %v2819_v53 = vpop.f32.mrb[2].mxu1 }
  0xde   :  { %891 = vmatprep.mubr.f32.mxu1 %v2314_v33  ;;  %1340 = vmatprep.mubr.f32.mxu0 %v2314_v33  ;;  %v2823_v54 = vpop.f32.mrb[3].mxu1  ;;  %v674_v55 = vmax.f32 %v368_v49, 0.0 }
  0xdf   :  { %v2131_v44 = vpop.f32.mrb[4].mxu0  ;;  %v673_v46 = vmax.f32 %v363_v42, 0.0 }
  0xe0   :  { %v372_v45 = vpop.f32.mrb[5].mxu0  ;;  %v378_v61 = vadd.f32 %v2131_v44, %v2804_v34 }
  0xe1   :  { %892 = vmatmul.mubr.f32.gmra.mrb[34].mxu1 %v672_v43  ;;  %1341 = vmatmul.mubr.f32.gmra.mrb[34].mxu0 %v672_v43  ;;  %v373_v52 = vadd.f32 %v2804_v34, %v372_v45  ;;  %v2825_v59 = vpop.f32.mrb[4].mxu1 }
  0xe2   :  { %897 = vmatprep.mubr.f32.mxu1 %v2314_v33  ;;  %1346 = vmatprep.mubr.f32.mxu0 %v2314_v33  ;;  %v2829_v60 = vpop.f32.mrb[5].mxu1  ;;  %v676_v3 = vmax.f32 %v378_v61, 0.0 }
  0xe3   :  { %v2134_v50 = vpop.f32.mrb[6].mxu0  ;;  %v675_v58 = vmax.f32 %v373_v52, 0.0 }
  0xe4   :  { %v382_v51 = vpop.f32.mrb[7].mxu0  ;;  %v388_v7 = vadd.f32 %v2134_v50, %v2804_v34 }
  0xe5   :  { %898 = vmatmul.mubr.f32.gmra.mrb[36].mxu1 %v673_v46  ;;  %1347 = vmatmul.mubr.f32.gmra.mrb[36].mxu0 %v673_v46  ;;  %v383_v0 = vadd.f32 %v2804_v34, %v382_v51  ;;  %v2833_v1 = vpop.f32.mrb[6].mxu1 }
  0xe6   :  { %903 = vmatprep.mubr.f32.mxu1 %v2314_v33  ;;  %1352 = vmatprep.mubr.f32.mxu0 %v2314_v33  ;;  %v2837_v2 = vpop.f32.mrb[7].mxu1  ;;  %v678_v13 = vmax.f32 %v388_v7, 0.0 }
  0xe7   :  { %v2137_v56 = vpop.f32.mrb[8].mxu0  ;;  %v677_v6 = vmax.f32 %v383_v0, 0.0 }
  0xe8   :  { %v392_v57 = vpop.f32.mrb[9].mxu0  ;;  %v398_v17 = vadd.f32 %v2137_v56, %v2804_v34 }
  0xe9   :  { %904 = vmatmul.mubr.f32.gmra.mrb[38].mxu1 %v674_v55  ;;  %1353 = vmatmul.mubr.f32.gmra.mrb[38].mxu0 %v674_v55  ;;  %v393_v10 = vadd.f32 %v2804_v34, %v392_v57  ;;  %v2847_v11 = vpop.f32.mrb[8].mxu1 }
  0xea   :  { %909 = vmatprep.mubr.f32.mxu1 %v2314_v33  ;;  %1358 = vmatprep.mubr.f32.mxu0 %v2314_v33  ;;  %v2851_v12 = vpop.f32.mrb[9].mxu1  ;;  %v680_v23 = vmax.f32 %v398_v17, 0.0 }
  0xeb   :  { %v2140_v62 = vpop.f32.mrb[10].mxu0  ;;  %v679_v16 = vmax.f32 %v393_v10, 0.0 }
  0xec   :  { %v402_v63 = vpop.f32.mrb[11].mxu0  ;;  %v408_v27 = vadd.f32 %v2140_v62, %v2804_v34 }
  0xed   :  { %910 = vmatmul.mubr.f32.gmra.mrb[40].mxu1 %v675_v58  ;;  %1359 = vmatmul.mubr.f32.gmra.mrb[40].mxu0 %v675_v58  ;;  %v403_v20 = vadd.f32 %v2804_v34, %v402_v63  ;;  %v2865_v21 = vpop.f32.mrb[10].mxu1 }
  0xee   :  { %915 = vmatprep.mubr.f32.mxu1 %v2314_v33  ;;  %1364 = vmatprep.mubr.f32.mxu0 %v2314_v33  ;;  %v2869_v22 = vpop.f32.mrb[11].mxu1  ;;  %v682_v35 = vmax.f32 %v408_v27, 0.0 }
  0xef   :  { %v2839_v4 = vpop.f32.mrb[12].mxu0  ;;  %v681_v26 = vmax.f32 %v403_v20, 0.0 }
  0xf0   :  { %v412_v5 = vpop.f32.mrb[13].mxu0  ;;  %v418_v41 = vadd.f32 %v2839_v4, %v2804_v34 }
  0xf1   :  { %916 = vmatmul.mubr.f32.gmra.mrb[42].mxu1 %v676_v3  ;;  %1365 = vmatmul.mubr.f32.gmra.mrb[42].mxu0 %v676_v3  ;;  %v413_v30 = vadd.f32 %v2804_v34, %v412_v5  ;;  %v2883_v31 = vpop.f32.mrb[12].mxu1 }
  0xf2   :  { %921 = vmatprep.mubr.f32.mxu1 %v2314_v33  ;;  %1370 = vmatprep.mubr.f32.mxu0 %v2314_v33  ;;  %v2887_v32 = vpop.f32.mrb[13].mxu1  ;;  %v684_v49 = vmax.f32 %v418_v41, 0.0 }
  0xf3   :  { %v2844_v8 = vpop.f32.mrb[14].mxu0  ;;  %v683_v38 = vmax.f32 %v413_v30, 0.0 }
  0xf4   :  { %v422_v9 = vpop.f32.mrb[15].mxu0  ;;  %v428_v57 = vadd.f32 %v2844_v8, %v2804_v34 }
  0xf5   :  { %922 = vmatmul.mubr.f32.gmra.mrb[44].mxu1 %v677_v6  ;;  %1371 = vmatmul.mubr.f32.gmra.mrb[44].mxu0 %v677_v6  ;;  %v2893_v39 = vpop.f32.mrb[14].mxu1  ;;  %v423_v44 = vadd.f32 %v2804_v34, %v422_v9 }
  0xf6   :  { %927 = vmatprep.mubr.f32.mxu1 %v2314_v33  ;;  %1376 = vmatprep.mubr.f32.mxu0 %v2314_v33  ;;  %v2897_v40 = vpop.f32.mrb[15].mxu1  ;;  %v686_v3 = vmax.f32 %v428_v57, 0.0 }
  0xf7   :  { %v2853_v14 = vpop.f32.mrb[16].mxu0  ;;  %v685_v52 = vmax.f32 %v423_v44, 0.0 }
  0xf8   :  { %v2855_v15 = vpop.f32.mrb[17].mxu0  ;;  %v438_v7 = vadd.f32 %v2853_v14, %v2804_v34 }
  0xf9   :  { %928 = vmatmul.mubr.f32.gmra.mrb[46].mxu1 %v678_v13  ;;  %1377 = vmatmul.mubr.f32.gmra.mrb[46].mxu0 %v678_v13  ;;  %v433_v62 = vadd.f32 %v2804_v34, %v2855_v15 }
  0xfa   :  { %933 = vmatprep.mubr.f32.mxu1 %v2314_v33  ;;  %1382 = vmatprep.mubr.f32.mxu0 %v2314_v33  ;;  %v688_v13 = vmax.f32 %v438_v7, 0.0 }
  0xfb   :  { %v2860_v18 = vpop.f32.mrb[18].mxu0  ;;  %v687_v4 = vmax.f32 %v433_v62, 0.0 }
  0xfc   :  { %v2862_v19 = vpop.f32.mrb[19].mxu0  ;;  %v448_v17 = vadd.f32 %v2860_v18, %v2804_v34 }
  0xfd   :  { %934 = vmatmul.mubr.f32.gmra.mrb[48].mxu1 %v679_v16  ;;  %1383 = vmatmul.mubr.f32.gmra.mrb[48].mxu0 %v679_v16  ;;  %v443_v8 = vadd.f32 %v2804_v34, %v2862_v19 }
  0xfe   :  { %939 = vmatprep.mubr.f32.mxu1 %v2314_v33  ;;  %1388 = vmatprep.mubr.f32.mxu0 %v2314_v33  ;;  %v2906_v45 = vpop.f32.mrb[16].mxu1 }
  0xff   :  { %v2871_v24 = vpop.f32.mrb[20].mxu0  ;;  %v2910_v46 = vpop.f32.mrb[17].mxu1  ;;  %v689_v15 = vmax.f32 %v443_v8, 0.0 }
 0x100   :  { %v2873_v25 = vpop.f32.mrb[21].mxu0  ;;  %v458_v18 = vadd.f32 %v2871_v24, %v2804_v34 }
 0x101   :  { %940 = vmatmul.mubr.f32.gmra.mrb[50].mxu1 %v680_v23  ;;  %1389 = vmatmul.mubr.f32.gmra.mrb[50].mxu0 %v680_v23  ;;  %v453_v19 = vadd.f32 %v2804_v34, %v2873_v25 }
 0x102   :  { %945 = vmatprep.mubr.f32.mxu1 %v2314_v33  ;;  %1394 = vmatprep.mubr.f32.mxu0 %v2314_v33  ;;  %v2916_v55 = vpop.f32.mrb[18].mxu1 }
 0x103   :  { %v2878_v28 = vpop.f32.mrb[22].mxu0  ;;  %v2920_v56 = vpop.f32.mrb[19].mxu1  ;;  %v691_v27 = vmax.f32 %v453_v19, 0.0 }
 0x104   :  { %v2880_v29 = vpop.f32.mrb[23].mxu0  ;;  %v468_v24 = vadd.f32 %v2878_v28, %v2804_v34 }
 0x105   :  { %946 = vmatmul.mubr.f32.gmra.mrb[52].mxu1 %v681_v26  ;;  %1395 = vmatmul.mubr.f32.gmra.mrb[52].mxu0 %v681_v26  ;;  %v690_v26 = vmax.f32 %v448_v17, 0.0 }
 0x106   :  { %951 = vmatprep.mubr.f32.mxu1 %v2314_v33  ;;  %1400 = vmatprep.mubr.f32.mxu0 %v2314_v33  ;;  %v2930_v63 = vpop.f32.mrb[20].mxu1  ;;  %v694_v44 = vmax.f32 %v468_v24, 0.0 }
 0x107   :  { %v2889_v36 = vpop.f32.mrb[24].mxu0  ;;  %v2934_v0 = vpop.f32.mrb[21].mxu1 }
 0x108   :  { %v2891_v37 = vpop.f32.mrb[25].mxu0  ;;  %v478_v28 = vadd.f32 %v2889_v36, %v2804_v34 }
 0x109   :  { %952 = vmatmul.mubr.f32.gmra.mrb[54].mxu1 %v682_v35  ;;  %1401 = vmatmul.mubr.f32.gmra.mrb[54].mxu0 %v682_v35  ;;  %v463_v35 = vadd.f32 %v2804_v34, %v2880_v29  ;;  %v473_v29 = vadd.f32 %v2804_v34, %v2891_v37 }
 0x10a   :  { %957 = vmatprep.mubr.f32.mxu1 %v2314_v33  ;;  %1406 = vmatprep.mubr.f32.mxu0 %v2314_v33  ;;  %v2936_v5 = vpop.f32.mrb[22].mxu1 }
 0x10b   :  { %v2901_v42 = vpop.f32.mrb[26].mxu0  ;;  %v2940_v6 = vpop.f32.mrb[23].mxu1  ;;  %v693_v41 = vmax.f32 %v463_v35, 0.0 }
 0x10c   :  { %v2903_v43 = vpop.f32.mrb[27].mxu0  ;;  %v488_v36 = vadd.f32 %v2901_v42, %v2804_v34 }
 0x10d   :  { %958 = vmatmul.mubr.f32.gmra.mrb[56].mxu1 %v683_v38  ;;  %1407 = vmatmul.mubr.f32.gmra.mrb[56].mxu0 %v683_v38  ;;  %v692_v38 = vmax.f32 %v458_v18, 0.0  ;;  %v483_v37 = vadd.f32 %v2804_v34, %v2903_v43 }
 0x10e   :  { %963 = vmatprep.mubr.f32.mxu1 %v2314_v33  ;;  %1412 = vmatprep.mubr.f32.mxu0 %v2314_v33  ;;  %v2946_v9 = vpop.f32.mrb[24].mxu1  ;;  %v698_v62 = vmax.f32 %v488_v36, 0.0  ;;  %v801_v36 = vlaneseq }
 0x10f   :  { %v2912_v50 = vpop.f32.mrb[28].mxu0  ;;  %v2950_v10 = vpop.f32.mrb[25].mxu1  ;;  %v697_v57 = vmax.f32 %v483_v37, 0.0 }
 0x110   :  { %v2914_v51 = vpop.f32.mrb[29].mxu0  ;;  %v498_v42 = vadd.f32 %v2912_v50, %v2804_v34 }
 0x111   :  { %964 = vmatmul.mubr.f32.gmra.mrb[58].mxu1 %v684_v49  ;;  %1413 = vmatmul.mubr.f32.gmra.mrb[58].mxu0 %v684_v49  ;;  %v695_v49 = vmax.f32 %v473_v29, 0.0  ;;  %v493_v43 = vadd.f32 %v2804_v34, %v2914_v51 }
 0x112   :  { %969 = vmatprep.mubr.f32.mxu1 %v2314_v33  ;;  %1418 = vmatprep.mubr.f32.mxu0 %v2314_v33  ;;  %v2952_v16 = vpop.f32.mrb[26].mxu1 }
 0x113   :  { %v2924_v58 = vpop.f32.mrb[30].mxu0  ;;  %v2956_v14 = vpop.f32.mrb[27].mxu1 }
 0x114   :  { %v2926_v61 = vpop.f32.mrb[31].mxu0  ;;  %v508_v50 = vadd.f32 %v2924_v58, %v2804_v34  ;;  %v518_v58 = vadd.f32 %v2811_v47, %v2804_v34  ;;  %v528_v47 = vadd.f32 %v2819_v53, %v2804_v34  ;;  %v538_v53 = vadd.f32 %v2825_v59, %v2804_v34 }
 0x115   :  { %970 = vmatmul.mubr.f32.gmra.mrb[60].mxu1 %v685_v52  ;;  %1419 = vmatmul.mubr.f32.gmra.mrb[60].mxu0 %v685_v52  ;;  %v696_v52 = vmax.f32 %v478_v28, 0.0  ;;  %v503_v51 = vadd.f32 %v2804_v34, %v2926_v61  ;;  %v513_v61 = vadd.f32 %v2804_v34, %v2815_v48  ;;  %v523_v48 = vadd.f32 %v2804_v34, %v2823_v54 }
 0x116   :  { %975 = vmatprep.mubr.f32.mxu1 %v2314_v33  ;;  %1424 = vmatprep.mubr.f32.mxu0 %v2314_v33  ;;  %v2962_v20 = vpop.f32.mrb[28].mxu1  ;;  %v702_v8 = vmax.f32 %v508_v50, 0.0  ;;  %v533_v54 = vadd.f32 %v2804_v34, %v2829_v60  ;;  %v706_v19 = vmax.f32 %v528_v47, 0.0  ;;  %v543_v60 = vadd.f32 %v2804_v34, %v2837_v2 }
 0x117   :  { %v2966_v23 = vpop.f32.mrb[29].mxu1  ;;  %v701_v7 = vmax.f32 %v503_v51, 0.0  ;;  %v705_v17 = vmax.f32 %v523_v48, 0.0  ;;  %v548_v59 = vadd.f32 %v2833_v1, %v2804_v34  ;;  %v553_v2 = vadd.f32 %v2804_v34, %v2851_v12 }
 0x118   :  { %v709_v18 = vmax.f32 %v543_v60, 0.0  ;;  %v558_v1 = vadd.f32 %v2847_v11, %v2804_v34  ;;  %v563_v12 = vadd.f32 %v2804_v34, %v2869_v22  ;;  %v568_v11 = vadd.f32 %v2865_v21, %v2804_v34 }
 0x119   :  { %976 = vmatmul.mubr.f32.gmra.mrb[62].mxu1 %v686_v3  ;;  %1425 = vmatmul.mubr.f32.gmra.mrb[62].mxu0 %v686_v3  ;;  %v699_v3 = vmax.f32 %v493_v43, 0.0  ;;  %v710_v35 = vmax.f32 %v548_v59, 0.0  ;;  %v573_v22 = vadd.f32 %v2804_v34, %v2887_v32  ;;  %v578_v21 = vadd.f32 %v2883_v31, %v2804_v34 }
 0x11a   :  { %981 = vmatprep.mubr.f32.mxu1 %v2314_v33  ;;  %1430 = vmatprep.mubr.f32.mxu0 %v2314_v33  ;;  %v2972_v25 = vpop.f32.mrb[30].mxu1  ;;  %v713_v24 = vmax.f32 %v563_v12, 0.0  ;;  %v714_v29 = vmax.f32 %v568_v11, 0.0  ;;  %v588_v28 = vadd.f32 %v2893_v39, %v2804_v34  ;;  %v598_v39 = vadd.f32 %v2906_v45, %v2804_v34 }
 0x11b   :  { %v2974_v30 = vpop.f32.mrb[31].mxu1  ;;  %v716_v32 = vmax.f32 %v578_v21, 0.0  ;;  %v608_v45 = vadd.f32 %v2916_v55, %v2804_v34  ;;  %v799_v55 = vld [vmem:[%s3429_s4] sm:$0xf]  ;;  %v618_v50 = vadd.f32 %v2930_v63, %v2804_v34 }
 0x11c   :  { %v718_v37 = vmax.f32 %v588_v28, 0.0 }
 0x11d   :  { %982 = vmatmul.mubr.f32.gmra.mrb[64].mxu1 %v687_v4  ;;  %1431 = vmatmul.mubr.f32.gmra.mrb[64].mxu0 %v687_v4  ;;  %v700_v4 = vmax.f32 %v498_v42, 0.0  ;;  %v724_v48 = vmax.f32 %v618_v50, 0.0 }
 0x11e   :  { %987 = vmatprep.mubr.f32.mxu1 %v2314_v33  ;;  %1436 = vmatprep.mubr.f32.mxu0 %v2314_v33 }
 0x121   :  { %988 = vmatmul.mubr.f32.gmra.mrb[66].mxu1 %v688_v13  ;;  %1437 = vmatmul.mubr.f32.gmra.mrb[66].mxu0 %v688_v13  ;;  %v703_v13 = vmax.f32 %v513_v61, 0.0 }
 0x122   :  { %993 = vmatprep.mubr.f32.mxu1 %v2314_v33  ;;  %1442 = vmatprep.mubr.f32.mxu0 %v2314_v33 }
 0x125   :  { %994 = vmatmul.mubr.f32.gmra.mrb[68].mxu1 %v689_v15  ;;  %1443 = vmatmul.mubr.f32.gmra.mrb[68].mxu0 %v689_v15  ;;  %v704_v15 = vmax.f32 %v518_v58, 0.0 }
 0x126   :  { %999 = vmatprep.mubr.f32.mxu1 %v2314_v33  ;;  %1448 = vmatprep.mubr.f32.mxu0 %v2314_v33 }
 0x129   :  { %1000 = vmatmul.mubr.f32.gmra.mrb[70].mxu1 %v690_v26  ;;  %1449 = vmatmul.mubr.f32.gmra.mrb[70].mxu0 %v690_v26  ;;  %v707_v26 = vmax.f32 %v533_v54, 0.0 }
 0x12a   :  { %1005 = vmatprep.mubr.f32.mxu1 %v2314_v33  ;;  %1454 = vmatprep.mubr.f32.mxu0 %v2314_v33 }
 0x12d   :  { %1006 = vmatmul.mubr.f32.gmra.mrb[72].mxu1 %v691_v27  ;;  %1455 = vmatmul.mubr.f32.gmra.mrb[72].mxu0 %v691_v27  ;;  %v708_v27 = vmax.f32 %v538_v53, 0.0 }
 0x12e   :  { %1011 = vmatprep.mubr.f32.mxu1 %v2314_v33  ;;  %1460 = vmatprep.mubr.f32.mxu0 %v2314_v33 }
 0x131   :  { %1012 = vmatmul.mubr.f32.gmra.mrb[74].mxu1 %v692_v38  ;;  %1461 = vmatmul.mubr.f32.gmra.mrb[74].mxu0 %v692_v38  ;;  %v711_v38 = vmax.f32 %v553_v2, 0.0 }
 0x132   :  { %1017 = vmatprep.mubr.f32.mxu1 %v2314_v33  ;;  %1466 = vmatprep.mubr.f32.mxu0 %v2314_v33 }
 0x135   :  { %1018 = vmatmul.mubr.f32.gmra.mrb[76].mxu1 %v693_v41  ;;  %1467 = vmatmul.mubr.f32.gmra.mrb[76].mxu0 %v693_v41  ;;  %v712_v41 = vmax.f32 %v558_v1, 0.0 }
 0x136   :  { %1023 = vmatprep.mubr.f32.mxu1 %v2314_v33  ;;  %1472 = vmatprep.mubr.f32.mxu0 %v2314_v33 }
 0x139   :  { %1024 = vmatmul.mubr.f32.gmra.mrb[78].mxu1 %v694_v44  ;;  %1473 = vmatmul.mubr.f32.gmra.mrb[78].mxu0 %v694_v44  ;;  %v715_v44 = vmax.f32 %v573_v22, 0.0 }
 0x13a   :  { %1029 = vmatprep.mubr.f32.mxu1 %v2314_v33  ;;  %1478 = vmatprep.mubr.f32.mxu0 %v2314_v33 }
 0x13d   :  { %1030 = vmatmul.mubr.f32.gmra.mrb[80].mxu1 %v695_v49  ;;  %1479 = vmatmul.mubr.f32.gmra.mrb[80].mxu0 %v695_v49  ;;  %v583_v49 = vadd.f32 %v2804_v34, %v2897_v40  ;;  %v593_v40 = vadd.f32 %v2804_v34, %v2910_v46  ;;  %v603_v46 = vadd.f32 %v2804_v34, %v2920_v56 }
 0x13e   :  { %1035 = vmatprep.mubr.f32.mxu1 %v2314_v33  ;;  %1484 = vmatprep.mubr.f32.mxu0 %v2314_v33  ;;  %v613_v56 = vadd.f32 %v2804_v34, %v2934_v0 }
 0x13f   :  { %v717_v31 = vmax.f32 %v583_v49, 0.0  ;;  %v721_v43 = vmax.f32 %v603_v46, 0.0 }
 0x140   :  { %v723_v61 = vmax.f32 %v613_v56, 0.0 }
 0x141   :  { %1036 = vmatmul.mubr.f32.gmra.mrb[82].mxu1 %v696_v52  ;;  %1485 = vmatmul.mubr.f32.gmra.mrb[82].mxu0 %v696_v52  ;;  %v719_v52 = vmax.f32 %v593_v40, 0.0 }
 0x142   :  { %1041 = vmatprep.mubr.f32.mxu1 %v2314_v33  ;;  %1490 = vmatprep.mubr.f32.mxu0 %v2314_v33 }
 0x145   :  { %1042 = vmatmul.mubr.f32.gmra.mrb[84].mxu1 %v697_v57  ;;  %1491 = vmatmul.mubr.f32.gmra.mrb[84].mxu0 %v697_v57  ;;  %v720_v57 = vmax.f32 %v598_v39, 0.0 }
 0x146   :  { %1047 = vmatprep.mubr.f32.mxu1 %v2314_v33  ;;  %1496 = vmatprep.mubr.f32.mxu0 %v2314_v33 }
 0x149   :  { %1048 = vmatmul.mubr.f32.gmra.mrb[86].mxu1 %v698_v62  ;;  %1497 = vmatmul.mubr.f32.gmra.mrb[86].mxu0 %v698_v62  ;;  %v802_v62 = vshrl.u32 %v801_v36, 7 }
 0x14a   :  { %1053 = vmatprep.mubr.f32.mxu1 %v2314_v33  ;;  %1502 = vmatprep.mubr.f32.mxu0 %v2314_v33 }
 0x14b   :  { %v803_v42 = vsub.s32 0, %v802_v62  ;;  %v811_v51 = vsub.s32 2, %v802_v62 }
 0x14d   :  { %1054 = vmatmul.mubr.f32.gmra.mrb[88].mxu1 %v699_v3  ;;  %1503 = vmatmul.mubr.f32.gmra.mrb[88].mxu0 %v699_v3  ;;  %v722_v3 = vmax.f32 %v608_v45, 0.0  ;;  %v3107_v0 = vrot.slane %v799_v55, %v803_v42 }
 0x14e   :  { %1059 = vmatprep.mubr.f32.mxu1 %v2314_v33  ;;  %1508 = vmatprep.mubr.f32.mxu0 %v2314_v33 }
 0x151   :  { %1060 = vmatmul.mubr.f32.gmra.mrb[90].mxu1 %v700_v4  ;;  %1509 = vmatmul.mubr.f32.gmra.mrb[90].mxu0 %v700_v4  ;;  %v807_v4 = vsub.s32 1, %v802_v62 }
 0x152   :  { %1065 = vmatprep.mubr.f32.mxu1 %v2314_v33  ;;  %1514 = vmatprep.mubr.f32.mxu0 %v2314_v33 }
 0x155   :  { %1066 = vmatmul.mubr.f32.gmra.mrb[92].mxu1 %v701_v7  ;;  %1515 = vmatmul.mubr.f32.gmra.mrb[92].mxu0 %v701_v7  ;;  %v815_v7 = vsub.s32 3, %v802_v62 }
 0x156   :  { %1071 = vmatprep.mubr.f32.mxu1 %v2314_v33  ;;  %1520 = vmatprep.mubr.f32.mxu0 %v2314_v33 }
 0x157   :  { %v3115_v58 = vrot.slane %v799_v55, %v815_v7 }
 0x159   :  { %1072 = vmatmul.mubr.f32.gmra.mrb[94].mxu1 %v702_v8  ;;  %1521 = vmatmul.mubr.f32.gmra.mrb[94].mxu0 %v702_v8  ;;  %v3109_v8 = vrot.slane %v799_v55, %v811_v51 }
 0x15a   :  { %1077 = vmatprep.mubr.f32.mxu1 %v2314_v33  ;;  %1526 = vmatprep.mubr.f32.mxu0 %v2314_v33 }
 0x15d   :  { %1078 = vmatmul.mubr.f32.gmra.mrb[96].mxu1 %v703_v13  ;;  %1527 = vmatmul.mubr.f32.gmra.mrb[96].mxu0 %v703_v13  ;;  %v3113_v13 = vrot.slane %v799_v55, %v807_v4 }
 0x15e   :  { %1083 = vmatprep.mubr.f32.mxu1 %v2314_v33  ;;  %1532 = vmatprep.mubr.f32.mxu0 %v2314_v33 }
 0x161   :  { %1084 = vmatmul.mubr.f32.gmra.mrb[98].mxu1 %v704_v15  ;;  %1533 = vmatmul.mubr.f32.gmra.mrb[98].mxu0 %v704_v15  ;;  %v623_v15 = vadd.f32 %v2804_v34, %v2940_v6  ;;  %v628_v6 = vadd.f32 %v2936_v5, %v2804_v34 }
 0x162   :  { %1089 = vmatprep.mubr.f32.mxu1 %v2314_v33  ;;  %1538 = vmatprep.mubr.f32.mxu0 %v2314_v33 }
 0x163   :  { %v726_v5 = vmax.f32 %v628_v6, 0.0 }
 0x165   :  { %1090 = vmatmul.mubr.f32.gmra.mrb[100].mxu1 %v705_v17  ;;  %1539 = vmatmul.mubr.f32.gmra.mrb[100].mxu0 %v705_v17 }
 0x166   :  { %1095 = vmatprep.mubr.f32.mxu1 %v2314_v33  ;;  %1544 = vmatprep.mubr.f32.mxu0 %v2314_v33 }
 0x169   :  { %1096 = vmatmul.mubr.f32.gmra.mrb[102].mxu1 %v706_v19  ;;  %1545 = vmatmul.mubr.f32.gmra.mrb[102].mxu0 %v706_v19 }
 0x16a   :  { %1101 = vmatprep.mubr.f32.mxu1 %v2314_v33  ;;  %1550 = vmatprep.mubr.f32.mxu0 %v2314_v33 }
 0x16d   :  { %1102 = vmatmul.mubr.f32.gmra.mrb[104].mxu1 %v707_v26  ;;  %1551 = vmatmul.mubr.f32.gmra.mrb[104].mxu0 %v707_v26 }
 0x16e   :  { %1107 = vmatprep.mubr.f32.mxu1 %v2314_v33  ;;  %1556 = vmatprep.mubr.f32.mxu0 %v2314_v33 }
 0x171   :  { %1108 = vmatmul.mubr.f32.gmra.mrb[106].mxu1 %v708_v27  ;;  %1557 = vmatmul.mubr.f32.gmra.mrb[106].mxu0 %v708_v27  ;;  %v725_v27 = vmax.f32 %v623_v15, 0.0 }
 0x172   :  { %1113 = vmatprep.mubr.f32.mxu1 %v2314_v33  ;;  %1562 = vmatprep.mubr.f32.mxu0 %v2314_v33 }
 0x175   :  { %1114 = vmatmul.mubr.f32.gmra.mrb[108].mxu1 %v709_v18  ;;  %1563 = vmatmul.mubr.f32.gmra.mrb[108].mxu0 %v709_v18 }
 0x176   :  { %1119 = vmatprep.mubr.f32.mxu1 %v2314_v33  ;;  %1568 = vmatprep.mubr.f32.mxu0 %v2314_v33 }
 0x179   :  { %1120 = vmatmul.mubr.f32.gmra.mrb[110].mxu1 %v710_v35  ;;  %1569 = vmatmul.mubr.f32.gmra.mrb[110].mxu0 %v710_v35 }
 0x17a   :  { %1125 = vmatprep.mubr.f32.mxu1 %v2314_v33  ;;  %1574 = vmatprep.mubr.f32.mxu0 %v2314_v33 }
 0x17d   :  { %1126 = vmatmul.mubr.f32.gmra.mrb[112].mxu1 %v711_v38  ;;  %1575 = vmatmul.mubr.f32.gmra.mrb[112].mxu0 %v711_v38 }
 0x17e   :  { %1131 = vmatprep.mubr.f32.mxu1 %v2314_v33  ;;  %1580 = vmatprep.mubr.f32.mxu0 %v2314_v33 }
 0x181   :  { %1132 = vmatmul.mubr.f32.gmra.mrb[114].mxu1 %v712_v41  ;;  %1581 = vmatmul.mubr.f32.gmra.mrb[114].mxu0 %v712_v41 }
 0x182   :  { %1137 = vmatprep.mubr.f32.mxu1 %v2314_v33  ;;  %1586 = vmatprep.mubr.f32.mxu0 %v2314_v33 }
 0x185   :  { %1138 = vmatmul.mubr.f32.gmra.mrb[116].mxu1 %v713_v24  ;;  %1587 = vmatmul.mubr.f32.gmra.mrb[116].mxu0 %v713_v24  ;;  %v633_v24 = vadd.f32 %v2804_v34, %v2950_v10  ;;  %v638_v10 = vadd.f32 %v2946_v9, %v2804_v34 }
 0x186   :  { %1143 = vmatprep.mubr.f32.mxu1 %v2314_v33  ;;  %1592 = vmatprep.mubr.f32.mxu0 %v2314_v33 }
 0x187   :  { %v728_v9 = vmax.f32 %v638_v10, 0.0 }
 0x189   :  { %1144 = vmatmul.mubr.f32.gmra.mrb[118].mxu1 %v714_v29  ;;  %1593 = vmatmul.mubr.f32.gmra.mrb[118].mxu0 %v714_v29 }
 0x18a   :  { %1149 = vmatprep.mubr.f32.mxu1 %v2314_v33  ;;  %1598 = vmatprep.mubr.f32.mxu0 %v2314_v33 }
 0x18d   :  { %1150 = vmatmul.mubr.f32.gmra.mrb[120].mxu1 %v715_v44  ;;  %1599 = vmatmul.mubr.f32.gmra.mrb[120].mxu0 %v715_v44 }
 0x18e   :  { %1155 = vmatprep.mubr.f32.mxu1 %v2314_v33  ;;  %1604 = vmatprep.mubr.f32.mxu0 %v2314_v33 }
 0x191   :  { %1156 = vmatmul.mubr.f32.gmra.mrb[122].mxu1 %v716_v32  ;;  %1605 = vmatmul.mubr.f32.gmra.mrb[122].mxu0 %v716_v32 }
 0x192   :  { %1161 = vmatprep.mubr.f32.mxu1 %v2314_v33  ;;  %1610 = vmatprep.mubr.f32.mxu0 %v2314_v33 }
 0x195   :  { %1162 = vmatmul.mubr.f32.gmra.mrb[124].mxu1 %v717_v31  ;;  %1611 = vmatmul.mubr.f32.gmra.mrb[124].mxu0 %v717_v31  ;;  %v727_v31 = vmax.f32 %v633_v24, 0.0 }
 0x196   :  { %1167 = vmatprep.mubr.f32.mxu1 %v2314_v33  ;;  %1616 = vmatprep.mubr.f32.mxu0 %v2314_v33 }
 0x199   :  { %1168 = vmatmul.mubr.f32.gmra.mrb[126].mxu1 %v718_v37  ;;  %1617 = vmatmul.mubr.f32.gmra.mrb[126].mxu0 %v718_v37 }
 0x19a   :  { %1173 = vmatprep.mubr.f32.mxu1 %v2314_v33  ;;  %1622 = vmatprep.mubr.f32.mxu0 %v2314_v33 }
 0x19d   :  { %1174 = vmatmul.mubr.f32.gmra.mrb[128].mxu1 %v719_v52  ;;  %1623 = vmatmul.mubr.f32.gmra.mrb[128].mxu0 %v719_v52 }
 0x19e   :  { %1179 = vmatprep.mubr.f32.mxu1 %v2314_v33  ;;  %1628 = vmatprep.mubr.f32.mxu0 %v2314_v33 }
 0x1a1   :  { %1180 = vmatmul.mubr.f32.gmra.mrb[130].mxu1 %v720_v57  ;;  %1629 = vmatmul.mubr.f32.gmra.mrb[130].mxu0 %v720_v57 }
 0x1a2   :  { %1185 = vmatprep.mubr.f32.mxu1 %v2314_v33  ;;  %1634 = vmatprep.mubr.f32.mxu0 %v2314_v33 }
 0x1a5   :  { %1186 = vmatmul.mubr.f32.gmra.mrb[132].mxu1 %v721_v43  ;;  %1635 = vmatmul.mubr.f32.gmra.mrb[132].mxu0 %v721_v43  ;;  %v643_v43 = vadd.f32 %v2804_v34, %v2956_v14  ;;  %v648_v14 = vadd.f32 %v2952_v16, %v2804_v34 }
 0x1a6   :  { %1191 = vmatprep.mubr.f32.mxu1 %v2314_v33  ;;  %1640 = vmatprep.mubr.f32.mxu0 %v2314_v33 }
 0x1a7   :  { %v729_v50 = vmax.f32 %v643_v43, 0.0  ;;  %v730_v16 = vmax.f32 %v648_v14, 0.0 }
 0x1a9   :  { %1192 = vmatmul.mubr.f32.gmra.mrb[134].mxu1 %v722_v3  ;;  %1641 = vmatmul.mubr.f32.gmra.mrb[134].mxu0 %v722_v3 }
 0x1aa   :  { %1197 = vmatprep.mubr.f32.mxu1 %v2314_v33  ;;  %1646 = vmatprep.mubr.f32.mxu0 %v2314_v33 }
 0x1ad   :  { %1198 = vmatmul.mubr.f32.gmra.mrb[136].mxu1 %v723_v61  ;;  %1647 = vmatmul.mubr.f32.gmra.mrb[136].mxu0 %v723_v61 }
 0x1ae   :  { %1203 = vmatprep.mubr.f32.mxu1 %v2314_v33  ;;  %1652 = vmatprep.mubr.f32.mxu0 %v2314_v33 }
 0x1b0   :  { %v887_v63 = vpop.f32.mrb[32].mxu1  ;;  %v1336_v17 = vpop.f32.mrb[32].mxu0 }
 0x1b1   :  { %v888_v47 = vadd.f32 %v887_v63, %v3107_v0  ;;  %v1337_v54 = vadd.f32 %v1336_v17, %v3109_v8  ;;  %v889_v19 = vpop.f32.mrb[33].mxu1  ;;  %1204 = vmatmul.mubr.f32.gmra.mrb[138].mxu1 %v724_v48  ;;  %v1338_v26 = vpop.f32.mrb[33].mxu0  ;;  %1653 = vmatmul.mubr.f32.gmra.mrb[138].mxu0 %v724_v48 }
 0x1b2   :  { %v890_v53 = vadd.f32 %v889_v19, %v3113_v13  ;;  %v1339_v60 = vadd.f32 %v1338_v26, %v3115_v58  ;;  %1209 = vmatprep.mubr.f32.mxu1 %v2314_v33  ;;  %1658 = vmatprep.mubr.f32.mxu0 %v2314_v33  ;;  %v653_v26 = vadd.f32 %v2804_v34, %v2966_v23  ;;  %v2289_v34 = vld [vmem:[%s3427_s2] ss:$0 sm:$0xff]  ;;  %s2315_s2 = smov [#allocation2]  }
 0x1b3   :  { %1719 = vst [vmem:[#allocation2] sm:$0xff] %v888_v47  ;;  %1721 = vst [vmem:[#allocation2 + $0x10] sm:$0xff] %v1337_v54  ;;  %v658_v23 = vadd.f32 %v2289_v34, %v2962_v20  ;;  %s1980_s18 = sshll.u32 %s2315_s2, 4  ;;  %s1981_s18 = int_to_ptr.vmem [resolvable:$true] %s1980_s18 }
 0x1b4   :  { %1720 = vst [vmem:[#allocation2 + $0x8] sm:$0xff] %v890_v53  ;;  %1722 = vst [vmem:[#allocation2 + $0x18] sm:$0xff] %v1339_v60  ;;  %v893_v18 = vpop.f32.mrb[34].mxu1  ;;  %v1342_v59 = vpop.f32.mrb[34].mxu0  ;;  %s2290_s19 = scalar_lea.vmem %s1981_s18, 32768  ;;  %p2295_p1 = scmp.lt.s32.totalorder %s1981_s18, %s1981_s18 }
 0x1b5   :  { %v894_v2 = vadd.f32 %v893_v18, %v3107_v0  ;;  %v1343_v35 = vadd.f32 %v1342_v59, %v3109_v8  ;;  %v895_v38 = vpop.f32.mrb[35].mxu1  ;;  %1210 = vmatmul.mubr.f32.gmra.mrb[140].mxu1 %v725_v27  ;;  %v1344_v1 = vpop.f32.mrb[35].mxu0  ;;  %1659 = vmatmul.mubr.f32.gmra.mrb[140].mxu0 %v725_v27  ;;  %v732_v20 = vmax.f32 %v658_v23, 0.0  ;;  %p2291_p0 = scmp.ne.s32.totalorder %s1981_s18, %s2290_s19  ;;  %p2296_p2 = scmp.lt.s32.totalorder %s2290_s19, %s2290_s19 }
 0x1b6   :  { %v896_v12 = vadd.f32 %v895_v38, %v3113_v13  ;;  %v1345_v41 = vadd.f32 %v1344_v1, %v3115_v58  ;;  %1215 = vmatprep.mubr.f32.mxu1 %v2314_v33  ;;  %1664 = vmatprep.mubr.f32.mxu0 %v2314_v33  ;;  %v731_v38 = vmax.f32 %v653_v26, 0.0 }
 0x1b7   :  { %1723 = vst [vmem:[#allocation2 + $0x20] sm:$0xff] %v894_v2  ;;  %1725 = vst [vmem:[#allocation2 + $0x30] sm:$0xff] %v1343_v35  ;;  %p2297_p3 = por %p2296_p2, %p2295_p1 }
 0x1b8   :  { %1724 = vst [vmem:[#allocation2 + $0x28] sm:$0xff] %v896_v12  ;;  %1726 = vst [vmem:[#allocation2 + $0x38] sm:$0xff] %v1345_v41  ;;  %v899_v11 = vpop.f32.mrb[36].mxu1  ;;  %v1348_v22 = vpop.f32.mrb[36].mxu0 }
 0x1b9   :  { %v900_v29 = vadd.f32 %v899_v11, %v3107_v0  ;;  %v1349_v44 = vadd.f32 %v1348_v22, %v3109_v8  ;;  %v901_v21 = vpop.f32.mrb[37].mxu1  ;;  %1216 = vmatmul.mubr.f32.gmra.mrb[142].mxu1 %v726_v5  ;;  %v1350_v32 = vpop.f32.mrb[37].mxu0  ;;  %1665 = vmatmul.mubr.f32.gmra.mrb[142].mxu0 %v726_v5  ;;  %p2298_p4 = pnand %p2297_p3, %p2291_p0 }
 0x1ba   :  { %v902_v49 = vadd.f32 %v901_v21, %v3113_v13  ;;  %v1351_v28 = vadd.f32 %v1350_v32, %v3115_v58  ;;  %1221 = vmatprep.mubr.f32.mxu1 %v2314_v33  ;;  %1670 = vmatprep.mubr.f32.mxu0 %v2314_v33 }
 0x1bb   :  { %1727 = vst [vmem:[#allocation2 + $0x40] sm:$0xff] %v900_v29  ;;  %1729 = vst [vmem:[#allocation2 + $0x50] sm:$0xff] %v1349_v44  ;;  %v663_v44 = vadd.f32 %v2289_v34, %v2974_v30  ;;  %v668_v30 = vadd.f32 %v2289_v34, %v2972_v25 }
 0x1bc   :  { %1728 = vst [vmem:[#allocation2 + $0x48] sm:$0xff] %v902_v49  ;;  %1730 = vst [vmem:[#allocation2 + $0x58] sm:$0xff] %v1351_v28  ;;  %v905_v37 = vpop.f32.mrb[38].mxu1  ;;  %v1354_v40 = vpop.f32.mrb[38].mxu0 }
 0x1bd   :  { %v906_v39 = vadd.f32 %v905_v37, %v3107_v0  ;;  %v1355_v52 = vadd.f32 %v1354_v40, %v3109_v8  ;;  %v907_v57 = vpop.f32.mrb[39].mxu1  ;;  %1222 = vmatmul.mubr.f32.gmra.mrb[144].mxu1 %v727_v31  ;;  %v1356_v46 = vpop.f32.mrb[39].mxu0  ;;  %1671 = vmatmul.mubr.f32.gmra.mrb[144].mxu0 %v727_v31  ;;  %v734_v25 = vmax.f32 %v668_v30, 0.0 }
 0x1be   :  { %v908_v36 = vadd.f32 %v907_v57, %v3113_v13  ;;  %v1357_v45 = vadd.f32 %v1356_v46, %v3115_v58  ;;  %1227 = vmatprep.mubr.f32.mxu1 %v2314_v33  ;;  %1676 = vmatprep.mubr.f32.mxu0 %v2314_v33 }
 0x1bf   :  { %1731 = vst [vmem:[#allocation2 + $0x60] sm:$0xff] %v906_v39  ;;  %1733 = vst [vmem:[#allocation2 + $0x70] sm:$0xff] %v1355_v52  ;;  %v733_v39 = vmax.f32 %v663_v44, 0.0 }
 0x1c0   :  { %1732 = vst [vmem:[#allocation2 + $0x68] sm:$0xff] %v908_v36  ;;  %1734 = vst [vmem:[#allocation2 + $0x78] sm:$0xff] %v1357_v45  ;;  %v911_v62 = vpop.f32.mrb[40].mxu1  ;;  %v1360_v3 = vpop.f32.mrb[40].mxu0 }
 0x1c1   :  { %v912_v56 = vadd.f32 %v911_v62, %v3107_v0  ;;  %v1361_v42 = vadd.f32 %v1360_v3, %v3109_v8  ;;  %v913_v51 = vpop.f32.mrb[41].mxu1  ;;  %1228 = vmatmul.mubr.f32.gmra.mrb[146].mxu1 %v728_v9  ;;  %v1362_v55 = vpop.f32.mrb[41].mxu0  ;;  %1677 = vmatmul.mubr.f32.gmra.mrb[146].mxu0 %v728_v9 }
 0x1c2   :  { %v914_v4 = vadd.f32 %v913_v51, %v3113_v13  ;;  %v1363_v7 = vadd.f32 %v1362_v55, %v3115_v58  ;;  %1233 = vmatprep.mubr.f32.mxu1 %v2314_v33  ;;  %1682 = vmatprep.mubr.f32.mxu0 %v2314_v33 }
 0x1c3   :  { %1735 = vst [vmem:[#allocation2 + $0x80] sm:$0xff] %v912_v56  ;;  %1737 = vst [vmem:[#allocation2 + $0x90] sm:$0xff] %v1361_v42 }
 0x1c4   :  { %1736 = vst [vmem:[#allocation2 + $0x88] sm:$0xff] %v914_v4  ;;  %1738 = vst [vmem:[#allocation2 + $0x98] sm:$0xff] %v1363_v7  ;;  %v917_v61 = vpop.f32.mrb[42].mxu1  ;;  %v1366_v48 = vpop.f32.mrb[42].mxu0 }
 0x1c5   :  { %v918_v15 = vadd.f32 %v917_v61, %v3107_v0  ;;  %v1367_v63 = vadd.f32 %v1366_v48, %v3109_v8  ;;  %v919_v17 = vpop.f32.mrb[43].mxu1  ;;  %1234 = vmatmul.mubr.f32.gmra.mrb[148].mxu1 %v729_v50  ;;  %v1368_v47 = vpop.f32.mrb[43].mxu0  ;;  %1683 = vmatmul.mubr.f32.gmra.mrb[148].mxu0 %v729_v50 }
 0x1c6   :  { %v920_v54 = vadd.f32 %v919_v17, %v3113_v13  ;;  %v1369_v19 = vadd.f32 %v1368_v47, %v3115_v58  ;;  %1239 = vmatprep.mubr.f32.mxu1 %v2314_v33  ;;  %1688 = vmatprep.mubr.f32.mxu0 %v2314_v33 }
 0x1c7   :  { %1739 = vst [vmem:[#allocation2 + $0xa0] sm:$0xff] %v918_v15  ;;  %1741 = vst [vmem:[#allocation2 + $0xb0] sm:$0xff] %v1367_v63 }
 0x1c8   :  { %1740 = vst [vmem:[#allocation2 + $0xa8] sm:$0xff] %v920_v54  ;;  %1742 = vst [vmem:[#allocation2 + $0xb8] sm:$0xff] %v1369_v19  ;;  %v923_v53 = vpop.f32.mrb[44].mxu1  ;;  %v1372_v60 = vpop.f32.mrb[44].mxu0 }
 0x1c9   :  { %v924_v6 = vadd.f32 %v923_v53, %v3107_v0  ;;  %v1373_v27 = vadd.f32 %v1372_v60, %v3109_v8  ;;  %v925_v18 = vpop.f32.mrb[45].mxu1  ;;  %1240 = vmatmul.mubr.f32.gmra.mrb[150].mxu1 %v730_v16  ;;  %v1374_v59 = vpop.f32.mrb[45].mxu0  ;;  %1689 = vmatmul.mubr.f32.gmra.mrb[150].mxu0 %v730_v16 }
 0x1ca   :  { %v926_v2 = vadd.f32 %v925_v18, %v3113_v13  ;;  %v1375_v35 = vadd.f32 %v1374_v59, %v3115_v58  ;;  %1245 = vmatprep.mubr.f32.mxu1 %v2314_v33  ;;  %1694 = vmatprep.mubr.f32.mxu0 %v2314_v33 }
 0x1cb   :  { %1743 = vst [vmem:[#allocation2 + $0xc0] sm:$0xff] %v924_v6  ;;  %1745 = vst [vmem:[#allocation2 + $0xd0] sm:$0xff] %v1373_v27 }
 0x1cc   :  { %1744 = vst [vmem:[#allocation2 + $0xc8] sm:$0xff] %v926_v2  ;;  %1746 = vst [vmem:[#allocation2 + $0xd8] sm:$0xff] %v1375_v35  ;;  %v929_v1 = vpop.f32.mrb[46].mxu1  ;;  %v1378_v12 = vpop.f32.mrb[46].mxu0 }
 0x1cd   :  { %v930_v41 = vadd.f32 %v929_v1, %v3107_v0  ;;  %v1379_v5 = vadd.f32 %v1378_v12, %v3109_v8  ;;  %v931_v24 = vpop.f32.mrb[47].mxu1  ;;  %1246 = vmatmul.mubr.f32.gmra.mrb[152].mxu1 %v731_v38  ;;  %v1380_v11 = vpop.f32.mrb[47].mxu0  ;;  %1695 = vmatmul.mubr.f32.gmra.mrb[152].mxu0 %v731_v38 }
 0x1ce   :  { %v932_v22 = vadd.f32 %v931_v24, %v3113_v13  ;;  %v1381_v29 = vadd.f32 %v1380_v11, %v3115_v58  ;;  %1251 = vmatprep.mubr.f32.mxu1 %v2314_v33  ;;  %1700 = vmatprep.mubr.f32.mxu0 %v2314_v33 }
 0x1cf   :  { %1747 = vst [vmem:[#allocation2 + $0xe0] sm:$0xff] %v930_v41  ;;  %1749 = vst [vmem:[#allocation2 + $0xf0] sm:$0xff] %v1379_v5 }
 0x1d0   :  { %1748 = vst [vmem:[#allocation2 + $0xe8] sm:$0xff] %v932_v22  ;;  %1750 = vst [vmem:[#allocation2 + $0xf8] sm:$0xff] %v1381_v29  ;;  %v935_v21 = vpop.f32.mrb[48].mxu1  ;;  %v1384_v32 = vpop.f32.mrb[48].mxu0 }
 0x1d1   :  { %v936_v49 = vadd.f32 %v935_v21, %v3107_v0  ;;  %v1385_v28 = vadd.f32 %v1384_v32, %v3109_v8  ;;  %v937_v10 = vpop.f32.mrb[49].mxu1  ;;  %1252 = vmatmul.mubr.f32.gmra.mrb[154].mxu1 %v732_v20  ;;  %v1386_v31 = vpop.f32.mrb[49].mxu0  ;;  %1701 = vmatmul.mubr.f32.gmra.mrb[154].mxu0 %v732_v20 }
 0x1d2   :  { %v938_v37 = vadd.f32 %v937_v10, %v3113_v13  ;;  %v1387_v40 = vadd.f32 %v1386_v31, %v3115_v58  ;;  %1257 = vmatprep.mubr.f32.mxu1 %v2314_v33  ;;  %1706 = vmatprep.mubr.f32.mxu0 %v2314_v33 }
 0x1d3   :  { %1751 = vst [vmem:[#allocation2 + $0x100] sm:$0xff] %v936_v49  ;;  %1753 = vst [vmem:[#allocation2 + $0x110] sm:$0xff] %v1385_v28 }
 0x1d4   :  { %1752 = vst [vmem:[#allocation2 + $0x108] sm:$0xff] %v938_v37  ;;  %1754 = vst [vmem:[#allocation2 + $0x118] sm:$0xff] %v1387_v40  ;;  %v941_v52 = vpop.f32.mrb[50].mxu1  ;;  %v1390_v57 = vpop.f32.mrb[50].mxu0 }
 0x1d5   :  { %v942_v46 = vadd.f32 %v941_v52, %v3107_v0  ;;  %v1391_v36 = vadd.f32 %v1390_v57, %v3109_v8  ;;  %v943_v45 = vpop.f32.mrb[51].mxu1  ;;  %1258 = vmatmul.mubr.f32.gmra.mrb[156].mxu1 %v733_v39  ;;  %v1392_v9 = vpop.f32.mrb[51].mxu0  ;;  %1707 = vmatmul.mubr.f32.gmra.mrb[156].mxu0 %v733_v39 }
 0x1d6   :  { %v944_v43 = vadd.f32 %v943_v45, %v3113_v13  ;;  %v1393_v62 = vadd.f32 %v1392_v9, %v3115_v58  ;;  %1263 = vmatprep.mubr.f32.mxu1 %v2314_v33  ;;  %1712 = vmatprep.mubr.f32.mxu0 %v2314_v33 }
 0x1d7   :  { %1755 = vst [vmem:[#allocation2 + $0x120] sm:$0xff] %v942_v46  ;;  %1757 = vst [vmem:[#allocation2 + $0x130] sm:$0xff] %v1391_v36 }
 0x1d8   :  { %1756 = vst [vmem:[#allocation2 + $0x128] sm:$0xff] %v944_v43  ;;  %1758 = vst [vmem:[#allocation2 + $0x138] sm:$0xff] %v1393_v62  ;;  %v947_v3 = vpop.f32.mrb[52].mxu1  ;;  %v1396_v56 = vpop.f32.mrb[52].mxu0 }
 0x1d9   :  { %v948_v42 = vadd.f32 %v947_v3, %v3107_v0  ;;  %v1397_v51 = vadd.f32 %v1396_v56, %v3109_v8  ;;  %v949_v55 = vpop.f32.mrb[53].mxu1  ;;  %1264 = vmatmul.mubr.f32.gmra.mrb[158].mxu1 %v734_v25  ;;  %v1398_v4 = vpop.f32.mrb[53].mxu0  ;;  %1713 = vmatmul.mubr.f32.gmra.mrb[158].mxu0 %v734_v25 }
 0x1da   :  { %v950_v7 = vadd.f32 %v949_v55, %v3113_v13  ;;  %v1399_v14 = vadd.f32 %v1398_v4, %v3115_v58 }
 0x1db   :  { %1759 = vst [vmem:[#allocation2 + $0x140] sm:$0xff] %v948_v42  ;;  %1761 = vst [vmem:[#allocation2 + $0x150] sm:$0xff] %v1397_v51 }
 0x1dc   :  { %1760 = vst [vmem:[#allocation2 + $0x148] sm:$0xff] %v950_v7  ;;  %1762 = vst [vmem:[#allocation2 + $0x158] sm:$0xff] %v1399_v14  ;;  %v953_v33 = vpop.f32.mrb[54].mxu1  ;;  %v1402_v50 = vpop.f32.mrb[54].mxu0 }
 0x1dd   :  { %v954_v61 = vadd.f32 %v953_v33, %v3107_v0  ;;  %v1403_v48 = vadd.f32 %v1402_v50, %v3109_v8  ;;  %v955_v15 = vpop.f32.mrb[55].mxu1  ;;  %v1404_v63 = vpop.f32.mrb[55].mxu0 }
 0x1de   :  { %v956_v17 = vadd.f32 %v955_v15, %v3113_v13  ;;  %v1405_v47 = vadd.f32 %v1404_v63, %v3115_v58 }
 0x1df   :  { %1763 = vst [vmem:[#allocation2 + $0x160] sm:$0xff] %v954_v61  ;;  %1765 = vst [vmem:[#allocation2 + $0x170] sm:$0xff] %v1403_v48 }
 0x1e0   :  { %1764 = vst [vmem:[#allocation2 + $0x168] sm:$0xff] %v956_v17  ;;  %1766 = vst [vmem:[#allocation2 + $0x178] sm:$0xff] %v1405_v47  ;;  %v959_v54 = vpop.f32.mrb[56].mxu1  ;;  %v1408_v19 = vpop.f32.mrb[56].mxu0 }
 0x1e1   :  { %v960_v16 = vadd.f32 %v959_v54, %v3107_v0  ;;  %v1409_v26 = vadd.f32 %v1408_v19, %v3109_v8  ;;  %v961_v53 = vpop.f32.mrb[57].mxu1  ;;  %v1410_v60 = vpop.f32.mrb[57].mxu0 }
 0x1e2   :  { %v962_v6 = vadd.f32 %v961_v53, %v3113_v13  ;;  %v1411_v27 = vadd.f32 %v1410_v60, %v3115_v58 }
 0x1e3   :  { %1767 = vst [vmem:[#allocation2 + $0x180] sm:$0xff] %v960_v16  ;;  %1769 = vst [vmem:[#allocation2 + $0x190] sm:$0xff] %v1409_v26 }
 0x1e4   :  { %1768 = vst [vmem:[#allocation2 + $0x188] sm:$0xff] %v962_v6  ;;  %1770 = vst [vmem:[#allocation2 + $0x198] sm:$0xff] %v1411_v27  ;;  %v965_v18 = vpop.f32.mrb[58].mxu1  ;;  %v1414_v59 = vpop.f32.mrb[58].mxu0 }
 0x1e5   :  { %v966_v2 = vadd.f32 %v965_v18, %v3107_v0  ;;  %v1415_v35 = vadd.f32 %v1414_v59, %v3109_v8  ;;  %v967_v34 = vpop.f32.mrb[59].mxu1  ;;  %v1416_v23 = vpop.f32.mrb[59].mxu0 }
 0x1e6   :  { %v968_v38 = vadd.f32 %v967_v34, %v3113_v13  ;;  %v1417_v1 = vadd.f32 %v1416_v23, %v3115_v58 }
 0x1e7   :  { %1771 = vst [vmem:[#allocation2 + $0x1a0] sm:$0xff] %v966_v2  ;;  %1773 = vst [vmem:[#allocation2 + $0x1b0] sm:$0xff] %v1415_v35 }
 0x1e8   :  { %1772 = vst [vmem:[#allocation2 + $0x1a8] sm:$0xff] %v968_v38  ;;  %1774 = vst [vmem:[#allocation2 + $0x1b8] sm:$0xff] %v1417_v1  ;;  %v971_v12 = vpop.f32.mrb[60].mxu1  ;;  %v1420_v41 = vpop.f32.mrb[60].mxu0 }
 0x1e9   :  { %v972_v5 = vadd.f32 %v971_v12, %v3107_v0  ;;  %v1421_v24 = vadd.f32 %v1420_v41, %v3109_v8  ;;  %v973_v11 = vpop.f32.mrb[61].mxu1  ;;  %v1422_v22 = vpop.f32.mrb[61].mxu0 }
 0x1ea   :  { %v974_v29 = vadd.f32 %v973_v11, %v3113_v13  ;;  %v1423_v20 = vadd.f32 %v1422_v22, %v3115_v58 }
 0x1eb   :  { %1775 = vst [vmem:[#allocation2 + $0x1c0] sm:$0xff] %v972_v5  ;;  %1777 = vst [vmem:[#allocation2 + $0x1d0] sm:$0xff] %v1421_v24 }
 0x1ec   :  { %1776 = vst [vmem:[#allocation2 + $0x1c8] sm:$0xff] %v974_v29  ;;  %1778 = vst [vmem:[#allocation2 + $0x1d8] sm:$0xff] %v1423_v20  ;;  %v977_v44 = vpop.f32.mrb[62].mxu1  ;;  %v1426_v21 = vpop.f32.mrb[62].mxu0 }
 0x1ed   :  { %v978_v32 = vadd.f32 %v977_v44, %v3107_v0  ;;  %v1427_v49 = vadd.f32 %v1426_v21, %v3109_v8  ;;  %v979_v28 = vpop.f32.mrb[63].mxu1  ;;  %v1428_v10 = vpop.f32.mrb[63].mxu0 }
 0x1ee   :  { %v980_v31 = vadd.f32 %v979_v28, %v3113_v13  ;;  %v1429_v37 = vadd.f32 %v1428_v10, %v3115_v58 }
 0x1ef   :  { %1779 = vst [vmem:[#allocation2 + $0x1e0] sm:$0xff] %v978_v32  ;;  %1781 = vst [vmem:[#allocation2 + $0x1f0] sm:$0xff] %v1427_v49 }
 0x1f0   :  { %1780 = vst [vmem:[#allocation2 + $0x1e8] sm:$0xff] %v980_v31  ;;  %1782 = vst [vmem:[#allocation2 + $0x1f8] sm:$0xff] %v1429_v37  ;;  %v983_v40 = vpop.f32.mrb[64].mxu1  ;;  %v1432_v30 = vpop.f32.mrb[64].mxu0 }
 0x1f1   :  { %v984_v39 = vadd.f32 %v983_v40, %v3107_v0  ;;  %v1433_v52 = vadd.f32 %v1432_v30, %v3109_v8  ;;  %v985_v57 = vpop.f32.mrb[65].mxu1  ;;  %v1434_v46 = vpop.f32.mrb[65].mxu0 }
 0x1f2   :  { %v986_v36 = vadd.f32 %v985_v57, %v3113_v13  ;;  %v1435_v45 = vadd.f32 %v1434_v46, %v3115_v58 }
 0x1f3   :  { %1783 = vst [vmem:[#allocation2 + $0x200] sm:$0xff] %v984_v39  ;;  %1785 = vst [vmem:[#allocation2 + $0x210] sm:$0xff] %v1433_v52 }
 0x1f4   :  { %1784 = vst [vmem:[#allocation2 + $0x208] sm:$0xff] %v986_v36  ;;  %1786 = vst [vmem:[#allocation2 + $0x218] sm:$0xff] %v1435_v45  ;;  %v989_v9 = vpop.f32.mrb[66].mxu1  ;;  %v1438_v43 = vpop.f32.mrb[66].mxu0 }
 0x1f5   :  { %v990_v62 = vadd.f32 %v989_v9, %v3107_v0  ;;  %v1439_v25 = vadd.f32 %v1438_v43, %v3109_v8  ;;  %v991_v3 = vpop.f32.mrb[67].mxu1  ;;  %v1440_v56 = vpop.f32.mrb[67].mxu0 }
 0x1f6   :  { %v992_v42 = vadd.f32 %v991_v3, %v3113_v13  ;;  %v1441_v51 = vadd.f32 %v1440_v56, %v3115_v58 }
 0x1f7   :  { %1787 = vst [vmem:[#allocation2 + $0x220] sm:$0xff] %v990_v62  ;;  %1789 = vst [vmem:[#allocation2 + $0x230] sm:$0xff] %v1439_v25 }
 0x1f8   :  { %1788 = vst [vmem:[#allocation2 + $0x228] sm:$0xff] %v992_v42  ;;  %1790 = vst [vmem:[#allocation2 + $0x238] sm:$0xff] %v1441_v51  ;;  %v995_v55 = vpop.f32.mrb[68].mxu1  ;;  %v1444_v4 = vpop.f32.mrb[68].mxu0 }
 0x1f9   :  { %v996_v7 = vadd.f32 %v995_v55, %v3107_v0  ;;  %v1445_v14 = vadd.f32 %v1444_v4, %v3109_v8  ;;  %v997_v33 = vpop.f32.mrb[69].mxu1  ;;  %v1446_v50 = vpop.f32.mrb[69].mxu0 }
 0x1fa   :  { %v998_v61 = vadd.f32 %v997_v33, %v3113_v13  ;;  %v1447_v48 = vadd.f32 %v1446_v50, %v3115_v58 }
 0x1fb   :  { %1791 = vst [vmem:[#allocation2 + $0x240] sm:$0xff] %v996_v7  ;;  %1793 = vst [vmem:[#allocation2 + $0x250] sm:$0xff] %v1445_v14 }
 0x1fc   :  { %1792 = vst [vmem:[#allocation2 + $0x248] sm:$0xff] %v998_v61  ;;  %1794 = vst [vmem:[#allocation2 + $0x258] sm:$0xff] %v1447_v48  ;;  %v1001_v15 = vpop.f32.mrb[70].mxu1  ;;  %v1450_v63 = vpop.f32.mrb[70].mxu0 }
 0x1fd   :  { %v1002_v17 = vadd.f32 %v1001_v15, %v3107_v0  ;;  %v1451_v47 = vadd.f32 %v1450_v63, %v3109_v8  ;;  %v1003_v54 = vpop.f32.mrb[71].mxu1  ;;  %v1452_v19 = vpop.f32.mrb[71].mxu0 }
 0x1fe   :  { %v1004_v16 = vadd.f32 %v1003_v54, %v3113_v13  ;;  %v1453_v26 = vadd.f32 %v1452_v19, %v3115_v58 }
 0x1ff   :  { %1795 = vst [vmem:[#allocation2 + $0x260] sm:$0xff] %v1002_v17  ;;  %1797 = vst [vmem:[#allocation2 + $0x270] sm:$0xff] %v1451_v47 }
 0x200   :  { %1796 = vst [vmem:[#allocation2 + $0x268] sm:$0xff] %v1004_v16  ;;  %1798 = vst [vmem:[#allocation2 + $0x278] sm:$0xff] %v1453_v26  ;;  %v1007_v53 = vpop.f32.mrb[72].mxu1  ;;  %v1456_v60 = vpop.f32.mrb[72].mxu0 }
 0x201   :  { %v1008_v6 = vadd.f32 %v1007_v53, %v3107_v0  ;;  %v1457_v27 = vadd.f32 %v1456_v60, %v3109_v8  ;;  %v1009_v18 = vpop.f32.mrb[73].mxu1  ;;  %v1458_v59 = vpop.f32.mrb[73].mxu0 }
 0x202   :  { %v1010_v2 = vadd.f32 %v1009_v18, %v3113_v13  ;;  %v1459_v35 = vadd.f32 %v1458_v59, %v3115_v58 }
 0x203   :  { %1799 = vst [vmem:[#allocation2 + $0x280] sm:$0xff] %v1008_v6  ;;  %1801 = vst [vmem:[#allocation2 + $0x290] sm:$0xff] %v1457_v27 }
 0x204   :  { %1800 = vst [vmem:[#allocation2 + $0x288] sm:$0xff] %v1010_v2  ;;  %1802 = vst [vmem:[#allocation2 + $0x298] sm:$0xff] %v1459_v35  ;;  %v1013_v34 = vpop.f32.mrb[74].mxu1  ;;  %v1462_v23 = vpop.f32.mrb[74].mxu0 }
 0x205   :  { %v1014_v38 = vadd.f32 %v1013_v34, %v3107_v0  ;;  %v1463_v1 = vadd.f32 %v1462_v23, %v3109_v8  ;;  %v1015_v12 = vpop.f32.mrb[75].mxu1  ;;  %v1464_v41 = vpop.f32.mrb[75].mxu0 }
 0x206   :  { %v1016_v5 = vadd.f32 %v1015_v12, %v3113_v13  ;;  %v1465_v24 = vadd.f32 %v1464_v41, %v3115_v58 }
 0x207   :  { %1803 = vst [vmem:[#allocation2 + $0x2a0] sm:$0xff] %v1014_v38  ;;  %1805 = vst [vmem:[#allocation2 + $0x2b0] sm:$0xff] %v1463_v1 }
 0x208   :  { %1804 = vst [vmem:[#allocation2 + $0x2a8] sm:$0xff] %v1016_v5  ;;  %1806 = vst [vmem:[#allocation2 + $0x2b8] sm:$0xff] %v1465_v24  ;;  %v1019_v11 = vpop.f32.mrb[76].mxu1  ;;  %v1468_v22 = vpop.f32.mrb[76].mxu0 }
 0x209   :  { %v1020_v29 = vadd.f32 %v1019_v11, %v3107_v0  ;;  %v1469_v20 = vadd.f32 %v1468_v22, %v3109_v8  ;;  %v1021_v44 = vpop.f32.mrb[77].mxu1  ;;  %v1470_v21 = vpop.f32.mrb[77].mxu0 }
 0x20a   :  { %v1022_v32 = vadd.f32 %v1021_v44, %v3113_v13  ;;  %v1471_v49 = vadd.f32 %v1470_v21, %v3115_v58 }
 0x20b   :  { %1807 = vst [vmem:[#allocation2 + $0x2c0] sm:$0xff] %v1020_v29  ;;  %1809 = vst [vmem:[#allocation2 + $0x2d0] sm:$0xff] %v1469_v20 }
 0x20c   :  { %1808 = vst [vmem:[#allocation2 + $0x2c8] sm:$0xff] %v1022_v32  ;;  %1810 = vst [vmem:[#allocation2 + $0x2d8] sm:$0xff] %v1471_v49  ;;  %v1025_v28 = vpop.f32.mrb[78].mxu1  ;;  %v1474_v10 = vpop.f32.mrb[78].mxu0 }
 0x20d   :  { %v1026_v31 = vadd.f32 %v1025_v28, %v3107_v0  ;;  %v1475_v37 = vadd.f32 %v1474_v10, %v3109_v8  ;;  %v1027_v40 = vpop.f32.mrb[79].mxu1  ;;  %v1476_v30 = vpop.f32.mrb[79].mxu0 }
 0x20e   :  { %v1028_v39 = vadd.f32 %v1027_v40, %v3113_v13  ;;  %v1477_v52 = vadd.f32 %v1476_v30, %v3115_v58 }
 0x20f   :  { %1811 = vst [vmem:[#allocation2 + $0x2e0] sm:$0xff] %v1026_v31  ;;  %1813 = vst [vmem:[#allocation2 + $0x2f0] sm:$0xff] %v1475_v37 }
 0x210   :  { %1812 = vst [vmem:[#allocation2 + $0x2e8] sm:$0xff] %v1028_v39  ;;  %1814 = vst [vmem:[#allocation2 + $0x2f8] sm:$0xff] %v1477_v52  ;;  %v1031_v57 = vpop.f32.mrb[80].mxu1  ;;  %v1480_v46 = vpop.f32.mrb[80].mxu0 }
 0x211   :  { %v1032_v36 = vadd.f32 %v1031_v57, %v3107_v0  ;;  %v1481_v45 = vadd.f32 %v1480_v46, %v3109_v8  ;;  %v1033_v9 = vpop.f32.mrb[81].mxu1  ;;  %v1482_v43 = vpop.f32.mrb[81].mxu0 }
 0x212   :  { %v1034_v62 = vadd.f32 %v1033_v9, %v3113_v13  ;;  %v1483_v25 = vadd.f32 %v1482_v43, %v3115_v58 }
 0x213   :  { %1815 = vst [vmem:[#allocation2 + $0x300] sm:$0xff] %v1032_v36  ;;  %1817 = vst [vmem:[#allocation2 + $0x310] sm:$0xff] %v1481_v45 }
 0x214   :  { %1816 = vst [vmem:[#allocation2 + $0x308] sm:$0xff] %v1034_v62  ;;  %1818 = vst [vmem:[#allocation2 + $0x318] sm:$0xff] %v1483_v25  ;;  %v1037_v3 = vpop.f32.mrb[82].mxu1  ;;  %v1486_v56 = vpop.f32.mrb[82].mxu0 }
 0x215   :  { %v1038_v42 = vadd.f32 %v1037_v3, %v3107_v0  ;;  %v1487_v51 = vadd.f32 %v1486_v56, %v3109_v8  ;;  %v1039_v55 = vpop.f32.mrb[83].mxu1  ;;  %v1488_v4 = vpop.f32.mrb[83].mxu0 }
 0x216   :  { %v1040_v7 = vadd.f32 %v1039_v55, %v3113_v13  ;;  %v1489_v14 = vadd.f32 %v1488_v4, %v3115_v58 }
 0x217   :  { %1819 = vst [vmem:[#allocation2 + $0x320] sm:$0xff] %v1038_v42  ;;  %1821 = vst [vmem:[#allocation2 + $0x330] sm:$0xff] %v1487_v51 }
 0x218   :  { %1820 = vst [vmem:[#allocation2 + $0x328] sm:$0xff] %v1040_v7  ;;  %1822 = vst [vmem:[#allocation2 + $0x338] sm:$0xff] %v1489_v14  ;;  %v1043_v33 = vpop.f32.mrb[84].mxu1  ;;  %v1492_v50 = vpop.f32.mrb[84].mxu0 }
 0x219   :  { %v1044_v61 = vadd.f32 %v1043_v33, %v3107_v0  ;;  %v1493_v48 = vadd.f32 %v1492_v50, %v3109_v8  ;;  %v1045_v15 = vpop.f32.mrb[85].mxu1  ;;  %v1494_v63 = vpop.f32.mrb[85].mxu0 }
 0x21a   :  { %v1046_v17 = vadd.f32 %v1045_v15, %v3113_v13  ;;  %v1495_v47 = vadd.f32 %v1494_v63, %v3115_v58 }
 0x21b   :  { %1823 = vst [vmem:[#allocation2 + $0x340] sm:$0xff] %v1044_v61  ;;  %1825 = vst [vmem:[#allocation2 + $0x350] sm:$0xff] %v1493_v48 }
 0x21c   :  { %1824 = vst [vmem:[#allocation2 + $0x348] sm:$0xff] %v1046_v17  ;;  %1826 = vst [vmem:[#allocation2 + $0x358] sm:$0xff] %v1495_v47  ;;  %v1049_v54 = vpop.f32.mrb[86].mxu1  ;;  %v1498_v19 = vpop.f32.mrb[86].mxu0 }
 0x21d   :  { %v1050_v16 = vadd.f32 %v1049_v54, %v3107_v0  ;;  %v1499_v26 = vadd.f32 %v1498_v19, %v3109_v8  ;;  %v1051_v53 = vpop.f32.mrb[87].mxu1  ;;  %v1500_v60 = vpop.f32.mrb[87].mxu0 }
 0x21e   :  { %v1052_v6 = vadd.f32 %v1051_v53, %v3113_v13  ;;  %v1501_v27 = vadd.f32 %v1500_v60, %v3115_v58 }
 0x21f   :  { %1827 = vst [vmem:[#allocation2 + $0x360] sm:$0xff] %v1050_v16  ;;  %1829 = vst [vmem:[#allocation2 + $0x370] sm:$0xff] %v1499_v26 }
 0x220   :  { %1828 = vst [vmem:[#allocation2 + $0x368] sm:$0xff] %v1052_v6  ;;  %1830 = vst [vmem:[#allocation2 + $0x378] sm:$0xff] %v1501_v27  ;;  %v1055_v18 = vpop.f32.mrb[88].mxu1  ;;  %v1504_v59 = vpop.f32.mrb[88].mxu0 }
 0x221   :  { %v1056_v2 = vadd.f32 %v1055_v18, %v3107_v0  ;;  %v1505_v35 = vadd.f32 %v1504_v59, %v3109_v8  ;;  %v1057_v34 = vpop.f32.mrb[89].mxu1  ;;  %v1506_v23 = vpop.f32.mrb[89].mxu0 }
 0x222   :  { %v1058_v38 = vadd.f32 %v1057_v34, %v3113_v13  ;;  %v1507_v1 = vadd.f32 %v1506_v23, %v3115_v58 }
 0x223   :  { %1831 = vst [vmem:[#allocation2 + $0x380] sm:$0xff] %v1056_v2  ;;  %1833 = vst [vmem:[#allocation2 + $0x390] sm:$0xff] %v1505_v35 }
 0x224   :  { %1832 = vst [vmem:[#allocation2 + $0x388] sm:$0xff] %v1058_v38  ;;  %1834 = vst [vmem:[#allocation2 + $0x398] sm:$0xff] %v1507_v1  ;;  %v1061_v12 = vpop.f32.mrb[90].mxu1  ;;  %v1510_v41 = vpop.f32.mrb[90].mxu0 }
 0x225   :  { %v1062_v5 = vadd.f32 %v1061_v12, %v3107_v0  ;;  %v1511_v24 = vadd.f32 %v1510_v41, %v3109_v8  ;;  %v1063_v11 = vpop.f32.mrb[91].mxu1  ;;  %v1512_v22 = vpop.f32.mrb[91].mxu0 }
 0x226   :  { %v1064_v29 = vadd.f32 %v1063_v11, %v3113_v13  ;;  %v1513_v20 = vadd.f32 %v1512_v22, %v3115_v58 }
 0x227   :  { %1835 = vst [vmem:[#allocation2 + $0x3a0] sm:$0xff] %v1062_v5  ;;  %1837 = vst [vmem:[#allocation2 + $0x3b0] sm:$0xff] %v1511_v24 }
 0x228   :  { %1836 = vst [vmem:[#allocation2 + $0x3a8] sm:$0xff] %v1064_v29  ;;  %1838 = vst [vmem:[#allocation2 + $0x3b8] sm:$0xff] %v1513_v20  ;;  %v1067_v44 = vpop.f32.mrb[92].mxu1  ;;  %v1516_v21 = vpop.f32.mrb[92].mxu0 }
 0x229   :  { %v1068_v32 = vadd.f32 %v1067_v44, %v3107_v0  ;;  %v1517_v49 = vadd.f32 %v1516_v21, %v3109_v8  ;;  %v1069_v28 = vpop.f32.mrb[93].mxu1  ;;  %v1518_v10 = vpop.f32.mrb[93].mxu0 }
 0x22a   :  { %v1070_v31 = vadd.f32 %v1069_v28, %v3113_v13  ;;  %v1519_v37 = vadd.f32 %v1518_v10, %v3115_v58 }
 0x22b   :  { %1839 = vst [vmem:[#allocation2 + $0x3c0] sm:$0xff] %v1068_v32  ;;  %1841 = vst [vmem:[#allocation2 + $0x3d0] sm:$0xff] %v1517_v49 }
 0x22c   :  { %1840 = vst [vmem:[#allocation2 + $0x3c8] sm:$0xff] %v1070_v31  ;;  %1842 = vst [vmem:[#allocation2 + $0x3d8] sm:$0xff] %v1519_v37  ;;  %v1073_v40 = vpop.f32.mrb[94].mxu1  ;;  %v1522_v30 = vpop.f32.mrb[94].mxu0 }
 0x22d   :  { %v1074_v39 = vadd.f32 %v1073_v40, %v3107_v0  ;;  %v1523_v52 = vadd.f32 %v1522_v30, %v3109_v8  ;;  %v1075_v57 = vpop.f32.mrb[95].mxu1  ;;  %v1524_v46 = vpop.f32.mrb[95].mxu0 }
 0x22e   :  { %v1076_v36 = vadd.f32 %v1075_v57, %v3113_v13  ;;  %v1525_v45 = vadd.f32 %v1524_v46, %v3115_v58 }
 0x22f   :  { %1843 = vst [vmem:[#allocation2 + $0x3e0] sm:$0xff] %v1074_v39  ;;  %1845 = vst [vmem:[#allocation2 + $0x3f0] sm:$0xff] %v1523_v52 }
 0x230   :  { %1844 = vst [vmem:[#allocation2 + $0x3e8] sm:$0xff] %v1076_v36  ;;  %1846 = vst [vmem:[#allocation2 + $0x3f8] sm:$0xff] %v1525_v45  ;;  %v1079_v9 = vpop.f32.mrb[96].mxu1  ;;  %v1528_v43 = vpop.f32.mrb[96].mxu0 }
 0x231   :  { %v1080_v62 = vadd.f32 %v1079_v9, %v3107_v0  ;;  %v1529_v25 = vadd.f32 %v1528_v43, %v3109_v8  ;;  %v1081_v3 = vpop.f32.mrb[97].mxu1  ;;  %v1530_v56 = vpop.f32.mrb[97].mxu0 }
 0x232   :  { %v1082_v42 = vadd.f32 %v1081_v3, %v3113_v13  ;;  %v1531_v51 = vadd.f32 %v1530_v56, %v3115_v58 }
 0x233   :  { %1847 = vst [vmem:[#allocation2 + $0x400] sm:$0xff] %v1080_v62  ;;  %1849 = vst [vmem:[#allocation2 + $0x410] sm:$0xff] %v1529_v25 }
 0x234   :  { %1848 = vst [vmem:[#allocation2 + $0x408] sm:$0xff] %v1082_v42  ;;  %1850 = vst [vmem:[#allocation2 + $0x418] sm:$0xff] %v1531_v51  ;;  %v1085_v55 = vpop.f32.mrb[98].mxu1  ;;  %v1534_v4 = vpop.f32.mrb[98].mxu0 }
 0x235   :  { %v1086_v7 = vadd.f32 %v1085_v55, %v3107_v0  ;;  %v1535_v14 = vadd.f32 %v1534_v4, %v3109_v8  ;;  %v1087_v33 = vpop.f32.mrb[99].mxu1  ;;  %v1536_v50 = vpop.f32.mrb[99].mxu0 }
 0x236   :  { %v1088_v61 = vadd.f32 %v1087_v33, %v3113_v13  ;;  %v1537_v48 = vadd.f32 %v1536_v50, %v3115_v58 }
 0x237   :  { %1851 = vst [vmem:[#allocation2 + $0x420] sm:$0xff] %v1086_v7  ;;  %1853 = vst [vmem:[#allocation2 + $0x430] sm:$0xff] %v1535_v14 }
 0x238   :  { %1852 = vst [vmem:[#allocation2 + $0x428] sm:$0xff] %v1088_v61  ;;  %1854 = vst [vmem:[#allocation2 + $0x438] sm:$0xff] %v1537_v48  ;;  %v1091_v15 = vpop.f32.mrb[100].mxu1  ;;  %v1540_v63 = vpop.f32.mrb[100].mxu0 }
 0x239   :  { %v1092_v17 = vadd.f32 %v1091_v15, %v3107_v0  ;;  %v1541_v47 = vadd.f32 %v1540_v63, %v3109_v8  ;;  %v1093_v54 = vpop.f32.mrb[101].mxu1  ;;  %v1542_v19 = vpop.f32.mrb[101].mxu0 }
 0x23a   :  { %v1094_v16 = vadd.f32 %v1093_v54, %v3113_v13  ;;  %v1543_v26 = vadd.f32 %v1542_v19, %v3115_v58 }
 0x23b   :  { %1855 = vst [vmem:[#allocation2 + $0x440] sm:$0xff] %v1092_v17  ;;  %1857 = vst [vmem:[#allocation2 + $0x450] sm:$0xff] %v1541_v47 }
 0x23c   :  { %1856 = vst [vmem:[#allocation2 + $0x448] sm:$0xff] %v1094_v16  ;;  %1858 = vst [vmem:[#allocation2 + $0x458] sm:$0xff] %v1543_v26  ;;  %v1097_v53 = vpop.f32.mrb[102].mxu1  ;;  %v1546_v60 = vpop.f32.mrb[102].mxu0 }
 0x23d   :  { %v1098_v6 = vadd.f32 %v1097_v53, %v3107_v0  ;;  %v1547_v27 = vadd.f32 %v1546_v60, %v3109_v8  ;;  %v1099_v18 = vpop.f32.mrb[103].mxu1  ;;  %v1548_v59 = vpop.f32.mrb[103].mxu0 }
 0x23e   :  { %v1100_v2 = vadd.f32 %v1099_v18, %v3113_v13  ;;  %v1549_v35 = vadd.f32 %v1548_v59, %v3115_v58 }
 0x23f   :  { %1859 = vst [vmem:[#allocation2 + $0x460] sm:$0xff] %v1098_v6  ;;  %1861 = vst [vmem:[#allocation2 + $0x470] sm:$0xff] %v1547_v27 }
 0x240   :  { %1860 = vst [vmem:[#allocation2 + $0x468] sm:$0xff] %v1100_v2  ;;  %1862 = vst [vmem:[#allocation2 + $0x478] sm:$0xff] %v1549_v35  ;;  %v1103_v34 = vpop.f32.mrb[104].mxu1  ;;  %v1552_v23 = vpop.f32.mrb[104].mxu0 }
 0x241   :  { %v1104_v38 = vadd.f32 %v1103_v34, %v3107_v0  ;;  %v1553_v1 = vadd.f32 %v1552_v23, %v3109_v8  ;;  %v1105_v12 = vpop.f32.mrb[105].mxu1  ;;  %v1554_v41 = vpop.f32.mrb[105].mxu0 }
 0x242   :  { %v1106_v5 = vadd.f32 %v1105_v12, %v3113_v13  ;;  %v1555_v24 = vadd.f32 %v1554_v41, %v3115_v58 }
 0x243   :  { %1863 = vst [vmem:[#allocation2 + $0x480] sm:$0xff] %v1104_v38  ;;  %1865 = vst [vmem:[#allocation2 + $0x490] sm:$0xff] %v1553_v1 }
 0x244   :  { %1864 = vst [vmem:[#allocation2 + $0x488] sm:$0xff] %v1106_v5  ;;  %1866 = vst [vmem:[#allocation2 + $0x498] sm:$0xff] %v1555_v24  ;;  %v1109_v11 = vpop.f32.mrb[106].mxu1  ;;  %v1558_v22 = vpop.f32.mrb[106].mxu0 }
 0x245   :  { %v1110_v29 = vadd.f32 %v1109_v11, %v3107_v0  ;;  %v1559_v20 = vadd.f32 %v1558_v22, %v3109_v8  ;;  %v1111_v44 = vpop.f32.mrb[107].mxu1  ;;  %v1560_v21 = vpop.f32.mrb[107].mxu0 }
 0x246   :  { %v1112_v32 = vadd.f32 %v1111_v44, %v3113_v13  ;;  %v1561_v49 = vadd.f32 %v1560_v21, %v3115_v58 }
 0x247   :  { %1867 = vst [vmem:[#allocation2 + $0x4a0] sm:$0xff] %v1110_v29  ;;  %1869 = vst [vmem:[#allocation2 + $0x4b0] sm:$0xff] %v1559_v20 }
 0x248   :  { %1868 = vst [vmem:[#allocation2 + $0x4a8] sm:$0xff] %v1112_v32  ;;  %1870 = vst [vmem:[#allocation2 + $0x4b8] sm:$0xff] %v1561_v49  ;;  %v1115_v28 = vpop.f32.mrb[108].mxu1  ;;  %v1564_v10 = vpop.f32.mrb[108].mxu0 }
 0x249   :  { %v1116_v31 = vadd.f32 %v1115_v28, %v3107_v0  ;;  %v1565_v37 = vadd.f32 %v1564_v10, %v3109_v8  ;;  %v1117_v40 = vpop.f32.mrb[109].mxu1  ;;  %v1566_v30 = vpop.f32.mrb[109].mxu0 }
 0x24a   :  { %v1118_v39 = vadd.f32 %v1117_v40, %v3113_v13  ;;  %v1567_v52 = vadd.f32 %v1566_v30, %v3115_v58 }
 0x24b   :  { %1871 = vst [vmem:[#allocation2 + $0x4c0] sm:$0xff] %v1116_v31  ;;  %1873 = vst [vmem:[#allocation2 + $0x4d0] sm:$0xff] %v1565_v37 }
 0x24c   :  { %1872 = vst [vmem:[#allocation2 + $0x4c8] sm:$0xff] %v1118_v39  ;;  %1874 = vst [vmem:[#allocation2 + $0x4d8] sm:$0xff] %v1567_v52  ;;  %v1121_v57 = vpop.f32.mrb[110].mxu1  ;;  %v1570_v46 = vpop.f32.mrb[110].mxu0 }
 0x24d   :  { %v1122_v36 = vadd.f32 %v1121_v57, %v3107_v0  ;;  %v1571_v45 = vadd.f32 %v1570_v46, %v3109_v8  ;;  %v1123_v9 = vpop.f32.mrb[111].mxu1  ;;  %v1572_v43 = vpop.f32.mrb[111].mxu0 }
 0x24e   :  { %v1124_v62 = vadd.f32 %v1123_v9, %v3113_v13  ;;  %v1573_v25 = vadd.f32 %v1572_v43, %v3115_v58 }
 0x24f   :  { %1875 = vst [vmem:[#allocation2 + $0x4e0] sm:$0xff] %v1122_v36  ;;  %1877 = vst [vmem:[#allocation2 + $0x4f0] sm:$0xff] %v1571_v45 }
 0x250   :  { %1876 = vst [vmem:[#allocation2 + $0x4e8] sm:$0xff] %v1124_v62  ;;  %1878 = vst [vmem:[#allocation2 + $0x4f8] sm:$0xff] %v1573_v25  ;;  %v1127_v3 = vpop.f32.mrb[112].mxu1  ;;  %v1576_v56 = vpop.f32.mrb[112].mxu0 }
 0x251   :  { %v1128_v42 = vadd.f32 %v1127_v3, %v3107_v0  ;;  %v1577_v51 = vadd.f32 %v1576_v56, %v3109_v8  ;;  %v1129_v55 = vpop.f32.mrb[113].mxu1  ;;  %v1578_v4 = vpop.f32.mrb[113].mxu0 }
 0x252   :  { %v1130_v7 = vadd.f32 %v1129_v55, %v3113_v13  ;;  %v1579_v14 = vadd.f32 %v1578_v4, %v3115_v58 }
 0x253   :  { %1879 = vst [vmem:[#allocation2 + $0x500] sm:$0xff] %v1128_v42  ;;  %1881 = vst [vmem:[#allocation2 + $0x510] sm:$0xff] %v1577_v51 }
 0x254   :  { %1880 = vst [vmem:[#allocation2 + $0x508] sm:$0xff] %v1130_v7  ;;  %1882 = vst [vmem:[#allocation2 + $0x518] sm:$0xff] %v1579_v14  ;;  %v1133_v33 = vpop.f32.mrb[114].mxu1  ;;  %v1582_v50 = vpop.f32.mrb[114].mxu0 }
 0x255   :  { %v1134_v61 = vadd.f32 %v1133_v33, %v3107_v0  ;;  %v1583_v48 = vadd.f32 %v1582_v50, %v3109_v8  ;;  %v1135_v15 = vpop.f32.mrb[115].mxu1  ;;  %v1584_v63 = vpop.f32.mrb[115].mxu0 }
 0x256   :  { %v1136_v17 = vadd.f32 %v1135_v15, %v3113_v13  ;;  %v1585_v47 = vadd.f32 %v1584_v63, %v3115_v58 }
 0x257   :  { %1883 = vst [vmem:[#allocation2 + $0x520] sm:$0xff] %v1134_v61  ;;  %1885 = vst [vmem:[#allocation2 + $0x530] sm:$0xff] %v1583_v48 }
 0x258   :  { %1884 = vst [vmem:[#allocation2 + $0x528] sm:$0xff] %v1136_v17  ;;  %1886 = vst [vmem:[#allocation2 + $0x538] sm:$0xff] %v1585_v47  ;;  %v1139_v54 = vpop.f32.mrb[116].mxu1  ;;  %v1588_v19 = vpop.f32.mrb[116].mxu0 }
 0x259   :  { %v1140_v16 = vadd.f32 %v1139_v54, %v3107_v0  ;;  %v1589_v26 = vadd.f32 %v1588_v19, %v3109_v8  ;;  %v1141_v53 = vpop.f32.mrb[117].mxu1  ;;  %v1590_v60 = vpop.f32.mrb[117].mxu0 }
 0x25a   :  { %v1142_v6 = vadd.f32 %v1141_v53, %v3113_v13  ;;  %v1591_v27 = vadd.f32 %v1590_v60, %v3115_v58 }
 0x25b   :  { %1887 = vst [vmem:[#allocation2 + $0x540] sm:$0xff] %v1140_v16  ;;  %1889 = vst [vmem:[#allocation2 + $0x550] sm:$0xff] %v1589_v26 }
 0x25c   :  { %1888 = vst [vmem:[#allocation2 + $0x548] sm:$0xff] %v1142_v6  ;;  %1890 = vst [vmem:[#allocation2 + $0x558] sm:$0xff] %v1591_v27  ;;  %v1145_v18 = vpop.f32.mrb[118].mxu1  ;;  %v1594_v59 = vpop.f32.mrb[118].mxu0 }
 0x25d   :  { %v1146_v2 = vadd.f32 %v1145_v18, %v3107_v0  ;;  %v1595_v35 = vadd.f32 %v1594_v59, %v3109_v8  ;;  %v1147_v34 = vpop.f32.mrb[119].mxu1  ;;  %v1596_v23 = vpop.f32.mrb[119].mxu0 }
 0x25e   :  { %v1148_v38 = vadd.f32 %v1147_v34, %v3113_v13  ;;  %v1597_v1 = vadd.f32 %v1596_v23, %v3115_v58 }
 0x25f   :  { %1891 = vst [vmem:[#allocation2 + $0x560] sm:$0xff] %v1146_v2  ;;  %1893 = vst [vmem:[#allocation2 + $0x570] sm:$0xff] %v1595_v35 }
 0x260   :  { %1892 = vst [vmem:[#allocation2 + $0x568] sm:$0xff] %v1148_v38  ;;  %1894 = vst [vmem:[#allocation2 + $0x578] sm:$0xff] %v1597_v1  ;;  %v1151_v12 = vpop.f32.mrb[120].mxu1  ;;  %v1600_v41 = vpop.f32.mrb[120].mxu0 }
 0x261   :  { %v1152_v5 = vadd.f32 %v1151_v12, %v3107_v0  ;;  %v1601_v24 = vadd.f32 %v1600_v41, %v3109_v8  ;;  %v1153_v11 = vpop.f32.mrb[121].mxu1  ;;  %v1602_v22 = vpop.f32.mrb[121].mxu0 }
 0x262   :  { %v1154_v29 = vadd.f32 %v1153_v11, %v3113_v13  ;;  %v1603_v20 = vadd.f32 %v1602_v22, %v3115_v58 }
 0x263   :  { %1895 = vst [vmem:[#allocation2 + $0x580] sm:$0xff] %v1152_v5  ;;  %1897 = vst [vmem:[#allocation2 + $0x590] sm:$0xff] %v1601_v24 }
 0x264   :  { %1896 = vst [vmem:[#allocation2 + $0x588] sm:$0xff] %v1154_v29  ;;  %1898 = vst [vmem:[#allocation2 + $0x598] sm:$0xff] %v1603_v20  ;;  %v1157_v44 = vpop.f32.mrb[122].mxu1  ;;  %v1606_v21 = vpop.f32.mrb[122].mxu0 }
 0x265   :  { %v1158_v32 = vadd.f32 %v1157_v44, %v3107_v0  ;;  %v1607_v49 = vadd.f32 %v1606_v21, %v3109_v8  ;;  %v1159_v28 = vpop.f32.mrb[123].mxu1  ;;  %v1608_v10 = vpop.f32.mrb[123].mxu0 }
 0x266   :  { %v1160_v31 = vadd.f32 %v1159_v28, %v3113_v13  ;;  %v1609_v37 = vadd.f32 %v1608_v10, %v3115_v58 }
 0x267   :  { %1899 = vst [vmem:[#allocation2 + $0x5a0] sm:$0xff] %v1158_v32  ;;  %1901 = vst [vmem:[#allocation2 + $0x5b0] sm:$0xff] %v1607_v49 }
 0x268   :  { %1900 = vst [vmem:[#allocation2 + $0x5a8] sm:$0xff] %v1160_v31  ;;  %1902 = vst [vmem:[#allocation2 + $0x5b8] sm:$0xff] %v1609_v37  ;;  %v1163_v40 = vpop.f32.mrb[124].mxu1  ;;  %v1612_v30 = vpop.f32.mrb[124].mxu0 }
 0x269   :  { %v1164_v39 = vadd.f32 %v1163_v40, %v3107_v0  ;;  %v1613_v52 = vadd.f32 %v1612_v30, %v3109_v8  ;;  %v1165_v57 = vpop.f32.mrb[125].mxu1  ;;  %v1614_v46 = vpop.f32.mrb[125].mxu0 }
 0x26a   :  { %v1166_v36 = vadd.f32 %v1165_v57, %v3113_v13  ;;  %v1615_v45 = vadd.f32 %v1614_v46, %v3115_v58 }
 0x26b   :  { %1903 = vst [vmem:[#allocation2 + $0x5c0] sm:$0xff] %v1164_v39  ;;  %1905 = vst [vmem:[#allocation2 + $0x5d0] sm:$0xff] %v1613_v52 }
 0x26c   :  { %1904 = vst [vmem:[#allocation2 + $0x5c8] sm:$0xff] %v1166_v36  ;;  %1906 = vst [vmem:[#allocation2 + $0x5d8] sm:$0xff] %v1615_v45  ;;  %v1169_v9 = vpop.f32.mrb[126].mxu1  ;;  %v1618_v43 = vpop.f32.mrb[126].mxu0 }
 0x26d   :  { %v1170_v62 = vadd.f32 %v1169_v9, %v3107_v0  ;;  %v1619_v25 = vadd.f32 %v1618_v43, %v3109_v8  ;;  %v1171_v3 = vpop.f32.mrb[127].mxu1  ;;  %v1620_v56 = vpop.f32.mrb[127].mxu0 }
 0x26e   :  { %v1172_v42 = vadd.f32 %v1171_v3, %v3113_v13  ;;  %v1621_v51 = vadd.f32 %v1620_v56, %v3115_v58 }
 0x26f   :  { %1907 = vst [vmem:[#allocation2 + $0x5e0] sm:$0xff] %v1170_v62  ;;  %1909 = vst [vmem:[#allocation2 + $0x5f0] sm:$0xff] %v1619_v25 }
 0x270   :  { %1908 = vst [vmem:[#allocation2 + $0x5e8] sm:$0xff] %v1172_v42  ;;  %1910 = vst [vmem:[#allocation2 + $0x5f8] sm:$0xff] %v1621_v51  ;;  %v1175_v55 = vpop.f32.mrb[128].mxu1  ;;  %v1624_v4 = vpop.f32.mrb[128].mxu0 }
 0x271   :  { %v1176_v7 = vadd.f32 %v1175_v55, %v3107_v0  ;;  %v1625_v14 = vadd.f32 %v1624_v4, %v3109_v8  ;;  %v1177_v33 = vpop.f32.mrb[129].mxu1  ;;  %v1626_v50 = vpop.f32.mrb[129].mxu0 }
 0x272   :  { %v1178_v61 = vadd.f32 %v1177_v33, %v3113_v13  ;;  %v1627_v48 = vadd.f32 %v1626_v50, %v3115_v58 }
 0x273   :  { %1911 = vst [vmem:[#allocation2 + $0x600] sm:$0xff] %v1176_v7  ;;  %1913 = vst [vmem:[#allocation2 + $0x610] sm:$0xff] %v1625_v14 }
 0x274   :  { %1912 = vst [vmem:[#allocation2 + $0x608] sm:$0xff] %v1178_v61  ;;  %1914 = vst [vmem:[#allocation2 + $0x618] sm:$0xff] %v1627_v48  ;;  %v1181_v15 = vpop.f32.mrb[130].mxu1  ;;  %v1630_v63 = vpop.f32.mrb[130].mxu0 }
 0x275   :  { %v1182_v17 = vadd.f32 %v1181_v15, %v3107_v0  ;;  %v1631_v47 = vadd.f32 %v1630_v63, %v3109_v8  ;;  %v1183_v54 = vpop.f32.mrb[131].mxu1  ;;  %v1632_v19 = vpop.f32.mrb[131].mxu0 }
 0x276   :  { %v1184_v16 = vadd.f32 %v1183_v54, %v3113_v13  ;;  %v1633_v26 = vadd.f32 %v1632_v19, %v3115_v58 }
 0x277   :  { %1915 = vst [vmem:[#allocation2 + $0x620] sm:$0xff] %v1182_v17  ;;  %1917 = vst [vmem:[#allocation2 + $0x630] sm:$0xff] %v1631_v47 }
 0x278   :  { %1916 = vst [vmem:[#allocation2 + $0x628] sm:$0xff] %v1184_v16  ;;  %1918 = vst [vmem:[#allocation2 + $0x638] sm:$0xff] %v1633_v26  ;;  %v1187_v53 = vpop.f32.mrb[132].mxu1  ;;  %v1636_v60 = vpop.f32.mrb[132].mxu0 }
 0x279   :  { %v1188_v6 = vadd.f32 %v1187_v53, %v3107_v0  ;;  %v1637_v27 = vadd.f32 %v1636_v60, %v3109_v8  ;;  %v1189_v18 = vpop.f32.mrb[133].mxu1  ;;  %v1638_v59 = vpop.f32.mrb[133].mxu0 }
 0x27a   :  { %v1190_v2 = vadd.f32 %v1189_v18, %v3113_v13  ;;  %v1639_v35 = vadd.f32 %v1638_v59, %v3115_v58 }
 0x27b   :  { %1919 = vst [vmem:[#allocation2 + $0x640] sm:$0xff] %v1188_v6  ;;  %1921 = vst [vmem:[#allocation2 + $0x650] sm:$0xff] %v1637_v27 }
 0x27c   :  { %1920 = vst [vmem:[#allocation2 + $0x648] sm:$0xff] %v1190_v2  ;;  %1922 = vst [vmem:[#allocation2 + $0x658] sm:$0xff] %v1639_v35  ;;  %v1193_v34 = vpop.f32.mrb[134].mxu1  ;;  %v1642_v23 = vpop.f32.mrb[134].mxu0 }
 0x27d   :  { %v1194_v38 = vadd.f32 %v1193_v34, %v3107_v0  ;;  %v1643_v1 = vadd.f32 %v1642_v23, %v3109_v8  ;;  %v1195_v12 = vpop.f32.mrb[135].mxu1  ;;  %v1644_v41 = vpop.f32.mrb[135].mxu0 }
 0x27e   :  { %v1196_v5 = vadd.f32 %v1195_v12, %v3113_v13  ;;  %v1645_v24 = vadd.f32 %v1644_v41, %v3115_v58 }
 0x27f   :  { %1923 = vst [vmem:[#allocation2 + $0x660] sm:$0xff] %v1194_v38  ;;  %1925 = vst [vmem:[#allocation2 + $0x670] sm:$0xff] %v1643_v1 }
 0x280   :  { %1924 = vst [vmem:[#allocation2 + $0x668] sm:$0xff] %v1196_v5  ;;  %1926 = vst [vmem:[#allocation2 + $0x678] sm:$0xff] %v1645_v24  ;;  %v1199_v11 = vpop.f32.mrb[136].mxu1  ;;  %v1648_v22 = vpop.f32.mrb[136].mxu0 }
 0x281   :  { %v1200_v29 = vadd.f32 %v1199_v11, %v3107_v0  ;;  %v1649_v20 = vadd.f32 %v1648_v22, %v3109_v8  ;;  %v1201_v44 = vpop.f32.mrb[137].mxu1  ;;  %v1650_v21 = vpop.f32.mrb[137].mxu0 }
 0x282   :  { %v1202_v32 = vadd.f32 %v1201_v44, %v3113_v13  ;;  %v1651_v49 = vadd.f32 %v1650_v21, %v3115_v58 }
 0x283   :  { %1927 = vst [vmem:[#allocation2 + $0x680] sm:$0xff] %v1200_v29  ;;  %1929 = vst [vmem:[#allocation2 + $0x690] sm:$0xff] %v1649_v20 }
 0x284   :  { %1928 = vst [vmem:[#allocation2 + $0x688] sm:$0xff] %v1202_v32  ;;  %1930 = vst [vmem:[#allocation2 + $0x698] sm:$0xff] %v1651_v49  ;;  %v1205_v28 = vpop.f32.mrb[138].mxu1  ;;  %v1654_v10 = vpop.f32.mrb[138].mxu0 }
 0x285   :  { %v1206_v31 = vadd.f32 %v1205_v28, %v3107_v0  ;;  %v1655_v37 = vadd.f32 %v1654_v10, %v3109_v8  ;;  %v1207_v40 = vpop.f32.mrb[139].mxu1  ;;  %v1656_v30 = vpop.f32.mrb[139].mxu0 }
 0x286   :  { %v1208_v39 = vadd.f32 %v1207_v40, %v3113_v13  ;;  %v1657_v52 = vadd.f32 %v1656_v30, %v3115_v58 }
 0x287   :  { %1931 = vst [vmem:[#allocation2 + $0x6a0] sm:$0xff] %v1206_v31  ;;  %1933 = vst [vmem:[#allocation2 + $0x6b0] sm:$0xff] %v1655_v37 }
 0x288   :  { %1932 = vst [vmem:[#allocation2 + $0x6a8] sm:$0xff] %v1208_v39  ;;  %1934 = vst [vmem:[#allocation2 + $0x6b8] sm:$0xff] %v1657_v52  ;;  %v1211_v57 = vpop.f32.mrb[140].mxu1  ;;  %v1660_v46 = vpop.f32.mrb[140].mxu0 }
 0x289   :  { %v1212_v36 = vadd.f32 %v1211_v57, %v3107_v0  ;;  %v1661_v45 = vadd.f32 %v1660_v46, %v3109_v8  ;;  %v1213_v9 = vpop.f32.mrb[141].mxu1  ;;  %v1662_v43 = vpop.f32.mrb[141].mxu0 }
 0x28a   :  { %v1214_v62 = vadd.f32 %v1213_v9, %v3113_v13  ;;  %v1663_v25 = vadd.f32 %v1662_v43, %v3115_v58 }
 0x28b   :  { %1935 = vst [vmem:[#allocation2 + $0x6c0] sm:$0xff] %v1212_v36  ;;  %1937 = vst [vmem:[#allocation2 + $0x6d0] sm:$0xff] %v1661_v45 }
 0x28c   :  { %1936 = vst [vmem:[#allocation2 + $0x6c8] sm:$0xff] %v1214_v62  ;;  %1938 = vst [vmem:[#allocation2 + $0x6d8] sm:$0xff] %v1663_v25  ;;  %v1217_v3 = vpop.f32.mrb[142].mxu1  ;;  %v1666_v56 = vpop.f32.mrb[142].mxu0 }
 0x28d   :  { %v1218_v42 = vadd.f32 %v1217_v3, %v3107_v0  ;;  %v1667_v51 = vadd.f32 %v1666_v56, %v3109_v8  ;;  %v1219_v55 = vpop.f32.mrb[143].mxu1  ;;  %v1668_v4 = vpop.f32.mrb[143].mxu0 }
 0x28e   :  { %v1220_v7 = vadd.f32 %v1219_v55, %v3113_v13  ;;  %v1669_v14 = vadd.f32 %v1668_v4, %v3115_v58 }
 0x28f   :  { %1939 = vst [vmem:[#allocation2 + $0x6e0] sm:$0xff] %v1218_v42  ;;  %1941 = vst [vmem:[#allocation2 + $0x6f0] sm:$0xff] %v1667_v51 }
 0x290   :  { %1940 = vst [vmem:[#allocation2 + $0x6e8] sm:$0xff] %v1220_v7  ;;  %1942 = vst [vmem:[#allocation2 + $0x6f8] sm:$0xff] %v1669_v14  ;;  %v1223_v33 = vpop.f32.mrb[144].mxu1  ;;  %v1672_v50 = vpop.f32.mrb[144].mxu0 }
 0x291   :  { %v1224_v61 = vadd.f32 %v1223_v33, %v3107_v0  ;;  %v1673_v48 = vadd.f32 %v1672_v50, %v3109_v8  ;;  %v1225_v15 = vpop.f32.mrb[145].mxu1  ;;  %v1674_v63 = vpop.f32.mrb[145].mxu0 }
 0x292   :  { %v1226_v17 = vadd.f32 %v1225_v15, %v3113_v13  ;;  %v1675_v47 = vadd.f32 %v1674_v63, %v3115_v58 }
 0x293   :  { %1943 = vst [vmem:[#allocation2 + $0x700] sm:$0xff] %v1224_v61  ;;  %1945 = vst [vmem:[#allocation2 + $0x710] sm:$0xff] %v1673_v48 }
 0x294   :  { %1944 = vst [vmem:[#allocation2 + $0x708] sm:$0xff] %v1226_v17  ;;  %1946 = vst [vmem:[#allocation2 + $0x718] sm:$0xff] %v1675_v47  ;;  %v1229_v54 = vpop.f32.mrb[146].mxu1  ;;  %v1678_v19 = vpop.f32.mrb[146].mxu0 }
 0x295   :  { %v1230_v16 = vadd.f32 %v1229_v54, %v3107_v0  ;;  %v1679_v26 = vadd.f32 %v1678_v19, %v3109_v8  ;;  %v1231_v53 = vpop.f32.mrb[147].mxu1  ;;  %v1680_v60 = vpop.f32.mrb[147].mxu0 }
 0x296   :  { %v1232_v6 = vadd.f32 %v1231_v53, %v3113_v13  ;;  %v1681_v27 = vadd.f32 %v1680_v60, %v3115_v58 }
 0x297   :  { %1947 = vst [vmem:[#allocation2 + $0x720] sm:$0xff] %v1230_v16  ;;  %1949 = vst [vmem:[#allocation2 + $0x730] sm:$0xff] %v1679_v26 }
 0x298   :  { %1948 = vst [vmem:[#allocation2 + $0x728] sm:$0xff] %v1232_v6  ;;  %1950 = vst [vmem:[#allocation2 + $0x738] sm:$0xff] %v1681_v27  ;;  %v1235_v18 = vpop.f32.mrb[148].mxu1  ;;  %v1684_v59 = vpop.f32.mrb[148].mxu0 }
 0x299   :  { %v1236_v2 = vadd.f32 %v1235_v18, %v3107_v0  ;;  %v1685_v35 = vadd.f32 %v1684_v59, %v3109_v8  ;;  %v1237_v34 = vpop.f32.mrb[149].mxu1  ;;  %v1686_v23 = vpop.f32.mrb[149].mxu0 }
 0x29a   :  { %v1238_v38 = vadd.f32 %v1237_v34, %v3113_v13  ;;  %v1687_v1 = vadd.f32 %v1686_v23, %v3115_v58 }
 0x29b   :  { %1951 = vst [vmem:[#allocation2 + $0x740] sm:$0xff] %v1236_v2  ;;  %1953 = vst [vmem:[#allocation2 + $0x750] sm:$0xff] %v1685_v35 }
 0x29c   :  { %1952 = vst [vmem:[#allocation2 + $0x748] sm:$0xff] %v1238_v38  ;;  %1954 = vst [vmem:[#allocation2 + $0x758] sm:$0xff] %v1687_v1  ;;  %v1241_v12 = vpop.f32.mrb[150].mxu1  ;;  %v1690_v41 = vpop.f32.mrb[150].mxu0 }
 0x29d   :  { %v1242_v5 = vadd.f32 %v1241_v12, %v3107_v0  ;;  %v1691_v24 = vadd.f32 %v1690_v41, %v3109_v8  ;;  %v1243_v11 = vpop.f32.mrb[151].mxu1  ;;  %v1692_v22 = vpop.f32.mrb[151].mxu0 }
 0x29e   :  { %v1244_v29 = vadd.f32 %v1243_v11, %v3113_v13  ;;  %v1693_v20 = vadd.f32 %v1692_v22, %v3115_v58 }
 0x29f   :  { %1955 = vst [vmem:[#allocation2 + $0x760] sm:$0xff] %v1242_v5  ;;  %1957 = vst [vmem:[#allocation2 + $0x770] sm:$0xff] %v1691_v24 }
 0x2a0   :  { %1956 = vst [vmem:[#allocation2 + $0x768] sm:$0xff] %v1244_v29  ;;  %1958 = vst [vmem:[#allocation2 + $0x778] sm:$0xff] %v1693_v20  ;;  %v1247_v44 = vpop.f32.mrb[152].mxu1  ;;  %v1696_v21 = vpop.f32.mrb[152].mxu0 }
 0x2a1   :  { %v1248_v32 = vadd.f32 %v1247_v44, %v3107_v0  ;;  %v1697_v49 = vadd.f32 %v1696_v21, %v3109_v8  ;;  %v1249_v28 = vpop.f32.mrb[153].mxu1  ;;  %v1698_v10 = vpop.f32.mrb[153].mxu0 }
 0x2a2   :  { %v1250_v31 = vadd.f32 %v1249_v28, %v3113_v13  ;;  %v1699_v37 = vadd.f32 %v1698_v10, %v3115_v58 }
 0x2a3   :  { %1959 = vst [vmem:[#allocation2 + $0x780] sm:$0xff] %v1248_v32  ;;  %1961 = vst [vmem:[#allocation2 + $0x790] sm:$0xff] %v1697_v49 }
 0x2a4   :  { %1960 = vst [vmem:[#allocation2 + $0x788] sm:$0xff] %v1250_v31  ;;  %1962 = vst [vmem:[#allocation2 + $0x798] sm:$0xff] %v1699_v37  ;;  %v1253_v40 = vpop.f32.mrb[154].mxu1  ;;  %v1702_v30 = vpop.f32.mrb[154].mxu0 }
 0x2a5   :  { %v1254_v39 = vadd.f32 %v1253_v40, %v3107_v0  ;;  %v1703_v52 = vadd.f32 %v1702_v30, %v3109_v8  ;;  %v1255_v57 = vpop.f32.mrb[155].mxu1  ;;  %v1704_v46 = vpop.f32.mrb[155].mxu0 }
 0x2a6   :  { %v1256_v36 = vadd.f32 %v1255_v57, %v3113_v13  ;;  %v1705_v45 = vadd.f32 %v1704_v46, %v3115_v58 }
 0x2a7   :  { %1963 = vst [vmem:[#allocation2 + $0x7a0] sm:$0xff] %v1254_v39  ;;  %1965 = vst [vmem:[#allocation2 + $0x7b0] sm:$0xff] %v1703_v52 }
 0x2a8   :  { %1964 = vst [vmem:[#allocation2 + $0x7a8] sm:$0xff] %v1256_v36  ;;  %1966 = vst [vmem:[#allocation2 + $0x7b8] sm:$0xff] %v1705_v45  ;;  %v1259_v9 = vpop.f32.mrb[156].mxu1  ;;  %v1708_v43 = vpop.f32.mrb[156].mxu0 }
 0x2a9   :  { %v1260_v62 = vadd.f32 %v1259_v9, %v3107_v0  ;;  %v1709_v25 = vadd.f32 %v1708_v43, %v3109_v8  ;;  %v1261_v3 = vpop.f32.mrb[157].mxu1  ;;  %v1710_v56 = vpop.f32.mrb[157].mxu0 }
 0x2aa   :  { %v1262_v42 = vadd.f32 %v1261_v3, %v3113_v13  ;;  %v1711_v51 = vadd.f32 %v1710_v56, %v3115_v58 }
 0x2ab   :  { %1967 = vst [vmem:[#allocation2 + $0x7c0] sm:$0xff] %v1260_v62  ;;  %1969 = vst [vmem:[#allocation2 + $0x7d0] sm:$0xff] %v1709_v25 }
 0x2ac   :  { %1968 = vst [vmem:[#allocation2 + $0x7c8] sm:$0xff] %v1262_v42  ;;  %1970 = vst [vmem:[#allocation2 + $0x7d8] sm:$0xff] %v1711_v51  ;;  %v1265_v55 = vpop.f32.mrb[158].mxu1  ;;  %v1714_v4 = vpop.f32.mrb[158].mxu0 }
 0x2ad   :  { %v1266_v7 = vadd.f32 %v1265_v55, %v3107_v0  ;;  %v1715_v14 = vadd.f32 %v1714_v4, %v3109_v8  ;;  %v1267_v33 = vpop.f32.mrb[159].mxu1  ;;  %v1716_v50 = vpop.f32.mrb[159].mxu0 }
 0x2ae   :  { %v1268_v61 = vadd.f32 %v1267_v33, %v3113_v13  ;;  %v1717_v48 = vadd.f32 %v1716_v50, %v3115_v58 }
 0x2af   :  { %1971 = vst [vmem:[#allocation2 + $0x7e0] sm:$0xff] %v1266_v7  ;;  %1973 = vst [vmem:[#allocation2 + $0x7f0] sm:$0xff] %v1715_v14 }
 0x2b0   :  { %1972 = vst [vmem:[#allocation2 + $0x7e8] sm:$0xff] %v1268_v61  ;;  %1974 = vst [vmem:[#allocation2 + $0x7f8] sm:$0xff] %v1717_v48 }
 0x2b1   :  { %2301 = shalt.err (!%p2298_p4)
}
 0x2b2   :  { %s2302_s22 = scalar_lea.hbm %s3430_s5, 32768 }
 0x2b3   :  { %p2303_p5 = scmp.ne.s32.totalorder %s3430_s5, %s2302_s22  ;;  %p2306_p6 = scmp.lt.u32.totalorder %s2302_s22, %s3430_s5 }
 0x2b5   :  { %p2308_p7 = pnand %p2306_p6, %p2303_p5 }
 0x2b7   :  { %2311 = shalt.err (!%p2308_p7)
}
 0x2b8   :  { %s2316_s26 = smov 512   ;;  %s2317_s3 = smov 32  }
 0x2b9   :  { %1986 = dma.vmem_to_hbm [thread:$0]  %s1981_s18, 32768, %s3430_s5, [#allocation3], %s2316_s26, %s2316_s26, %s2317_s3  }
 0x2ba   :  { %2312 = dma.done.wait [#allocation3], 32768  }
 0x2bb   :  { %2313 = vsyncadd [#allocation3], 4294934528 }
 0x2bc   :  { %1990 = vsyncpa [#allocation3], 1 }

// kernel: tpu_custom_call.1
= control target key start
LH: loop header
LB: loop body
LE: loop exit
PB: predicated region body
PF: predicated region fallthrough
CT: control target
= control target key end

     0   :  { %vm93_vm0 = vcmask 64512   ;;  %s3425_s0 = inlined_call_operand.vmem [shape: f32[512,8], index: 0, kind: input, shape index: {}]   ;;  %s3426_s1 = inlined_call_operand.vmem [shape: f32[8,128], index: 1, kind: input, shape index: {}]   ;;  %s3427_s2 = inlined_call_operand.vmem [shape: f32[1,128], index: 2, kind: input, shape index: {}]   ;;  %s3428_s3 = inlined_call_operand.vmem [shape: f32[128,512], index: 3, kind: input, shape index: {}]   ;;  %s3429_s4 = inlined_call_operand.vmem [shape: f32[1,512], index: 4, kind: input, shape index: {}]   ;;  %s3430_s5 = inlined_call_operand.hbm [shape: f32[512,512], index: 5, kind: output, shape index: {}]  }
   0x1   :  { %v85_v0 = vld [vmem:[%s3426_s1] sm:$0xff]  ;;  %v22_v2 = vld [vmem:[%s3425_s0 + $0x8] sm:$0xff]  ;;  %v23_v3 = vld [vmem:[%s3425_s0 + $0x10] sm:$0xff] }
   0x2   :  { %v21_v1 = vld [vmem:[%s3425_s0] sm:$0xff]  ;;  %2121 = vmatprep.subr.mxu0 %v85_v0  ;;  %2283 = vmatprep.subr.mxu1 %v85_v0  ;;  %v24_v4 = vld [vmem:[%s3425_s0 + $0x18] sm:$0xff]  ;;  %v26_v6 = vld [vmem:[%s3425_s0 + $0x28] sm:$0xff] }
   0x3   :  { %2123 = vmatprep.mubr.msk.f32.mxu0 %vm93_vm0, %v21_v1  ;;  %2122 = vmatpush3.msra.mxu0 %v85_v0  ;;  %v25_v5 = vld [vmem:[%s3425_s0 + $0x20] sm:$0xff]  ;;  %v27_v7 = vld [vmem:[%s3425_s0 + $0x30] sm:$0xff]  ;;  %v54_v9 = vld [vmem:[%s3425_s0 + $0x108] sm:$0xff] }
   0x4   :  { %2124 = vmatmul.mubr.msk.f32.vlgmr.msra.gmra.mrb[0].mxu0 %vm93_vm0, %v22_v2  ;;  %2284 = vmatpush3.msra.mxu1 %v85_v0  ;;  %v53_v8 = vld [vmem:[%s3425_s0 + $0x100] sm:$0xff]  ;;  %v55_v10 = vld [vmem:[%s3425_s0 + $0x110] sm:$0xff]  ;;  %v28_v11 = vld [vmem:[%s3425_s0 + $0x38] sm:$0xff] }
   0x5   :  { %2126 = vmatprep.mubr.msk.f32.mxu0 %vm93_vm0, %v23_v3  ;;  %v29_v12 = vld [vmem:[%s3425_s0 + $0x40] sm:$0xff]  ;;  %2171 = vmatprep.mubr.msk.f32.mxu1 %vm93_vm0, %v53_v8  ;;  %v56_v13 = vld [vmem:[%s3425_s0 + $0x118] sm:$0xff]  ;;  %v736_v15 = vld [vmem:[%s3428_s3 + $0x8] sm:$0xff] }
   0x6   :  { %2172 = vmatmul.mubr.msk.f32.vlgmr.msra.gmra.mrb[0].mxu1 %vm93_vm0, %v54_v9  ;;  %v57_v14 = vld [vmem:[%s3425_s0 + $0x120] sm:$0xff]  ;;  %v30_v16 = vld [vmem:[%s3425_s0 + $0x48] sm:$0xff]  ;;  %v738_v18 = vld [vmem:[%s3428_s3 + $0x18] sm:$0xff] }
   0x7   :  { %2174 = vmatprep.mubr.msk.f32.mxu1 %vm93_vm0, %v55_v10  ;;  %v740_v17 = vld [vmem:[%s3428_s3 + $0x28] sm:$0xff]  ;;  %v742_v19 = vld [vmem:[%s3428_s3 + $0x38] sm:$0xff]  ;;  %v735_v22 = vld [vmem:[%s3428_s3] sm:$0xff] }
   0x8   :  { %2127 = vmatmul.mubr.msk.f32.gmra.mrb[2].mxu0 %vm93_vm0, %v24_v4  ;;  %v2219_v20 = vpack.c.bf16 %v740_v17, %v736_v15  ;;  %v2251_v21 = vpack.c.bf16 %v742_v19, %v738_v18  ;;  %v739_v23 = vld [vmem:[%s3428_s3 + $0x20] sm:$0xff]  ;;  %v737_v24 = vld [vmem:[%s3428_s3 + $0x10] sm:$0xff]  ;;  %v58_v26 = vld [vmem:[%s3425_s0 + $0x128] sm:$0xff] }
   0x9   :  { %2129 = vmatprep.mubr.msk.f32.mxu0 %vm93_vm0, %v25_v5  ;;  %v31_v25 = vld [vmem:[%s3425_s0 + $0x50] sm:$0xff]  ;;  %v2221_v27 = vpack.c.bf16 %v739_v23, %v735_v22  ;;  %v744_v30 = vld [vmem:[%s3428_s3 + $0x48] sm:$0xff]  ;;  %v746_v32 = vld [vmem:[%s3428_s3 + $0x58] sm:$0xff] }
   0xa   :  { %v741_v28 = vld [vmem:[%s3428_s3 + $0x30] sm:$0xff]  ;;  %2175 = vmatmul.mubr.msk.f32.gmra.mrb[2].mxu1 %vm93_vm0, %v56_v13  ;;  %2220 = vmatprep.subr.bf16.mxu1 %v2219_v20  ;;  %v748_v31 = vld [vmem:[%s3428_s3 + $0x68] sm:$0xff]  ;;  %v32_v33 = vld [vmem:[%s3425_s0 + $0x58] sm:$0xff] }
   0xb   :  { %v2253_v29 = vpack.c.bf16 %v741_v28, %v737_v24  ;;  %2177 = vmatprep.mubr.msk.f32.mxu1 %vm93_vm0, %v57_v14  ;;  %2252 = vmatprep.subr.bf16.mxu0 %v2251_v21  ;;  %v2223_v34 = vpack.c.bf16 %v748_v31, %v744_v30  ;;  %v750_v35 = vld [vmem:[%s3428_s3 + $0x78] sm:$0xff]  ;;  %v743_v36 = vld [vmem:[%s3428_s3 + $0x40] sm:$0xff]  ;;  %v59_v39 = vld [vmem:[%s3425_s0 + $0x130] sm:$0xff] }
   0xc   :  { %2130 = vmatmul.mubr.msk.f32.gmra.mrb[4].mxu0 %vm93_vm0, %v26_v6  ;;  %v747_v37 = vld [vmem:[%s3428_s3 + $0x60] sm:$0xff]  ;;  %2222 = vmatpush1.bf16.msra.mxu1 %v2221_v27  ;;  %v2255_v40 = vpack.c.bf16 %v750_v35, %v746_v32  ;;  %v745_v42 = vld [vmem:[%s3428_s3 + $0x50] sm:$0xff]  ;;  %v60_v44 = vld [vmem:[%s3425_s0 + $0x138] sm:$0xff] }
   0xd   :  { %2132 = vmatprep.mubr.msk.f32.mxu0 %vm93_vm0, %v27_v7  ;;  %v33_v38 = vld [vmem:[%s3425_s0 + $0x60] sm:$0xff]  ;;  %v2225_v41 = vpack.c.bf16 %v747_v37, %v743_v36  ;;  %v749_v43 = vld [vmem:[%s3428_s3 + $0x70] sm:$0xff]  ;;  %2254 = vmatpush1.bf16.msra.mxu0 %v2253_v29  ;;  %v752_v46 = vld [vmem:[%s3428_s3 + $0x88] sm:$0xff] }
   0xe   :  { %v2257_v45 = vpack.c.bf16 %v749_v43, %v745_v42  ;;  %v756_v47 = vld [vmem:[%s3428_s3 + $0xa8] sm:$0xff]  ;;  %2178 = vmatmul.mubr.msk.f32.gmra.mrb[4].mxu1 %vm93_vm0, %v58_v26  ;;  %2224 = vmatprep.subr.bf16.mxu1 %v2223_v34  ;;  %v754_v49 = vld [vmem:[%s3428_s3 + $0x98] sm:$0xff]  ;;  %v751_v51 = vld [vmem:[%s3428_s3 + $0x80] sm:$0xff] }
   0xf   :  { %v2227_v48 = vpack.c.bf16 %v756_v47, %v752_v46  ;;  %v758_v50 = vld [vmem:[%s3428_s3 + $0xb8] sm:$0xff]  ;;  %v34_v52 = vld [vmem:[%s3425_s0 + $0x68] sm:$0xff]  ;;  %2180 = vmatprep.mubr.msk.f32.mxu1 %vm93_vm0, %v59_v39  ;;  %2256 = vmatprep.subr.bf16.mxu0 %v2255_v40  ;;  %v755_v54 = vld [vmem:[%s3428_s3 + $0xa0] sm:$0xff] }
  0x10   :  { %2133 = vmatmul.mubr.msk.f32.gmra.mrb[6].mxu0 %vm93_vm0, %v28_v11  ;;  %v2259_v53 = vpack.c.bf16 %v758_v50, %v754_v49  ;;  %v753_v55 = vld [vmem:[%s3428_s3 + $0x90] sm:$0xff]  ;;  %v61_v58 = vld [vmem:[%s3425_s0 + $0x140] sm:$0xff]  ;;  %2226 = vmatpush1.bf16.msra.mxu1 %v2225_v41  ;;  %v2229_v59 = vpack.c.bf16 %v755_v54, %v751_v51  ;;  %v760_v60 = vld [vmem:[%s3428_s3 + $0xc8] sm:$0xff] }
  0x11   :  { %2135 = vmatprep.mubr.msk.f32.mxu0 %vm93_vm0, %v29_v12  ;;  %v757_v56 = vld [vmem:[%s3428_s3 + $0xb0] sm:$0xff]  ;;  %2258 = vmatpush1.bf16.msra.mxu0 %v2257_v45  ;;  %v764_v62 = vld [vmem:[%s3428_s3 + $0xe8] sm:$0xff]  ;;  %v762_v63 = vld [vmem:[%s3428_s3 + $0xd8] sm:$0xff] }
  0x12   :  { %v35_v57 = vld [vmem:[%s3425_s0 + $0x70] sm:$0xff]  ;;  %v2261_v61 = vpack.c.bf16 %v757_v56, %v753_v55  ;;  %v766_v0 = vld [vmem:[%s3428_s3 + $0xf8] sm:$0xff]  ;;  %2181 = vmatmul.mubr.msk.f32.gmra.mrb[6].mxu1 %vm93_vm0, %v60_v44  ;;  %2228 = vmatprep.subr.bf16.mxu1 %v2227_v48  ;;  %v2231_v1 = vpack.c.bf16 %v764_v62, %v760_v60  ;;  %v759_v2 = vld [vmem:[%s3428_s3 + $0xc0] sm:$0xff] }
  0x13   :  { %v763_v3 = vld [vmem:[%s3428_s3 + $0xe0] sm:$0xff]  ;;  %v761_v4 = vld [vmem:[%s3428_s3 + $0xd0] sm:$0xff]  ;;  %v36_v5 = vld [vmem:[%s3425_s0 + $0x78] sm:$0xff]  ;;  %2183 = vmatprep.mubr.msk.f32.mxu1 %vm93_vm0, %v61_v58  ;;  %2260 = vmatprep.subr.bf16.mxu0 %v2259_v53  ;;  %v2263_v7 = vpack.c.bf16 %v766_v0, %v762_v63 }
  0x14   :  { %2136 = vmatmul.mubr.msk.f32.gmra.mrb[8].mxu0 %vm93_vm0, %v30_v16  ;;  %v62_v6 = vld [vmem:[%s3425_s0 + $0x148] sm:$0xff]  ;;  %v765_v8 = vld [vmem:[%s3428_s3 + $0xf0] sm:$0xff]  ;;  %v37_v9 = vld [vmem:[%s3425_s0 + $0x80] sm:$0xff]  ;;  %2230 = vmatpush1.bf16.msra.mxu1 %v2229_v59  ;;  %v2233_v11 = vpack.c.bf16 %v763_v3, %v759_v2 }
  0x15   :  { %2138 = vmatprep.mubr.msk.f32.mxu0 %vm93_vm0, %v31_v25  ;;  %v63_v10 = vld [vmem:[%s3425_s0 + $0x150] sm:$0xff]  ;;  %v768_v12 = vld [vmem:[%s3428_s3 + $0x108] sm:$0xff]  ;;  %2262 = vmatpush1.bf16.msra.mxu0 %v2261_v61  ;;  %v2265_v13 = vpack.c.bf16 %v765_v8, %v761_v4  ;;  %v770_v15 = vld [vmem:[%s3428_s3 + $0x118] sm:$0xff] }
  0x16   :  { %v772_v14 = vld [vmem:[%s3428_s3 + $0x128] sm:$0xff]  ;;  %v774_v16 = vld [vmem:[%s3428_s3 + $0x138] sm:$0xff]  ;;  %2184 = vmatmul.mubr.msk.f32.gmra.mrb[8].mxu1 %vm93_vm0, %v62_v6  ;;  %2232 = vmatprep.subr.bf16.mxu1 %v2231_v1  ;;  %v767_v18 = vld [vmem:[%s3428_s3 + $0x100] sm:$0xff] }
  0x17   :  { %v2235_v17 = vpack.c.bf16 %v772_v14, %v768_v12  ;;  %v771_v19 = vld [vmem:[%s3428_s3 + $0x120] sm:$0xff]  ;;  %v769_v20 = vld [vmem:[%s3428_s3 + $0x110] sm:$0xff]  ;;  %v38_v21 = vld [vmem:[%s3425_s0 + $0x88] sm:$0xff]  ;;  %2186 = vmatprep.mubr.msk.f32.mxu1 %vm93_vm0, %v63_v10  ;;  %2264 = vmatprep.subr.bf16.mxu0 %v2263_v7  ;;  %v2267_v23 = vpack.c.bf16 %v774_v16, %v770_v15 }
  0x18   :  { %2139 = vmatmul.mubr.msk.f32.gmra.mrb[10].mxu0 %vm93_vm0, %v32_v33  ;;  %v64_v22 = vld [vmem:[%s3425_s0 + $0x158] sm:$0xff]  ;;  %v773_v24 = vld [vmem:[%s3428_s3 + $0x130] sm:$0xff]  ;;  %v65_v26 = vld [vmem:[%s3425_s0 + $0x160] sm:$0xff]  ;;  %2234 = vmatpush1.bf16.msra.mxu1 %v2233_v11  ;;  %v2237_v27 = vpack.c.bf16 %v771_v19, %v767_v18 }
  0x19   :  { %2141 = vmatprep.mubr.msk.f32.mxu0 %vm93_vm0, %v33_v38  ;;  %v39_v25 = vld [vmem:[%s3425_s0 + $0x90] sm:$0xff]  ;;  %v776_v28 = vld [vmem:[%s3428_s3 + $0x148] sm:$0xff]  ;;  %2266 = vmatpush1.bf16.msra.mxu0 %v2265_v13  ;;  %v2269_v29 = vpack.c.bf16 %v773_v24, %v769_v20  ;;  %v778_v31 = vld [vmem:[%s3428_s3 + $0x158] sm:$0xff] }
  0x1a   :  { %v780_v30 = vld [vmem:[%s3428_s3 + $0x168] sm:$0xff]  ;;  %v782_v32 = vld [vmem:[%s3428_s3 + $0x178] sm:$0xff]  ;;  %2187 = vmatmul.mubr.msk.f32.gmra.mrb[10].mxu1 %vm93_vm0, %v64_v22  ;;  %2236 = vmatprep.subr.bf16.mxu1 %v2235_v17  ;;  %v775_v34 = vld [vmem:[%s3428_s3 + $0x140] sm:$0xff] }
  0x1b   :  { %v2239_v33 = vpack.c.bf16 %v780_v30, %v776_v28  ;;  %v779_v35 = vld [vmem:[%s3428_s3 + $0x160] sm:$0xff]  ;;  %v777_v36 = vld [vmem:[%s3428_s3 + $0x150] sm:$0xff]  ;;  %v40_v37 = vld [vmem:[%s3425_s0 + $0x98] sm:$0xff]  ;;  %2189 = vmatprep.mubr.msk.f32.mxu1 %vm93_vm0, %v65_v26  ;;  %2268 = vmatprep.subr.bf16.mxu0 %v2267_v23  ;;  %v2271_v39 = vpack.c.bf16 %v782_v32, %v778_v31 }
  0x1c   :  { %2142 = vmatmul.mubr.msk.f32.gmra.mrb[12].mxu0 %vm93_vm0, %v34_v52  ;;  %v66_v38 = vld [vmem:[%s3425_s0 + $0x168] sm:$0xff]  ;;  %v781_v40 = vld [vmem:[%s3428_s3 + $0x170] sm:$0xff]  ;;  %v41_v41 = vld [vmem:[%s3425_s0 + $0xa0] sm:$0xff]  ;;  %2238 = vmatpush1.bf16.msra.mxu1 %v2237_v27  ;;  %v2241_v43 = vpack.c.bf16 %v779_v35, %v775_v34 }
  0x1d   :  { %2144 = vmatprep.mubr.msk.f32.mxu0 %vm93_vm0, %v35_v57  ;;  %v67_v42 = vld [vmem:[%s3425_s0 + $0x170] sm:$0xff]  ;;  %v784_v44 = vld [vmem:[%s3428_s3 + $0x188] sm:$0xff]  ;;  %2270 = vmatpush1.bf16.msra.mxu0 %v2269_v29  ;;  %v2273_v45 = vpack.c.bf16 %v781_v40, %v777_v36  ;;  %v786_v47 = vld [vmem:[%s3428_s3 + $0x198] sm:$0xff] }
  0x1e   :  { %v788_v46 = vld [vmem:[%s3428_s3 + $0x1a8] sm:$0xff]  ;;  %v790_v48 = vld [vmem:[%s3428_s3 + $0x1b8] sm:$0xff]  ;;  %2190 = vmatmul.mubr.msk.f32.gmra.mrb[12].mxu1 %vm93_vm0, %v66_v38  ;;  %2240 = vmatprep.subr.bf16.mxu1 %v2239_v33  ;;  %v783_v50 = vld [vmem:[%s3428_s3 + $0x180] sm:$0xff] }
  0x1f   :  { %v2243_v49 = vpack.c.bf16 %v788_v46, %v784_v44  ;;  %v787_v51 = vld [vmem:[%s3428_s3 + $0x1a0] sm:$0xff]  ;;  %v785_v52 = vld [vmem:[%s3428_s3 + $0x190] sm:$0xff]  ;;  %v42_v53 = vld [vmem:[%s3425_s0 + $0xa8] sm:$0xff]  ;;  %2192 = vmatprep.mubr.msk.f32.mxu1 %vm93_vm0, %v67_v42  ;;  %2272 = vmatprep.subr.bf16.mxu0 %v2271_v39  ;;  %v2275_v55 = vpack.c.bf16 %v790_v48, %v786_v47 }
  0x20   :  { %2145 = vmatmul.mubr.msk.f32.gmra.mrb[14].mxu0 %vm93_vm0, %v36_v5  ;;  %v68_v54 = vld [vmem:[%s3425_s0 + $0x178] sm:$0xff]  ;;  %v789_v56 = vld [vmem:[%s3428_s3 + $0x1b0] sm:$0xff]  ;;  %v69_v58 = vld [vmem:[%s3425_s0 + $0x180] sm:$0xff]  ;;  %2242 = vmatpush1.bf16.msra.mxu1 %v2241_v43  ;;  %v2245_v59 = vpack.c.bf16 %v787_v51, %v783_v50 }
  0x21   :  { %2147 = vmatprep.mubr.msk.f32.mxu0 %vm93_vm0, %v37_v9  ;;  %v43_v57 = vld [vmem:[%s3425_s0 + $0xb0] sm:$0xff]  ;;  %v792_v60 = vld [vmem:[%s3428_s3 + $0x1c8] sm:$0xff]  ;;  %2274 = vmatpush1.bf16.msra.mxu0 %v2273_v45  ;;  %v2277_v61 = vpack.c.bf16 %v789_v56, %v785_v52  ;;  %v794_v63 = vld [vmem:[%s3428_s3 + $0x1d8] sm:$0xff] }
  0x22   :  { %v796_v62 = vld [vmem:[%s3428_s3 + $0x1e8] sm:$0xff]  ;;  %v798_v0 = vld [vmem:[%s3428_s3 + $0x1f8] sm:$0xff]  ;;  %2193 = vmatmul.mubr.msk.f32.gmra.mrb[14].mxu1 %vm93_vm0, %v68_v54  ;;  %2244 = vmatprep.subr.bf16.mxu1 %v2243_v49  ;;  %v791_v2 = vld [vmem:[%s3428_s3 + $0x1c0] sm:$0xff] }
  0x23   :  { %v2247_v1 = vpack.c.bf16 %v796_v62, %v792_v60  ;;  %v795_v3 = vld [vmem:[%s3428_s3 + $0x1e0] sm:$0xff]  ;;  %v793_v4 = vld [vmem:[%s3428_s3 + $0x1d0] sm:$0xff]  ;;  %2195 = vmatprep.mubr.msk.f32.mxu1 %vm93_vm0, %v69_v58  ;;  %v70_v5 = vld [vmem:[%s3425_s0 + $0x188] sm:$0xff]  ;;  %2276 = vmatprep.subr.bf16.mxu0 %v2275_v55  ;;  %v2279_v6 = vpack.c.bf16 %v798_v0, %v794_v63 }
  0x24   :  { %2148 = vmatmul.mubr.msk.f32.gmra.mrb[16].mxu0 %vm93_vm0, %v38_v21  ;;  %v797_v7 = vld [vmem:[%s3428_s3 + $0x1f0] sm:$0xff] }
  0x25   :  { %2150 = vmatprep.mubr.msk.f32.mxu0 %vm93_vm0, %v39_v25 }
  0x28   :  { %2151 = vmatmul.mubr.msk.f32.gmra.mrb[18].mxu0 %vm93_vm0, %v40_v37 }
  0x29   :  { %2153 = vmatprep.mubr.msk.f32.mxu0 %vm93_vm0, %v41_v41 }
  0x2a   :  { %10 = vsyncpa [#allocation3], 0  ;;  %v71_v8 = vld [vmem:[%s3425_s0 + $0x190] sm:$0xff]  ;;  %2246 = vmatpush1.bf16.msra.mxu1 %v2245_v59  ;;  %v2249_v9 = vpack.c.bf16 %v795_v3, %v791_v2  ;;  %v44_v10 = vld [vmem:[%s3425_s0 + $0xb8] sm:$0xff]  ;;  %2278 = vmatpush1.bf16.msra.mxu0 %v2277_v61  ;;  %v2281_v11 = vpack.c.bf16 %v797_v7, %v793_v4  ;;  %v2314_v33 = vmov 0.0  }
  0x2b   :  { %v45_v12 = vld [vmem:[%s3425_s0 + $0xc0] sm:$0xff]  ;;  %2196 = vmatmul.mubr.msk.f32.gmra.mrb[16].mxu1 %vm93_vm0, %v70_v5  ;;  %2248 = vmatprep.subr.bf16.mxu1 %v2247_v1  ;;  %v72_v13 = vld [vmem:[%s3425_s0 + $0x198] sm:$0xff]  ;;  %v46_v15 = vld [vmem:[%s3425_s0 + $0xc8] sm:$0xff] }
  0x2c   :  { %2154 = vmatmul.mubr.msk.f32.gmra.mrb[20].mxu0 %vm93_vm0, %v42_v53  ;;  %2198 = vmatprep.mubr.msk.f32.mxu1 %vm93_vm0, %v71_v8  ;;  %v73_v14 = vld [vmem:[%s3425_s0 + $0x1a0] sm:$0xff]  ;;  %v47_v16 = vld [vmem:[%s3425_s0 + $0xd0] sm:$0xff]  ;;  %v74_v17 = vld [vmem:[%s3425_s0 + $0x1a8] sm:$0xff] }
  0x2d   :  { %2156 = vmatprep.mubr.msk.f32.mxu0 %vm93_vm0, %v43_v57  ;;  %2280 = vmatprep.subr.bf16.mxu0 %v2279_v6  ;;  %v75_v18 = vld [vmem:[%s3425_s0 + $0x1b0] sm:$0xff]  ;;  %v48_v19 = vld [vmem:[%s3425_s0 + $0xd8] sm:$0xff]  ;;  %v49_v20 = vld [vmem:[%s3425_s0 + $0xe0] sm:$0xff] }
  0x2e   :  { %2250 = vmatpush1.bf16.msra.mxu1 %v2249_v9  ;;  %2282 = vmatpush1.bf16.msra.mxu0 %v2281_v11  ;;  %v76_v21 = vld [vmem:[%s3425_s0 + $0x1b8] sm:$0xff]  ;;  %v77_v22 = vld [vmem:[%s3425_s0 + $0x1c0] sm:$0xff]  ;;  %v50_v23 = vld [vmem:[%s3425_s0 + $0xe8] sm:$0xff] }
  0x2f   :  { %2199 = vmatmul.mubr.msk.f32.gmra.mrb[18].mxu1 %vm93_vm0, %v72_v13  ;;  %v51_v24 = vld [vmem:[%s3425_s0 + $0xf0] sm:$0xff]  ;;  %v78_v25 = vld [vmem:[%s3425_s0 + $0x1c8] sm:$0xff]  ;;  %v52_v27 = vld [vmem:[%s3425_s0 + $0xf8] sm:$0xff] }
  0x30   :  { %2157 = vmatmul.mubr.msk.f32.gmra.mrb[22].mxu0 %vm93_vm0, %v44_v10  ;;  %2201 = vmatprep.mubr.msk.f32.mxu1 %vm93_vm0, %v73_v14  ;;  %v79_v26 = vld [vmem:[%s3425_s0 + $0x1d0] sm:$0xff]  ;;  %v80_v28 = vld [vmem:[%s3425_s0 + $0x1d8] sm:$0xff]  ;;  %v81_v29 = vld [vmem:[%s3425_s0 + $0x1e0] sm:$0xff] }
  0x31   :  { %2159 = vmatprep.mubr.msk.f32.mxu0 %vm93_vm0, %v45_v12  ;;  %v82_v30 = vld [vmem:[%s3425_s0 + $0x1e8] sm:$0xff]  ;;  %v83_v31 = vld [vmem:[%s3425_s0 + $0x1f0] sm:$0xff]  ;;  %v84_v32 = vld [vmem:[%s3425_s0 + $0x1f8] sm:$0xff] }
  0x32   :  { %v2804_v34 = vld [vmem:[%s3427_s2] ss:$0 sm:$0xff] }
  0x33   :  { %2202 = vmatmul.mubr.msk.f32.gmra.mrb[20].mxu1 %vm93_vm0, %v74_v17 }
  0x34   :  { %2160 = vmatmul.mubr.msk.f32.gmra.mrb[24].mxu0 %vm93_vm0, %v46_v15  ;;  %2204 = vmatprep.mubr.msk.f32.mxu1 %vm93_vm0, %v75_v18 }
  0x35   :  { %2162 = vmatprep.mubr.msk.f32.mxu0 %vm93_vm0, %v47_v16 }
  0x37   :  { %2205 = vmatmul.mubr.msk.f32.gmra.mrb[22].mxu1 %vm93_vm0, %v76_v21 }
  0x38   :  { %2163 = vmatmul.mubr.msk.f32.gmra.mrb[26].mxu0 %vm93_vm0, %v48_v19  ;;  %2207 = vmatprep.mubr.msk.f32.mxu1 %vm93_vm0, %v77_v22 }
  0x39   :  { %2165 = vmatprep.mubr.msk.f32.mxu0 %vm93_vm0, %v49_v20 }
  0x3b   :  { %2208 = vmatmul.mubr.msk.f32.gmra.mrb[24].mxu1 %vm93_vm0, %v78_v25 }
  0x3c   :  { %2166 = vmatmul.mubr.msk.f32.gmra.mrb[28].mxu0 %vm93_vm0, %v50_v23  ;;  %2210 = vmatprep.mubr.msk.f32.mxu1 %vm93_vm0, %v79_v26 }
  0x3d   :  { %2168 = vmatprep.mubr.msk.f32.mxu0 %vm93_vm0, %v51_v24 }
  0x3f   :  { %2211 = vmatmul.mubr.msk.f32.gmra.mrb[26].mxu1 %vm93_vm0, %v80_v28 }
  0x40   :  { %2169 = vmatmul.mubr.msk.f32.gmra.mrb[30].mxu0 %vm93_vm0, %v52_v27  ;;  %2213 = vmatprep.mubr.msk.f32.mxu1 %vm93_vm0, %v81_v29 }
  0x41   :  { %1334 = vmatprep.mubr.f32.mxu0 %v2314_v33 }
  0x43   :  { %2214 = vmatmul.mubr.msk.f32.gmra.mrb[28].mxu1 %vm93_vm0, %v82_v30 }
  0x44   :  { %2216 = vmatprep.mubr.msk.f32.mxu1 %vm93_vm0, %v83_v31 }
  0x47   :  { %2217 = vmatmul.mubr.msk.f32.gmra.mrb[30].mxu1 %vm93_vm0, %v84_v32 }
  0x48   :  { %885 = vmatprep.mubr.f32.mxu1 %v2314_v33 }
  0xd7   :  { %v2125_v35 = vpop.f32.mrb[0].mxu0 }
  0xd8   :  { %v352_v36 = vpop.f32.mrb[1].mxu0  ;;  %v358_v38 = vadd.f32 %v2125_v35, %v2804_v34 }
  0xd9   :  { %v353_v37 = vadd.f32 %v2804_v34, %v352_v36  ;;  %v2811_v47 = vpop.f32.mrb[0].mxu1 }
  0xda   :  { %v672_v43 = vmax.f32 %v358_v38, 0.0  ;;  %v2815_v48 = vpop.f32.mrb[1].mxu1 }
  0xdb   :  { %v671_v39 = vmax.f32 %v353_v37, 0.0  ;;  %v2128_v40 = vpop.f32.mrb[2].mxu0 }
  0xdc   :  { %v362_v41 = vpop.f32.mrb[3].mxu0  ;;  %v368_v49 = vadd.f32 %v2128_v40, %v2804_v34 }
  0xdd   :  { %886 = vmatmul.mubr.f32.vlgmr.msra.gmra.mrb[32].mxu1 %v671_v39  ;;  %1335 = vmatmul.mubr.f32.vlgmr.msra.gmra.mrb[32].mxu0 %v671_v39  ;;  %v363_v42 = vadd.f32 %v2804_v34, %v362_v41  ;;  %v2819_v53 = vpop.f32.mrb[2].mxu1 }
  0xde   :  { %891 = vmatprep.mubr.f32.mxu1 %v2314_v33  ;;  %1340 = vmatprep.mubr.f32.mxu0 %v2314_v33  ;;  %v2823_v54 = vpop.f32.mrb[3].mxu1  ;;  %v674_v55 = vmax.f32 %v368_v49, 0.0 }
  0xdf   :  { %v2131_v44 = vpop.f32.mrb[4].mxu0  ;;  %v673_v46 = vmax.f32 %v363_v42, 0.0 }
  0xe0   :  { %v372_v45 = vpop.f32.mrb[5].mxu0  ;;  %v378_v61 = vadd.f32 %v2131_v44, %v2804_v34 }
  0xe1   :  { %892 = vmatmul.mubr.f32.gmra.mrb[34].mxu1 %v672_v43  ;;  %1341 = vmatmul.mubr.f32.gmra.mrb[34].mxu0 %v672_v43  ;;  %v373_v52 = vadd.f32 %v2804_v34, %v372_v45  ;;  %v2825_v59 = vpop.f32.mrb[4].mxu1 }
  0xe2   :  { %897 = vmatprep.mubr.f32.mxu1 %v2314_v33  ;;  %1346 = vmatprep.mubr.f32.mxu0 %v2314_v33  ;;  %v2829_v60 = vpop.f32.mrb[5].mxu1  ;;  %v676_v3 = vmax.f32 %v378_v61, 0.0 }
  0xe3   :  { %v2134_v50 = vpop.f32.mrb[6].mxu0  ;;  %v675_v58 = vmax.f32 %v373_v52, 0.0 }
  0xe4   :  { %v382_v51 = vpop.f32.mrb[7].mxu0  ;;  %v388_v7 = vadd.f32 %v2134_v50, %v2804_v34 }
  0xe5   :  { %898 = vmatmul.mubr.f32.gmra.mrb[36].mxu1 %v673_v46  ;;  %1347 = vmatmul.mubr.f32.gmra.mrb[36].mxu0 %v673_v46  ;;  %v383_v0 = vadd.f32 %v2804_v34, %v382_v51  ;;  %v2833_v1 = vpop.f32.mrb[6].mxu1 }
  0xe6   :  { %903 = vmatprep.mubr.f32.mxu1 %v2314_v33  ;;  %1352 = vmatprep.mubr.f32.mxu0 %v2314_v33  ;;  %v2837_v2 = vpop.f32.mrb[7].mxu1  ;;  %v678_v13 = vmax.f32 %v388_v7, 0.0 }
  0xe7   :  { %v2137_v56 = vpop.f32.mrb[8].mxu0  ;;  %v677_v6 = vmax.f32 %v383_v0, 0.0 }
  0xe8   :  { %v392_v57 = vpop.f32.mrb[9].mxu0  ;;  %v398_v17 = vadd.f32 %v2137_v56, %v2804_v34 }
  0xe9   :  { %904 = vmatmul.mubr.f32.gmra.mrb[38].mxu1 %v674_v55  ;;  %1353 = vmatmul.mubr.f32.gmra.mrb[38].mxu0 %v674_v55  ;;  %v393_v10 = vadd.f32 %v2804_v34, %v392_v57  ;;  %v2847_v11 = vpop.f32.mrb[8].mxu1 }
  0xea   :  { %909 = vmatprep.mubr.f32.mxu1 %v2314_v33  ;;  %1358 = vmatprep.mubr.f32.mxu0 %v2314_v33  ;;  %v2851_v12 = vpop.f32.mrb[9].mxu1  ;;  %v680_v23 = vmax.f32 %v398_v17, 0.0 }
  0xeb   :  { %v2140_v62 = vpop.f32.mrb[10].mxu0  ;;  %v679_v16 = vmax.f32 %v393_v10, 0.0 }
  0xec   :  { %v402_v63 = vpop.f32.mrb[11].mxu0  ;;  %v408_v27 = vadd.f32 %v2140_v62, %v2804_v34 }
  0xed   :  { %910 = vmatmul.mubr.f32.gmra.mrb[40].mxu1 %v675_v58  ;;  %1359 = vmatmul.mubr.f32.gmra.mrb[40].mxu0 %v675_v58  ;;  %v403_v20 = vadd.f32 %v2804_v34, %v402_v63  ;;  %v2865_v21 = vpop.f32.mrb[10].mxu1 }
  0xee   :  { %915 = vmatprep.mubr.f32.mxu1 %v2314_v33  ;;  %1364 = vmatprep.mubr.f32.mxu0 %v2314_v33  ;;  %v2869_v22 = vpop.f32.mrb[11].mxu1  ;;  %v682_v35 = vmax.f32 %v408_v27, 0.0 }
  0xef   :  { %v2839_v4 = vpop.f32.mrb[12].mxu0  ;;  %v681_v26 = vmax.f32 %v403_v20, 0.0 }
  0xf0   :  { %v412_v5 = vpop.f32.mrb[13].mxu0  ;;  %v418_v41 = vadd.f32 %v2839_v4, %v2804_v34 }
  0xf1   :  { %916 = vmatmul.mubr.f32.gmra.mrb[42].mxu1 %v676_v3  ;;  %1365 = vmatmul.mubr.f32.gmra.mrb[42].mxu0 %v676_v3  ;;  %v413_v30 = vadd.f32 %v2804_v34, %v412_v5  ;;  %v2883_v31 = vpop.f32.mrb[12].mxu1 }
  0xf2   :  { %921 = vmatprep.mubr.f32.mxu1 %v2314_v33  ;;  %1370 = vmatprep.mubr.f32.mxu0 %v2314_v33  ;;  %v2887_v32 = vpop.f32.mrb[13].mxu1  ;;  %v684_v49 = vmax.f32 %v418_v41, 0.0 }
  0xf3   :  { %v2844_v8 = vpop.f32.mrb[14].mxu0  ;;  %v683_v38 = vmax.f32 %v413_v30, 0.0 }
  0xf4   :  { %v422_v9 = vpop.f32.mrb[15].mxu0  ;;  %v428_v57 = vadd.f32 %v2844_v8, %v2804_v34 }
  0xf5   :  { %922 = vmatmul.mubr.f32.gmra.mrb[44].mxu1 %v677_v6  ;;  %1371 = vmatmul.mubr.f32.gmra.mrb[44].mxu0 %v677_v6  ;;  %v2893_v39 = vpop.f32.mrb[14].mxu1  ;;  %v423_v44 = vadd.f32 %v2804_v34, %v422_v9 }
  0xf6   :  { %927 = vmatprep.mubr.f32.mxu1 %v2314_v33  ;;  %1376 = vmatprep.mubr.f32.mxu0 %v2314_v33  ;;  %v2897_v40 = vpop.f32.mrb[15].mxu1  ;;  %v686_v3 = vmax.f32 %v428_v57, 0.0 }
  0xf7   :  { %v2853_v14 = vpop.f32.mrb[16].mxu0  ;;  %v685_v52 = vmax.f32 %v423_v44, 0.0 }
  0xf8   :  { %v2855_v15 = vpop.f32.mrb[17].mxu0  ;;  %v438_v7 = vadd.f32 %v2853_v14, %v2804_v34 }
  0xf9   :  { %928 = vmatmul.mubr.f32.gmra.mrb[46].mxu1 %v678_v13  ;;  %1377 = vmatmul.mubr.f32.gmra.mrb[46].mxu0 %v678_v13  ;;  %v433_v62 = vadd.f32 %v2804_v34, %v2855_v15 }
  0xfa   :  { %933 = vmatprep.mubr.f32.mxu1 %v2314_v33  ;;  %1382 = vmatprep.mubr.f32.mxu0 %v2314_v33  ;;  %v688_v13 = vmax.f32 %v438_v7, 0.0 }
  0xfb   :  { %v2860_v18 = vpop.f32.mrb[18].mxu0  ;;  %v687_v4 = vmax.f32 %v433_v62, 0.0 }
  0xfc   :  { %v2862_v19 = vpop.f32.mrb[19].mxu0  ;;  %v448_v17 = vadd.f32 %v2860_v18, %v2804_v34 }
  0xfd   :  { %934 = vmatmul.mubr.f32.gmra.mrb[48].mxu1 %v679_v16  ;;  %1383 = vmatmul.mubr.f32.gmra.mrb[48].mxu0 %v679_v16  ;;  %v443_v8 = vadd.f32 %v2804_v34, %v2862_v19 }
  0xfe   :  { %939 = vmatprep.mubr.f32.mxu1 %v2314_v33  ;;  %1388 = vmatprep.mubr.f32.mxu0 %v2314_v33  ;;  %v2906_v45 = vpop.f32.mrb[16].mxu1 }
  0xff   :  { %v2871_v24 = vpop.f32.mrb[20].mxu0  ;;  %v2910_v46 = vpop.f32.mrb[17].mxu1  ;;  %v689_v15 = vmax.f32 %v443_v8, 0.0 }
 0x100   :  { %v2873_v25 = vpop.f32.mrb[21].mxu0  ;;  %v458_v18 = vadd.f32 %v2871_v24, %v2804_v34 }
 0x101   :  { %940 = vmatmul.mubr.f32.gmra.mrb[50].mxu1 %v680_v23  ;;  %1389 = vmatmul.mubr.f32.gmra.mrb[50].mxu0 %v680_v23  ;;  %v453_v19 = vadd.f32 %v2804_v34, %v2873_v25 }
 0x102   :  { %945 = vmatprep.mubr.f32.mxu1 %v2314_v33  ;;  %1394 = vmatprep.mubr.f32.mxu0 %v2314_v33  ;;  %v2916_v55 = vpop.f32.mrb[18].mxu1 }
 0x103   :  { %v2878_v28 = vpop.f32.mrb[22].mxu0  ;;  %v2920_v56 = vpop.f32.mrb[19].mxu1  ;;  %v691_v27 = vmax.f32 %v453_v19, 0.0 }
 0x104   :  { %v2880_v29 = vpop.f32.mrb[23].mxu0  ;;  %v468_v24 = vadd.f32 %v2878_v28, %v2804_v34 }
 0x105   :  { %946 = vmatmul.mubr.f32.gmra.mrb[52].mxu1 %v681_v26  ;;  %1395 = vmatmul.mubr.f32.gmra.mrb[52].mxu0 %v681_v26  ;;  %v690_v26 = vmax.f32 %v448_v17, 0.0 }
 0x106   :  { %951 = vmatprep.mubr.f32.mxu1 %v2314_v33  ;;  %1400 = vmatprep.mubr.f32.mxu0 %v2314_v33  ;;  %v2930_v63 = vpop.f32.mrb[20].mxu1  ;;  %v694_v44 = vmax.f32 %v468_v24, 0.0 }
 0x107   :  { %v2889_v36 = vpop.f32.mrb[24].mxu0  ;;  %v2934_v0 = vpop.f32.mrb[21].mxu1 }
 0x108   :  { %v2891_v37 = vpop.f32.mrb[25].mxu0  ;;  %v478_v28 = vadd.f32 %v2889_v36, %v2804_v34 }
 0x109   :  { %952 = vmatmul.mubr.f32.gmra.mrb[54].mxu1 %v682_v35  ;;  %1401 = vmatmul.mubr.f32.gmra.mrb[54].mxu0 %v682_v35  ;;  %v463_v35 = vadd.f32 %v2804_v34, %v2880_v29  ;;  %v473_v29 = vadd.f32 %v2804_v34, %v2891_v37 }
 0x10a   :  { %957 = vmatprep.mubr.f32.mxu1 %v2314_v33  ;;  %1406 = vmatprep.mubr.f32.mxu0 %v2314_v33  ;;  %v2936_v5 = vpop.f32.mrb[22].mxu1 }
 0x10b   :  { %v2901_v42 = vpop.f32.mrb[26].mxu0  ;;  %v2940_v6 = vpop.f32.mrb[23].mxu1  ;;  %v693_v41 = vmax.f32 %v463_v35, 0.0 }
 0x10c   :  { %v2903_v43 = vpop.f32.mrb[27].mxu0  ;;  %v488_v36 = vadd.f32 %v2901_v42, %v2804_v34 }
 0x10d   :  { %958 = vmatmul.mubr.f32.gmra.mrb[56].mxu1 %v683_v38  ;;  %1407 = vmatmul.mubr.f32.gmra.mrb[56].mxu0 %v683_v38  ;;  %v692_v38 = vmax.f32 %v458_v18, 0.0  ;;  %v483_v37 = vadd.f32 %v2804_v34, %v2903_v43 }
 0x10e   :  { %963 = vmatprep.mubr.f32.mxu1 %v2314_v33  ;;  %1412 = vmatprep.mubr.f32.mxu0 %v2314_v33  ;;  %v2946_v9 = vpop.f32.mrb[24].mxu1  ;;  %v698_v62 = vmax.f32 %v488_v36, 0.0  ;;  %v801_v36 = vlaneseq }
 0x10f   :  { %v2912_v50 = vpop.f32.mrb[28].mxu0  ;;  %v2950_v10 = vpop.f32.mrb[25].mxu1  ;;  %v697_v57 = vmax.f32 %v483_v37, 0.0 }
 0x110   :  { %v2914_v51 = vpop.f32.mrb[29].mxu0  ;;  %v498_v42 = vadd.f32 %v2912_v50, %v2804_v34 }
 0x111   :  { %964 = vmatmul.mubr.f32.gmra.mrb[58].mxu1 %v684_v49  ;;  %1413 = vmatmul.mubr.f32.gmra.mrb[58].mxu0 %v684_v49  ;;  %v695_v49 = vmax.f32 %v473_v29, 0.0  ;;  %v493_v43 = vadd.f32 %v2804_v34, %v2914_v51 }
 0x112   :  { %969 = vmatprep.mubr.f32.mxu1 %v2314_v33  ;;  %1418 = vmatprep.mubr.f32.mxu0 %v2314_v33  ;;  %v2952_v16 = vpop.f32.mrb[26].mxu1 }
 0x113   :  { %v2924_v58 = vpop.f32.mrb[30].mxu0  ;;  %v2956_v14 = vpop.f32.mrb[27].mxu1 }
 0x114   :  { %v2926_v61 = vpop.f32.mrb[31].mxu0  ;;  %v508_v50 = vadd.f32 %v2924_v58, %v2804_v34  ;;  %v518_v58 = vadd.f32 %v2811_v47, %v2804_v34  ;;  %v528_v47 = vadd.f32 %v2819_v53, %v2804_v34  ;;  %v538_v53 = vadd.f32 %v2825_v59, %v2804_v34 }
 0x115   :  { %970 = vmatmul.mubr.f32.gmra.mrb[60].mxu1 %v685_v52  ;;  %1419 = vmatmul.mubr.f32.gmra.mrb[60].mxu0 %v685_v52  ;;  %v696_v52 = vmax.f32 %v478_v28, 0.0  ;;  %v503_v51 = vadd.f32 %v2804_v34, %v2926_v61  ;;  %v513_v61 = vadd.f32 %v2804_v34, %v2815_v48  ;;  %v523_v48 = vadd.f32 %v2804_v34, %v2823_v54 }
 0x116   :  { %975 = vmatprep.mubr.f32.mxu1 %v2314_v33  ;;  %1424 = vmatprep.mubr.f32.mxu0 %v2314_v33  ;;  %v2962_v20 = vpop.f32.mrb[28].mxu1  ;;  %v702_v8 = vmax.f32 %v508_v50, 0.0  ;;  %v533_v54 = vadd.f32 %v2804_v34, %v2829_v60  ;;  %v706_v19 = vmax.f32 %v528_v47, 0.0  ;;  %v543_v60 = vadd.f32 %v2804_v34, %v2837_v2 }
 0x117   :  { %v2966_v23 = vpop.f32.mrb[29].mxu1  ;;  %v701_v7 = vmax.f32 %v503_v51, 0.0  ;;  %v705_v17 = vmax.f32 %v523_v48, 0.0  ;;  %v548_v59 = vadd.f32 %v2833_v1, %v2804_v34  ;;  %v553_v2 = vadd.f32 %v2804_v34, %v2851_v12 }
 0x118   :  { %v709_v18 = vmax.f32 %v543_v60, 0.0  ;;  %v558_v1 = vadd.f32 %v2847_v11, %v2804_v34  ;;  %v563_v12 = vadd.f32 %v2804_v34, %v2869_v22  ;;  %v568_v11 = vadd.f32 %v2865_v21, %v2804_v34 }
 0x119   :  { %976 = vmatmul.mubr.f32.gmra.mrb[62].mxu1 %v686_v3  ;;  %1425 = vmatmul.mubr.f32.gmra.mrb[62].mxu0 %v686_v3  ;;  %v699_v3 = vmax.f32 %v493_v43, 0.0  ;;  %v710_v35 = vmax.f32 %v548_v59, 0.0  ;;  %v573_v22 = vadd.f32 %v2804_v34, %v2887_v32  ;;  %v578_v21 = vadd.f32 %v2883_v31, %v2804_v34 }
 0x11a   :  { %981 = vmatprep.mubr.f32.mxu1 %v2314_v33  ;;  %1430 = vmatprep.mubr.f32.mxu0 %v2314_v33  ;;  %v2972_v25 = vpop.f32.mrb[30].mxu1  ;;  %v713_v24 = vmax.f32 %v563_v12, 0.0  ;;  %v714_v29 = vmax.f32 %v568_v11, 0.0  ;;  %v588_v28 = vadd.f32 %v2893_v39, %v2804_v34  ;;  %v598_v39 = vadd.f32 %v2906_v45, %v2804_v34 }
 0x11b   :  { %v2974_v30 = vpop.f32.mrb[31].mxu1  ;;  %v716_v32 = vmax.f32 %v578_v21, 0.0  ;;  %v608_v45 = vadd.f32 %v2916_v55, %v2804_v34  ;;  %v799_v55 = vld [vmem:[%s3429_s4] sm:$0xf]  ;;  %v618_v50 = vadd.f32 %v2930_v63, %v2804_v34 }
 0x11c   :  { %v718_v37 = vmax.f32 %v588_v28, 0.0 }
 0x11d   :  { %982 = vmatmul.mubr.f32.gmra.mrb[64].mxu1 %v687_v4  ;;  %1431 = vmatmul.mubr.f32.gmra.mrb[64].mxu0 %v687_v4  ;;  %v700_v4 = vmax.f32 %v498_v42, 0.0  ;;  %v724_v48 = vmax.f32 %v618_v50, 0.0 }
 0x11e   :  { %987 = vmatprep.mubr.f32.mxu1 %v2314_v33  ;;  %1436 = vmatprep.mubr.f32.mxu0 %v2314_v33 }
 0x121   :  { %988 = vmatmul.mubr.f32.gmra.mrb[66].mxu1 %v688_v13  ;;  %1437 = vmatmul.mubr.f32.gmra.mrb[66].mxu0 %v688_v13  ;;  %v703_v13 = vmax.f32 %v513_v61, 0.0 }
 0x122   :  { %993 = vmatprep.mubr.f32.mxu1 %v2314_v33  ;;  %1442 = vmatprep.mubr.f32.mxu0 %v2314_v33 }
 0x125   :  { %994 = vmatmul.mubr.f32.gmra.mrb[68].mxu1 %v689_v15  ;;  %1443 = vmatmul.mubr.f32.gmra.mrb[68].mxu0 %v689_v15  ;;  %v704_v15 = vmax.f32 %v518_v58, 0.0 }
 0x126   :  { %999 = vmatprep.mubr.f32.mxu1 %v2314_v33  ;;  %1448 = vmatprep.mubr.f32.mxu0 %v2314_v33 }
 0x129   :  { %1000 = vmatmul.mubr.f32.gmra.mrb[70].mxu1 %v690_v26  ;;  %1449 = vmatmul.mubr.f32.gmra.mrb[70].mxu0 %v690_v26  ;;  %v707_v26 = vmax.f32 %v533_v54, 0.0 }
 0x12a   :  { %1005 = vmatprep.mubr.f32.mxu1 %v2314_v33  ;;  %1454 = vmatprep.mubr.f32.mxu0 %v2314_v33 }
 0x12d   :  { %1006 = vmatmul.mubr.f32.gmra.mrb[72].mxu1 %v691_v27  ;;  %1455 = vmatmul.mubr.f32.gmra.mrb[72].mxu0 %v691_v27  ;;  %v708_v27 = vmax.f32 %v538_v53, 0.0 }
 0x12e   :  { %1011 = vmatprep.mubr.f32.mxu1 %v2314_v33  ;;  %1460 = vmatprep.mubr.f32.mxu0 %v2314_v33 }
 0x131   :  { %1012 = vmatmul.mubr.f32.gmra.mrb[74].mxu1 %v692_v38  ;;  %1461 = vmatmul.mubr.f32.gmra.mrb[74].mxu0 %v692_v38  ;;  %v711_v38 = vmax.f32 %v553_v2, 0.0 }
 0x132   :  { %1017 = vmatprep.mubr.f32.mxu1 %v2314_v33  ;;  %1466 = vmatprep.mubr.f32.mxu0 %v2314_v33 }
 0x135   :  { %1018 = vmatmul.mubr.f32.gmra.mrb[76].mxu1 %v693_v41  ;;  %1467 = vmatmul.mubr.f32.gmra.mrb[76].mxu0 %v693_v41  ;;  %v712_v41 = vmax.f32 %v558_v1, 0.0 }
 0x136   :  { %1023 = vmatprep.mubr.f32.mxu1 %v2314_v33  ;;  %1472 = vmatprep.mubr.f32.mxu0 %v2314_v33 }
 0x139   :  { %1024 = vmatmul.mubr.f32.gmra.mrb[78].mxu1 %v694_v44  ;;  %1473 = vmatmul.mubr.f32.gmra.mrb[78].mxu0 %v694_v44  ;;  %v715_v44 = vmax.f32 %v573_v22, 0.0 }
 0x13a   :  { %1029 = vmatprep.mubr.f32.mxu1 %v2314_v33  ;;  %1478 = vmatprep.mubr.f32.mxu0 %v2314_v33 }
 0x13d   :  { %1030 = vmatmul.mubr.f32.gmra.mrb[80].mxu1 %v695_v49  ;;  %1479 = vmatmul.mubr.f32.gmra.mrb[80].mxu0 %v695_v49  ;;  %v583_v49 = vadd.f32 %v2804_v34, %v2897_v40  ;;  %v593_v40 = vadd.f32 %v2804_v34, %v2910_v46  ;;  %v603_v46 = vadd.f32 %v2804_v34, %v2920_v56 }
 0x13e   :  { %1035 = vmatprep.mubr.f32.mxu1 %v2314_v33  ;;  %1484 = vmatprep.mubr.f32.mxu0 %v2314_v33  ;;  %v613_v56 = vadd.f32 %v2804_v34, %v2934_v0 }
 0x13f   :  { %v717_v31 = vmax.f32 %v583_v49, 0.0  ;;  %v721_v43 = vmax.f32 %v603_v46, 0.0 }
 0x140   :  { %v723_v61 = vmax.f32 %v613_v56, 0.0 }
 0x141   :  { %1036 = vmatmul.mubr.f32.gmra.mrb[82].mxu1 %v696_v52  ;;  %1485 = vmatmul.mubr.f32.gmra.mrb[82].mxu0 %v696_v52  ;;  %v719_v52 = vmax.f32 %v593_v40, 0.0 }
 0x142   :  { %1041 = vmatprep.mubr.f32.mxu1 %v2314_v33  ;;  %1490 = vmatprep.mubr.f32.mxu0 %v2314_v33 }
 0x145   :  { %1042 = vmatmul.mubr.f32.gmra.mrb[84].mxu1 %v697_v57  ;;  %1491 = vmatmul.mubr.f32.gmra.mrb[84].mxu0 %v697_v57  ;;  %v720_v57 = vmax.f32 %v598_v39, 0.0 }
 0x146   :  { %1047 = vmatprep.mubr.f32.mxu1 %v2314_v33  ;;  %1496 = vmatprep.mubr.f32.mxu0 %v2314_v33 }
 0x149   :  { %1048 = vmatmul.mubr.f32.gmra.mrb[86].mxu1 %v698_v62  ;;  %1497 = vmatmul.mubr.f32.gmra.mrb[86].mxu0 %v698_v62  ;;  %v802_v62 = vshrl.u32 %v801_v36, 7 }
 0x14a   :  { %1053 = vmatprep.mubr.f32.mxu1 %v2314_v33  ;;  %1502 = vmatprep.mubr.f32.mxu0 %v2314_v33 }
 0x14b   :  { %v803_v42 = vsub.s32 0, %v802_v62  ;;  %v811_v51 = vsub.s32 2, %v802_v62 }
 0x14d   :  { %1054 = vmatmul.mubr.f32.gmra.mrb[88].mxu1 %v699_v3  ;;  %1503 = vmatmul.mubr.f32.gmra.mrb[88].mxu0 %v699_v3  ;;  %v722_v3 = vmax.f32 %v608_v45, 0.0  ;;  %v3107_v0 = vrot.slane %v799_v55, %v803_v42 }
 0x14e   :  { %1059 = vmatprep.mubr.f32.mxu1 %v2314_v33  ;;  %1508 = vmatprep.mubr.f32.mxu0 %v2314_v33 }
 0x151   :  { %1060 = vmatmul.mubr.f32.gmra.mrb[90].mxu1 %v700_v4  ;;  %1509 = vmatmul.mubr.f32.gmra.mrb[90].mxu0 %v700_v4  ;;  %v807_v4 = vsub.s32 1, %v802_v62 }
 0x152   :  { %1065 = vmatprep.mubr.f32.mxu1 %v2314_v33  ;;  %1514 = vmatprep.mubr.f32.mxu0 %v2314_v33 }
 0x155   :  { %1066 = vmatmul.mubr.f32.gmra.mrb[92].mxu1 %v701_v7  ;;  %1515 = vmatmul.mubr.f32.gmra.mrb[92].mxu0 %v701_v7  ;;  %v815_v7 = vsub.s32 3, %v802_v62 }
 0x156   :  { %1071 = vmatprep.mubr.f32.mxu1 %v2314_v33  ;;  %1520 = vmatprep.mubr.f32.mxu0 %v2314_v33 }
 0x157   :  { %v3115_v58 = vrot.slane %v799_v55, %v815_v7 }
 0x159   :  { %1072 = vmatmul.mubr.f32.gmra.mrb[94].mxu1 %v702_v8  ;;  %1521 = vmatmul.mubr.f32.gmra.mrb[94].mxu0 %v702_v8  ;;  %v3109_v8 = vrot.slane %v799_v55, %v811_v51 }
 0x15a   :  { %1077 = vmatprep.mubr.f32.mxu1 %v2314_v33  ;;  %1526 = vmatprep.mubr.f32.mxu0 %v2314_v33 }
 0x15d   :  { %1078 = vmatmul.mubr.f32.gmra.mrb[96].mxu1 %v703_v13  ;;  %1527 = vmatmul.mubr.f32.gmra.mrb[96].mxu0 %v703_v13  ;;  %v3113_v13 = vrot.slane %v799_v55, %v807_v4 }
 0x15e   :  { %1083 = vmatprep.mubr.f32.mxu1 %v2314_v33  ;;  %1532 = vmatprep.mubr.f32.mxu0 %v2314_v33 }
 0x161   :  { %1084 = vmatmul.mubr.f32.gmra.mrb[98].mxu1 %v704_v15  ;;  %1533 = vmatmul.mubr.f32.gmra.mrb[98].mxu0 %v704_v15  ;;  %v623_v15 = vadd.f32 %v2804_v34, %v2940_v6  ;;  %v628_v6 = vadd.f32 %v2936_v5, %v2804_v34 }
 0x162   :  { %1089 = vmatprep.mubr.f32.mxu1 %v2314_v33  ;;  %1538 = vmatprep.mubr.f32.mxu0 %v2314_v33 }
 0x163   :  { %v726_v5 = vmax.f32 %v628_v6, 0.0 }
 0x165   :  { %1090 = vmatmul.mubr.f32.gmra.mrb[100].mxu1 %v705_v17  ;;  %1539 = vmatmul.mubr.f32.gmra.mrb[100].mxu0 %v705_v17 }
 0x166   :  { %1095 = vmatprep.mubr.f32.mxu1 %v2314_v33  ;;  %1544 = vmatprep.mubr.f32.mxu0 %v2314_v33 }
 0x169   :  { %1096 = vmatmul.mubr.f32.gmra.mrb[102].mxu1 %v706_v19  ;;  %1545 = vmatmul.mubr.f32.gmra.mrb[102].mxu0 %v706_v19 }
 0x16a   :  { %1101 = vmatprep.mubr.f32.mxu1 %v2314_v33  ;;  %1550 = vmatprep.mubr.f32.mxu0 %v2314_v33 }
 0x16d   :  { %1102 = vmatmul.mubr.f32.gmra.mrb[104].mxu1 %v707_v26  ;;  %1551 = vmatmul.mubr.f32.gmra.mrb[104].mxu0 %v707_v26 }
 0x16e   :  { %1107 = vmatprep.mubr.f32.mxu1 %v2314_v33  ;;  %1556 = vmatprep.mubr.f32.mxu0 %v2314_v33 }
 0x171   :  { %1108 = vmatmul.mubr.f32.gmra.mrb[106].mxu1 %v708_v27  ;;  %1557 = vmatmul.mubr.f32.gmra.mrb[106].mxu0 %v708_v27  ;;  %v725_v27 = vmax.f32 %v623_v15, 0.0 }
 0x172   :  { %1113 = vmatprep.mubr.f32.mxu1 %v2314_v33  ;;  %1562 = vmatprep.mubr.f32.mxu0 %v2314_v33 }
 0x175   :  { %1114 = vmatmul.mubr.f32.gmra.mrb[108].mxu1 %v709_v18  ;;  %1563 = vmatmul.mubr.f32.gmra.mrb[108].mxu0 %v709_v18 }
 0x176   :  { %1119 = vmatprep.mubr.f32.mxu1 %v2314_v33  ;;  %1568 = vmatprep.mubr.f32.mxu0 %v2314_v33 }
 0x179   :  { %1120 = vmatmul.mubr.f32.gmra.mrb[110].mxu1 %v710_v35  ;;  %1569 = vmatmul.mubr.f32.gmra.mrb[110].mxu0 %v710_v35 }
 0x17a   :  { %1125 = vmatprep.mubr.f32.mxu1 %v2314_v33  ;;  %1574 = vmatprep.mubr.f32.mxu0 %v2314_v33 }
 0x17d   :  { %1126 = vmatmul.mubr.f32.gmra.mrb[112].mxu1 %v711_v38  ;;  %1575 = vmatmul.mubr.f32.gmra.mrb[112].mxu0 %v711_v38 }
 0x17e   :  { %1131 = vmatprep.mubr.f32.mxu1 %v2314_v33  ;;  %1580 = vmatprep.mubr.f32.mxu0 %v2314_v33 }
 0x181   :  { %1132 = vmatmul.mubr.f32.gmra.mrb[114].mxu1 %v712_v41  ;;  %1581 = vmatmul.mubr.f32.gmra.mrb[114].mxu0 %v712_v41 }
 0x182   :  { %1137 = vmatprep.mubr.f32.mxu1 %v2314_v33  ;;  %1586 = vmatprep.mubr.f32.mxu0 %v2314_v33 }
 0x185   :  { %1138 = vmatmul.mubr.f32.gmra.mrb[116].mxu1 %v713_v24  ;;  %1587 = vmatmul.mubr.f32.gmra.mrb[116].mxu0 %v713_v24  ;;  %v633_v24 = vadd.f32 %v2804_v34, %v2950_v10  ;;  %v638_v10 = vadd.f32 %v2946_v9, %v2804_v34 }
 0x186   :  { %1143 = vmatprep.mubr.f32.mxu1 %v2314_v33  ;;  %1592 = vmatprep.mubr.f32.mxu0 %v2314_v33 }
 0x187   :  { %v728_v9 = vmax.f32 %v638_v10, 0.0 }
 0x189   :  { %1144 = vmatmul.mubr.f32.gmra.mrb[118].mxu1 %v714_v29  ;;  %1593 = vmatmul.mubr.f32.gmra.mrb[118].mxu0 %v714_v29 }
 0x18a   :  { %1149 = vmatprep.mubr.f32.mxu1 %v2314_v33  ;;  %1598 = vmatprep.mubr.f32.mxu0 %v2314_v33 }
 0x18d   :  { %1150 = vmatmul.mubr.f32.gmra.mrb[120].mxu1 %v715_v44  ;;  %1599 = vmatmul.mubr.f32.gmra.mrb[120].mxu0 %v715_v44 }
 0x18e   :  { %1155 = vmatprep.mubr.f32.mxu1 %v2314_v33  ;;  %1604 = vmatprep.mubr.f32.mxu0 %v2314_v33 }
 0x191   :  { %1156 = vmatmul.mubr.f32.gmra.mrb[122].mxu1 %v716_v32  ;;  %1605 = vmatmul.mubr.f32.gmra.mrb[122].mxu0 %v716_v32 }
 0x192   :  { %1161 = vmatprep.mubr.f32.mxu1 %v2314_v33  ;;  %1610 = vmatprep.mubr.f32.mxu0 %v2314_v33 }
 0x195   :  { %1162 = vmatmul.mubr.f32.gmra.mrb[124].mxu1 %v717_v31  ;;  %1611 = vmatmul.mubr.f32.gmra.mrb[124].mxu0 %v717_v31  ;;  %v727_v31 = vmax.f32 %v633_v24, 0.0 }
 0x196   :  { %1167 = vmatprep.mubr.f32.mxu1 %v2314_v33  ;;  %1616 = vmatprep.mubr.f32.mxu0 %v2314_v33 }
 0x199   :  { %1168 = vmatmul.mubr.f32.gmra.mrb[126].mxu1 %v718_v37  ;;  %1617 = vmatmul.mubr.f32.gmra.mrb[126].mxu0 %v718_v37 }
 0x19a   :  { %1173 = vmatprep.mubr.f32.mxu1 %v2314_v33  ;;  %1622 = vmatprep.mubr.f32.mxu0 %v2314_v33 }
 0x19d   :  { %1174 = vmatmul.mubr.f32.gmra.mrb[128].mxu1 %v719_v52  ;;  %1623 = vmatmul.mubr.f32.gmra.mrb[128].mxu0 %v719_v52 }
 0x19e   :  { %1179 = vmatprep.mubr.f32.mxu1 %v2314_v33  ;;  %1628 = vmatprep.mubr.f32.mxu0 %v2314_v33 }
 0x1a1   :  { %1180 = vmatmul.mubr.f32.gmra.mrb[130].mxu1 %v720_v57  ;;  %1629 = vmatmul.mubr.f32.gmra.mrb[130].mxu0 %v720_v57 }
 0x1a2   :  { %1185 = vmatprep.mubr.f32.mxu1 %v2314_v33  ;;  %1634 = vmatprep.mubr.f32.mxu0 %v2314_v33 }
 0x1a5   :  { %1186 = vmatmul.mubr.f32.gmra.mrb[132].mxu1 %v721_v43  ;;  %1635 = vmatmul.mubr.f32.gmra.mrb[132].mxu0 %v721_v43  ;;  %v643_v43 = vadd.f32 %v2804_v34, %v2956_v14  ;;  %v648_v14 = vadd.f32 %v2952_v16, %v2804_v34 }
 0x1a6   :  { %1191 = vmatprep.mubr.f32.mxu1 %v2314_v33  ;;  %1640 = vmatprep.mubr.f32.mxu0 %v2314_v33 }
 0x1a7   :  { %v729_v50 = vmax.f32 %v643_v43, 0.0  ;;  %v730_v16 = vmax.f32 %v648_v14, 0.0 }
 0x1a9   :  { %1192 = vmatmul.mubr.f32.gmra.mrb[134].mxu1 %v722_v3  ;;  %1641 = vmatmul.mubr.f32.gmra.mrb[134].mxu0 %v722_v3 }
 0x1aa   :  { %1197 = vmatprep.mubr.f32.mxu1 %v2314_v33  ;;  %1646 = vmatprep.mubr.f32.mxu0 %v2314_v33 }
 0x1ad   :  { %1198 = vmatmul.mubr.f32.gmra.mrb[136].mxu1 %v723_v61  ;;  %1647 = vmatmul.mubr.f32.gmra.mrb[136].mxu0 %v723_v61 }
 0x1ae   :  { %1203 = vmatprep.mubr.f32.mxu1 %v2314_v33  ;;  %1652 = vmatprep.mubr.f32.mxu0 %v2314_v33 }
 0x1b0   :  { %v887_v63 = vpop.f32.mrb[32].mxu1  ;;  %v1336_v17 = vpop.f32.mrb[32].mxu0 }
 0x1b1   :  { %v888_v47 = vadd.f32 %v887_v63, %v3107_v0  ;;  %v1337_v54 = vadd.f32 %v1336_v17, %v3109_v8  ;;  %v889_v19 = vpop.f32.mrb[33].mxu1  ;;  %1204 = vmatmul.mubr.f32.gmra.mrb[138].mxu1 %v724_v48  ;;  %v1338_v26 = vpop.f32.mrb[33].mxu0  ;;  %1653 = vmatmul.mubr.f32.gmra.mrb[138].mxu0 %v724_v48 }
 0x1b2   :  { %v890_v53 = vadd.f32 %v889_v19, %v3113_v13  ;;  %v1339_v60 = vadd.f32 %v1338_v26, %v3115_v58  ;;  %1209 = vmatprep.mubr.f32.mxu1 %v2314_v33  ;;  %1658 = vmatprep.mubr.f32.mxu0 %v2314_v33  ;;  %v653_v26 = vadd.f32 %v2804_v34, %v2966_v23  ;;  %v2289_v34 = vld [vmem:[%s3427_s2] ss:$0 sm:$0xff]  ;;  %s2315_s2 = smov [#allocation2]  }
 0x1b3   :  { %1719 = vst [vmem:[#allocation2] sm:$0xff] %v888_v47  ;;  %1721 = vst [vmem:[#allocation2 + $0x10] sm:$0xff] %v1337_v54  ;;  %v658_v23 = vadd.f32 %v2289_v34, %v2962_v20  ;;  %s1980_s18 = sshll.u32 %s2315_s2, 4  ;;  %s1981_s18 = int_to_ptr.vmem [resolvable:$true] %s1980_s18 }
 0x1b4   :  { %1720 = vst [vmem:[#allocation2 + $0x8] sm:$0xff] %v890_v53  ;;  %1722 = vst [vmem:[#allocation2 + $0x18] sm:$0xff] %v1339_v60  ;;  %v893_v18 = vpop.f32.mrb[34].mxu1  ;;  %v1342_v59 = vpop.f32.mrb[34].mxu0  ;;  %s2290_s19 = scalar_lea.vmem %s1981_s18, 32768  ;;  %p2295_p1 = scmp.lt.s32.totalorder %s1981_s18, %s1981_s18 }
 0x1b5   :  { %v894_v2 = vadd.f32 %v893_v18, %v3107_v0  ;;  %v1343_v35 = vadd.f32 %v1342_v59, %v3109_v8  ;;  %v895_v38 = vpop.f32.mrb[35].mxu1  ;;  %1210 = vmatmul.mubr.f32.gmra.mrb[140].mxu1 %v725_v27  ;;  %v1344_v1 = vpop.f32.mrb[35].mxu0  ;;  %1659 = vmatmul.mubr.f32.gmra.mrb[140].mxu0 %v725_v27  ;;  %v732_v20 = vmax.f32 %v658_v23, 0.0  ;;  %p2291_p0 = scmp.ne.s32.totalorder %s1981_s18, %s2290_s19  ;;  %p2296_p2 = scmp.lt.s32.totalorder %s2290_s19, %s2290_s19 }
 0x1b6   :  { %v896_v12 = vadd.f32 %v895_v38, %v3113_v13  ;;  %v1345_v41 = vadd.f32 %v1344_v1, %v3115_v58  ;;  %1215 = vmatprep.mubr.f32.mxu1 %v2314_v33  ;;  %1664 = vmatprep.mubr.f32.mxu0 %v2314_v33  ;;  %v731_v38 = vmax.f32 %v653_v26, 0.0 }
 0x1b7   :  { %1723 = vst [vmem:[#allocation2 + $0x20] sm:$0xff] %v894_v2  ;;  %1725 = vst [vmem:[#allocation2 + $0x30] sm:$0xff] %v1343_v35  ;;  %p2297_p3 = por %p2296_p2, %p2295_p1 }
 0x1b8   :  { %1724 = vst [vmem:[#allocation2 + $0x28] sm:$0xff] %v896_v12  ;;  %1726 = vst [vmem:[#allocation2 + $0x38] sm:$0xff] %v1345_v41  ;;  %v899_v11 = vpop.f32.mrb[36].mxu1  ;;  %v1348_v22 = vpop.f32.mrb[36].mxu0 }
 0x1b9   :  { %v900_v29 = vadd.f32 %v899_v11, %v3107_v0  ;;  %v1349_v44 = vadd.f32 %v1348_v22, %v3109_v8  ;;  %v901_v21 = vpop.f32.mrb[37].mxu1  ;;  %1216 = vmatmul.mubr.f32.gmra.mrb[142].mxu1 %v726_v5  ;;  %v1350_v32 = vpop.f32.mrb[37].mxu0  ;;  %1665 = vmatmul.mubr.f32.gmra.mrb[142].mxu0 %v726_v5  ;;  %p2298_p4 = pnand %p2297_p3, %p2291_p0 }
 0x1ba   :  { %v902_v49 = vadd.f32 %v901_v21, %v3113_v13  ;;  %v1351_v28 = vadd.f32 %v1350_v32, %v3115_v58  ;;  %1221 = vmatprep.mubr.f32.mxu1 %v2314_v33  ;;  %1670 = vmatprep.mubr.f32.mxu0 %v2314_v33 }
 0x1bb   :  { %1727 = vst [vmem:[#allocation2 + $0x40] sm:$0xff] %v900_v29  ;;  %1729 = vst [vmem:[#allocation2 + $0x50] sm:$0xff] %v1349_v44  ;;  %v663_v44 = vadd.f32 %v2289_v34, %v2974_v30  ;;  %v668_v30 = vadd.f32 %v2289_v34, %v2972_v25 }
 0x1bc   :  { %1728 = vst [vmem:[#allocation2 + $0x48] sm:$0xff] %v902_v49  ;;  %1730 = vst [vmem:[#allocation2 + $0x58] sm:$0xff] %v1351_v28  ;;  %v905_v37 = vpop.f32.mrb[38].mxu1  ;;  %v1354_v40 = vpop.f32.mrb[38].mxu0 }
 0x1bd   :  { %v906_v39 = vadd.f32 %v905_v37, %v3107_v0  ;;  %v1355_v52 = vadd.f32 %v1354_v40, %v3109_v8  ;;  %v907_v57 = vpop.f32.mrb[39].mxu1  ;;  %1222 = vmatmul.mubr.f32.gmra.mrb[144].mxu1 %v727_v31  ;;  %v1356_v46 = vpop.f32.mrb[39].mxu0  ;;  %1671 = vmatmul.mubr.f32.gmra.mrb[144].mxu0 %v727_v31  ;;  %v734_v25 = vmax.f32 %v668_v30, 0.0 }
 0x1be   :  { %v908_v36 = vadd.f32 %v907_v57, %v3113_v13  ;;  %v1357_v45 = vadd.f32 %v1356_v46, %v3115_v58  ;;  %1227 = vmatprep.mubr.f32.mxu1 %v2314_v33  ;;  %1676 = vmatprep.mubr.f32.mxu0 %v2314_v33 }
 0x1bf   :  { %1731 = vst [vmem:[#allocation2 + $0x60] sm:$0xff] %v906_v39  ;;  %1733 = vst [vmem:[#allocation2 + $0x70] sm:$0xff] %v1355_v52  ;;  %v733_v39 = vmax.f32 %v663_v44, 0.0 }
 0x1c0   :  { %1732 = vst [vmem:[#allocation2 + $0x68] sm:$0xff] %v908_v36  ;;  %1734 = vst [vmem:[#allocation2 + $0x78] sm:$0xff] %v1357_v45  ;;  %v911_v62 = vpop.f32.mrb[40].mxu1  ;;  %v1360_v3 = vpop.f32.mrb[40].mxu0 }
 0x1c1   :  { %v912_v56 = vadd.f32 %v911_v62, %v3107_v0  ;;  %v1361_v42 = vadd.f32 %v1360_v3, %v3109_v8  ;;  %v913_v51 = vpop.f32.mrb[41].mxu1  ;;  %1228 = vmatmul.mubr.f32.gmra.mrb[146].mxu1 %v728_v9  ;;  %v1362_v55 = vpop.f32.mrb[41].mxu0  ;;  %1677 = vmatmul.mubr.f32.gmra.mrb[146].mxu0 %v728_v9 }
 0x1c2   :  { %v914_v4 = vadd.f32 %v913_v51, %v3113_v13  ;;  %v1363_v7 = vadd.f32 %v1362_v55, %v3115_v58  ;;  %1233 = vmatprep.mubr.f32.mxu1 %v2314_v33  ;;  %1682 = vmatprep.mubr.f32.mxu0 %v2314_v33 }
 0x1c3   :  { %1735 = vst [vmem:[#allocation2 + $0x80] sm:$0xff] %v912_v56  ;;  %1737 = vst [vmem:[#allocation2 + $0x90] sm:$0xff] %v1361_v42 }
 0x1c4   :  { %1736 = vst [vmem:[#allocation2 + $0x88] sm:$0xff] %v914_v4  ;;  %1738 = vst [vmem:[#allocation2 + $0x98] sm:$0xff] %v1363_v7  ;;  %v917_v61 = vpop.f32.mrb[42].mxu1  ;;  %v1366_v48 = vpop.f32.mrb[42].mxu0 }
 0x1c5   :  { %v918_v15 = vadd.f32 %v917_v61, %v3107_v0  ;;  %v1367_v63 = vadd.f32 %v1366_v48, %v3109_v8  ;;  %v919_v17 = vpop.f32.mrb[43].mxu1  ;;  %1234 = vmatmul.mubr.f32.gmra.mrb[148].mxu1 %v729_v50  ;;  %v1368_v47 = vpop.f32.mrb[43].mxu0  ;;  %1683 = vmatmul.mubr.f32.gmra.mrb[148].mxu0 %v729_v50 }
 0x1c6   :  { %v920_v54 = vadd.f32 %v919_v17, %v3113_v13  ;;  %v1369_v19 = vadd.f32 %v1368_v47, %v3115_v58  ;;  %1239 = vmatprep.mubr.f32.mxu1 %v2314_v33  ;;  %1688 = vmatprep.mubr.f32.mxu0 %v2314_v33 }
 0x1c7   :  { %1739 = vst [vmem:[#allocation2 + $0xa0] sm:$0xff] %v918_v15  ;;  %1741 = vst [vmem:[#allocation2 + $0xb0] sm:$0xff] %v1367_v63 }
 0x1c8   :  { %1740 = vst [vmem:[#allocation2 + $0xa8] sm:$0xff] %v920_v54  ;;  %1742 = vst [vmem:[#allocation2 + $0xb8] sm:$0xff] %v1369_v19  ;;  %v923_v53 = vpop.f32.mrb[44].mxu1  ;;  %v1372_v60 = vpop.f32.mrb[44].mxu0 }
 0x1c9   :  { %v924_v6 = vadd.f32 %v923_v53, %v3107_v0  ;;  %v1373_v27 = vadd.f32 %v1372_v60, %v3109_v8  ;;  %v925_v18 = vpop.f32.mrb[45].mxu1  ;;  %1240 = vmatmul.mubr.f32.gmra.mrb[150].mxu1 %v730_v16  ;;  %v1374_v59 = vpop.f32.mrb[45].mxu0  ;;  %1689 = vmatmul.mubr.f32.gmra.mrb[150].mxu0 %v730_v16 }
 0x1ca   :  { %v926_v2 = vadd.f32 %v925_v18, %v3113_v13  ;;  %v1375_v35 = vadd.f32 %v1374_v59, %v3115_v58  ;;  %1245 = vmatprep.mubr.f32.mxu1 %v2314_v33  ;;  %1694 = vmatprep.mubr.f32.mxu0 %v2314_v33 }
 0x1cb   :  { %1743 = vst [vmem:[#allocation2 + $0xc0] sm:$0xff] %v924_v6  ;;  %1745 = vst [vmem:[#allocation2 + $0xd0] sm:$0xff] %v1373_v27 }
 0x1cc   :  { %1744 = vst [vmem:[#allocation2 + $0xc8] sm:$0xff] %v926_v2  ;;  %1746 = vst [vmem:[#allocation2 + $0xd8] sm:$0xff] %v1375_v35  ;;  %v929_v1 = vpop.f32.mrb[46].mxu1  ;;  %v1378_v12 = vpop.f32.mrb[46].mxu0 }
 0x1cd   :  { %v930_v41 = vadd.f32 %v929_v1, %v3107_v0  ;;  %v1379_v5 = vadd.f32 %v1378_v12, %v3109_v8  ;;  %v931_v24 = vpop.f32.mrb[47].mxu1  ;;  %1246 = vmatmul.mubr.f32.gmra.mrb[152].mxu1 %v731_v38  ;;  %v1380_v11 = vpop.f32.mrb[47].mxu0  ;;  %1695 = vmatmul.mubr.f32.gmra.mrb[152].mxu0 %v731_v38 }
 0x1ce   :  { %v932_v22 = vadd.f32 %v931_v24, %v3113_v13  ;;  %v1381_v29 = vadd.f32 %v1380_v11, %v3115_v58  ;;  %1251 = vmatprep.mubr.f32.mxu1 %v2314_v33  ;;  %1700 = vmatprep.mubr.f32.mxu0 %v2314_v33 }
 0x1cf   :  { %1747 = vst [vmem:[#allocation2 + $0xe0] sm:$0xff] %v930_v41  ;;  %1749 = vst [vmem:[#allocation2 + $0xf0] sm:$0xff] %v1379_v5 }
 0x1d0   :  { %1748 = vst [vmem:[#allocation2 + $0xe8] sm:$0xff] %v932_v22  ;;  %1750 = vst [vmem:[#allocation2 + $0xf8] sm:$0xff] %v1381_v29  ;;  %v935_v21 = vpop.f32.mrb[48].mxu1  ;;  %v1384_v32 = vpop.f32.mrb[48].mxu0 }
 0x1d1   :  { %v936_v49 = vadd.f32 %v935_v21, %v3107_v0  ;;  %v1385_v28 = vadd.f32 %v1384_v32, %v3109_v8  ;;  %v937_v10 = vpop.f32.mrb[49].mxu1  ;;  %1252 = vmatmul.mubr.f32.gmra.mrb[154].mxu1 %v732_v20  ;;  %v1386_v31 = vpop.f32.mrb[49].mxu0  ;;  %1701 = vmatmul.mubr.f32.gmra.mrb[154].mxu0 %v732_v20 }
 0x1d2   :  { %v938_v37 = vadd.f32 %v937_v10, %v3113_v13  ;;  %v1387_v40 = vadd.f32 %v1386_v31, %v3115_v58  ;;  %1257 = vmatprep.mubr.f32.mxu1 %v2314_v33  ;;  %1706 = vmatprep.mubr.f32.mxu0 %v2314_v33 }
 0x1d3   :  { %1751 = vst [vmem:[#allocation2 + $0x100] sm:$0xff] %v936_v49  ;;  %1753 = vst [vmem:[#allocation2 + $0x110] sm:$0xff] %v1385_v28 }
 0x1d4   :  { %1752 = vst [vmem:[#allocation2 + $0x108] sm:$0xff] %v938_v37  ;;  %1754 = vst [vmem:[#allocation2 + $0x118] sm:$0xff] %v1387_v40  ;;  %v941_v52 = vpop.f32.mrb[50].mxu1  ;;  %v1390_v57 = vpop.f32.mrb[50].mxu0 }
 0x1d5   :  { %v942_v46 = vadd.f32 %v941_v52, %v3107_v0  ;;  %v1391_v36 = vadd.f32 %v1390_v57, %v3109_v8  ;;  %v943_v45 = vpop.f32.mrb[51].mxu1  ;;  %1258 = vmatmul.mubr.f32.gmra.mrb[156].mxu1 %v733_v39  ;;  %v1392_v9 = vpop.f32.mrb[51].mxu0  ;;  %1707 = vmatmul.mubr.f32.gmra.mrb[156].mxu0 %v733_v39 }
 0x1d6   :  { %v944_v43 = vadd.f32 %v943_v45, %v3113_v13  ;;  %v1393_v62 = vadd.f32 %v1392_v9, %v3115_v58  ;;  %1263 = vmatprep.mubr.f32.mxu1 %v2314_v33  ;;  %1712 = vmatprep.mubr.f32.mxu0 %v2314_v33 }
 0x1d7   :  { %1755 = vst [vmem:[#allocation2 + $0x120] sm:$0xff] %v942_v46  ;;  %1757 = vst [vmem:[#allocation2 + $0x130] sm:$0xff] %v1391_v36 }
 0x1d8   :  { %1756 = vst [vmem:[#allocation2 + $0x128] sm:$0xff] %v944_v43  ;;  %1758 = vst [vmem:[#allocation2 + $0x138] sm:$0xff] %v1393_v62  ;;  %v947_v3 = vpop.f32.mrb[52].mxu1  ;;  %v1396_v56 = vpop.f32.mrb[52].mxu0 }
 0x1d9   :  { %v948_v42 = vadd.f32 %v947_v3, %v3107_v0  ;;  %v1397_v51 = vadd.f32 %v1396_v56, %v3109_v8  ;;  %v949_v55 = vpop.f32.mrb[53].mxu1  ;;  %1264 = vmatmul.mubr.f32.gmra.mrb[158].mxu1 %v734_v25  ;;  %v1398_v4 = vpop.f32.mrb[53].mxu0  ;;  %1713 = vmatmul.mubr.f32.gmra.mrb[158].mxu0 %v734_v25 }
 0x1da   :  { %v950_v7 = vadd.f32 %v949_v55, %v3113_v13  ;;  %v1399_v14 = vadd.f32 %v1398_v4, %v3115_v58 }
 0x1db   :  { %1759 = vst [vmem:[#allocation2 + $0x140] sm:$0xff] %v948_v42  ;;  %1761 = vst [vmem:[#allocation2 + $0x150] sm:$0xff] %v1397_v51 }
 0x1dc   :  { %1760 = vst [vmem:[#allocation2 + $0x148] sm:$0xff] %v950_v7  ;;  %1762 = vst [vmem:[#allocation2 + $0x158] sm:$0xff] %v1399_v14  ;;  %v953_v33 = vpop.f32.mrb[54].mxu1  ;;  %v1402_v50 = vpop.f32.mrb[54].mxu0 }
 0x1dd   :  { %v954_v61 = vadd.f32 %v953_v33, %v3107_v0  ;;  %v1403_v48 = vadd.f32 %v1402_v50, %v3109_v8  ;;  %v955_v15 = vpop.f32.mrb[55].mxu1  ;;  %v1404_v63 = vpop.f32.mrb[55].mxu0 }
 0x1de   :  { %v956_v17 = vadd.f32 %v955_v15, %v3113_v13  ;;  %v1405_v47 = vadd.f32 %v1404_v63, %v3115_v58 }
 0x1df   :  { %1763 = vst [vmem:[#allocation2 + $0x160] sm:$0xff] %v954_v61  ;;  %1765 = vst [vmem:[#allocation2 + $0x170] sm:$0xff] %v1403_v48 }
 0x1e0   :  { %1764 = vst [vmem:[#allocation2 + $0x168] sm:$0xff] %v956_v17  ;;  %1766 = vst [vmem:[#allocation2 + $0x178] sm:$0xff] %v1405_v47  ;;  %v959_v54 = vpop.f32.mrb[56].mxu1  ;;  %v1408_v19 = vpop.f32.mrb[56].mxu0 }
 0x1e1   :  { %v960_v16 = vadd.f32 %v959_v54, %v3107_v0  ;;  %v1409_v26 = vadd.f32 %v1408_v19, %v3109_v8  ;;  %v961_v53 = vpop.f32.mrb[57].mxu1  ;;  %v1410_v60 = vpop.f32.mrb[57].mxu0 }
 0x1e2   :  { %v962_v6 = vadd.f32 %v961_v53, %v3113_v13  ;;  %v1411_v27 = vadd.f32 %v1410_v60, %v3115_v58 }
 0x1e3   :  { %1767 = vst [vmem:[#allocation2 + $0x180] sm:$0xff] %v960_v16  ;;  %1769 = vst [vmem:[#allocation2 + $0x190] sm:$0xff] %v1409_v26 }
 0x1e4   :  { %1768 = vst [vmem:[#allocation2 + $0x188] sm:$0xff] %v962_v6  ;;  %1770 = vst [vmem:[#allocation2 + $0x198] sm:$0xff] %v1411_v27  ;;  %v965_v18 = vpop.f32.mrb[58].mxu1  ;;  %v1414_v59 = vpop.f32.mrb[58].mxu0 }
 0x1e5   :  { %v966_v2 = vadd.f32 %v965_v18, %v3107_v0  ;;  %v1415_v35 = vadd.f32 %v1414_v59, %v3109_v8  ;;  %v967_v34 = vpop.f32.mrb[59].mxu1  ;;  %v1416_v23 = vpop.f32.mrb[59].mxu0 }
 0x1e6   :  { %v968_v38 = vadd.f32 %v967_v34, %v3113_v13  ;;  %v1417_v1 = vadd.f32 %v1416_v23, %v3115_v58 }
 0x1e7   :  { %1771 = vst [vmem:[#allocation2 + $0x1a0] sm:$0xff] %v966_v2  ;;  %1773 = vst [vmem:[#allocation2 + $0x1b0] sm:$0xff] %v1415_v35 }
 0x1e8   :  { %1772 = vst [vmem:[#allocation2 + $0x1a8] sm:$0xff] %v968_v38  ;;  %1774 = vst [vmem:[#allocation2 + $0x1b8] sm:$0xff] %v1417_v1  ;;  %v971_v12 = vpop.f32.mrb[60].mxu1  ;;  %v1420_v41 = vpop.f32.mrb[60].mxu0 }
 0x1e9   :  { %v972_v5 = vadd.f32 %v971_v12, %v3107_v0  ;;  %v1421_v24 = vadd.f32 %v1420_v41, %v3109_v8  ;;  %v973_v11 = vpop.f32.mrb[61].mxu1  ;;  %v1422_v22 = vpop.f32.mrb[61].mxu0 }
 0x1ea   :  { %v974_v29 = vadd.f32 %v973_v11, %v3113_v13  ;;  %v1423_v20 = vadd.f32 %v1422_v22, %v3115_v58 }
 0x1eb   :  { %1775 = vst [vmem:[#allocation2 + $0x1c0] sm:$0xff] %v972_v5  ;;  %1777 = vst [vmem:[#allocation2 + $0x1d0] sm:$0xff] %v1421_v24 }
 0x1ec   :  { %1776 = vst [vmem:[#allocation2 + $0x1c8] sm:$0xff] %v974_v29  ;;  %1778 = vst [vmem:[#allocation2 + $0x1d8] sm:$0xff] %v1423_v20  ;;  %v977_v44 = vpop.f32.mrb[62].mxu1  ;;  %v1426_v21 = vpop.f32.mrb[62].mxu0 }
 0x1ed   :  { %v978_v32 = vadd.f32 %v977_v44, %v3107_v0  ;;  %v1427_v49 = vadd.f32 %v1426_v21, %v3109_v8  ;;  %v979_v28 = vpop.f32.mrb[63].mxu1  ;;  %v1428_v10 = vpop.f32.mrb[63].mxu0 }
 0x1ee   :  { %v980_v31 = vadd.f32 %v979_v28, %v3113_v13  ;;  %v1429_v37 = vadd.f32 %v1428_v10, %v3115_v58 }
 0x1ef   :  { %1779 = vst [vmem:[#allocation2 + $0x1e0] sm:$0xff] %v978_v32  ;;  %1781 = vst [vmem:[#allocation2 + $0x1f0] sm:$0xff] %v1427_v49 }
 0x1f0   :  { %1780 = vst [vmem:[#allocation2 + $0x1e8] sm:$0xff] %v980_v31  ;;  %1782 = vst [vmem:[#allocation2 + $0x1f8] sm:$0xff] %v1429_v37  ;;  %v983_v40 = vpop.f32.mrb[64].mxu1  ;;  %v1432_v30 = vpop.f32.mrb[64].mxu0 }
 0x1f1   :  { %v984_v39 = vadd.f32 %v983_v40, %v3107_v0  ;;  %v1433_v52 = vadd.f32 %v1432_v30, %v3109_v8  ;;  %v985_v57 = vpop.f32.mrb[65].mxu1  ;;  %v1434_v46 = vpop.f32.mrb[65].mxu0 }
 0x1f2   :  { %v986_v36 = vadd.f32 %v985_v57, %v3113_v13  ;;  %v1435_v45 = vadd.f32 %v1434_v46, %v3115_v58 }
 0x1f3   :  { %1783 = vst [vmem:[#allocation2 + $0x200] sm:$0xff] %v984_v39  ;;  %1785 = vst [vmem:[#allocation2 + $0x210] sm:$0xff] %v1433_v52 }
 0x1f4   :  { %1784 = vst [vmem:[#allocation2 + $0x208] sm:$0xff] %v986_v36  ;;  %1786 = vst [vmem:[#allocation2 + $0x218] sm:$0xff] %v1435_v45  ;;  %v989_v9 = vpop.f32.mrb[66].mxu1  ;;  %v1438_v43 = vpop.f32.mrb[66].mxu0 }
 0x1f5   :  { %v990_v62 = vadd.f32 %v989_v9, %v3107_v0  ;;  %v1439_v25 = vadd.f32 %v1438_v43, %v3109_v8  ;;  %v991_v3 = vpop.f32.mrb[67].mxu1  ;;  %v1440_v56 = vpop.f32.mrb[67].mxu0 }
 0x1f6   :  { %v992_v42 = vadd.f32 %v991_v3, %v3113_v13  ;;  %v1441_v51 = vadd.f32 %v1440_v56, %v3115_v58 }
 0x1f7   :  { %1787 = vst [vmem:[#allocation2 + $0x220] sm:$0xff] %v990_v62  ;;  %1789 = vst [vmem:[#allocation2 + $0x230] sm:$0xff] %v1439_v25 }
 0x1f8   :  { %1788 = vst [vmem:[#allocation2 + $0x228] sm:$0xff] %v992_v42  ;;  %1790 = vst [vmem:[#allocation2 + $0x238] sm:$0xff] %v1441_v51  ;;  %v995_v55 = vpop.f32.mrb[68].mxu1  ;;  %v1444_v4 = vpop.f32.mrb[68].mxu0 }
 0x1f9   :  { %v996_v7 = vadd.f32 %v995_v55, %v3107_v0  ;;  %v1445_v14 = vadd.f32 %v1444_v4, %v3109_v8  ;;  %v997_v33 = vpop.f32.mrb[69].mxu1  ;;  %v1446_v50 = vpop.f32.mrb[69].mxu0 }
 0x1fa   :  { %v998_v61 = vadd.f32 %v997_v33, %v3113_v13  ;;  %v1447_v48 = vadd.f32 %v1446_v50, %v3115_v58 }
 0x1fb   :  { %1791 = vst [vmem:[#allocation2 + $0x240] sm:$0xff] %v996_v7  ;;  %1793 = vst [vmem:[#allocation2 + $0x250] sm:$0xff] %v1445_v14 }
 0x1fc   :  { %1792 = vst [vmem:[#allocation2 + $0x248] sm:$0xff] %v998_v61  ;;  %1794 = vst [vmem:[#allocation2 + $0x258] sm:$0xff] %v1447_v48  ;;  %v1001_v15 = vpop.f32.mrb[70].mxu1  ;;  %v1450_v63 = vpop.f32.mrb[70].mxu0 }
 0x1fd   :  { %v1002_v17 = vadd.f32 %v1001_v15, %v3107_v0  ;;  %v1451_v47 = vadd.f32 %v1450_v63, %v3109_v8  ;;  %v1003_v54 = vpop.f32.mrb[71].mxu1  ;;  %v1452_v19 = vpop.f32.mrb[71].mxu0 }
 0x1fe   :  { %v1004_v16 = vadd.f32 %v1003_v54, %v3113_v13  ;;  %v1453_v26 = vadd.f32 %v1452_v19, %v3115_v58 }
 0x1ff   :  { %1795 = vst [vmem:[#allocation2 + $0x260] sm:$0xff] %v1002_v17  ;;  %1797 = vst [vmem:[#allocation2 + $0x270] sm:$0xff] %v1451_v47 }
 0x200   :  { %1796 = vst [vmem:[#allocation2 + $0x268] sm:$0xff] %v1004_v16  ;;  %1798 = vst [vmem:[#allocation2 + $0x278] sm:$0xff] %v1453_v26  ;;  %v1007_v53 = vpop.f32.mrb[72].mxu1  ;;  %v1456_v60 = vpop.f32.mrb[72].mxu0 }
 0x201   :  { %v1008_v6 = vadd.f32 %v1007_v53, %v3107_v0  ;;  %v1457_v27 = vadd.f32 %v1456_v60, %v3109_v8  ;;  %v1009_v18 = vpop.f32.mrb[73].mxu1  ;;  %v1458_v59 = vpop.f32.mrb[73].mxu0 }
 0x202   :  { %v1010_v2 = vadd.f32 %v1009_v18, %v3113_v13  ;;  %v1459_v35 = vadd.f32 %v1458_v59, %v3115_v58 }
 0x203   :  { %1799 = vst [vmem:[#allocation2 + $0x280] sm:$0xff] %v1008_v6  ;;  %1801 = vst [vmem:[#allocation2 + $0x290] sm:$0xff] %v1457_v27 }
 0x204   :  { %1800 = vst [vmem:[#allocation2 + $0x288] sm:$0xff] %v1010_v2  ;;  %1802 = vst [vmem:[#allocation2 + $0x298] sm:$0xff] %v1459_v35  ;;  %v1013_v34 = vpop.f32.mrb[74].mxu1  ;;  %v1462_v23 = vpop.f32.mrb[74].mxu0 }
 0x205   :  { %v1014_v38 = vadd.f32 %v1013_v34, %v3107_v0  ;;  %v1463_v1 = vadd.f32 %v1462_v23, %v3109_v8  ;;  %v1015_v12 = vpop.f32.mrb[75].mxu1  ;;  %v1464_v41 = vpop.f32.mrb[75].mxu0 }
 0x206   :  { %v1016_v5 = vadd.f32 %v1015_v12, %v3113_v13  ;;  %v1465_v24 = vadd.f32 %v1464_v41, %v3115_v58 }
 0x207   :  { %1803 = vst [vmem:[#allocation2 + $0x2a0] sm:$0xff] %v1014_v38  ;;  %1805 = vst [vmem:[#allocation2 + $0x2b0] sm:$0xff] %v1463_v1 }
 0x208   :  { %1804 = vst [vmem:[#allocation2 + $0x2a8] sm:$0xff] %v1016_v5  ;;  %1806 = vst [vmem:[#allocation2 + $0x2b8] sm:$0xff] %v1465_v24  ;;  %v1019_v11 = vpop.f32.mrb[76].mxu1  ;;  %v1468_v22 = vpop.f32.mrb[76].mxu0 }
 0x209   :  { %v1020_v29 = vadd.f32 %v1019_v11, %v3107_v0  ;;  %v1469_v20 = vadd.f32 %v1468_v22, %v3109_v8  ;;  %v1021_v44 = vpop.f32.mrb[77].mxu1  ;;  %v1470_v21 = vpop.f32.mrb[77].mxu0 }
 0x20a   :  { %v1022_v32 = vadd.f32 %v1021_v44, %v3113_v13  ;;  %v1471_v49 = vadd.f32 %v1470_v21, %v3115_v58 }
 0x20b   :  { %1807 = vst [vmem:[#allocation2 + $0x2c0] sm:$0xff] %v1020_v29  ;;  %1809 = vst [vmem:[#allocation2 + $0x2d0] sm:$0xff] %v1469_v20 }
 0x20c   :  { %1808 = vst [vmem:[#allocation2 + $0x2c8] sm:$0xff] %v1022_v32  ;;  %1810 = vst [vmem:[#allocation2 + $0x2d8] sm:$0xff] %v1471_v49  ;;  %v1025_v28 = vpop.f32.mrb[78].mxu1  ;;  %v1474_v10 = vpop.f32.mrb[78].mxu0 }
 0x20d   :  { %v1026_v31 = vadd.f32 %v1025_v28, %v3107_v0  ;;  %v1475_v37 = vadd.f32 %v1474_v10, %v3109_v8  ;;  %v1027_v40 = vpop.f32.mrb[79].mxu1  ;;  %v1476_v30 = vpop.f32.mrb[79].mxu0 }
 0x20e   :  { %v1028_v39 = vadd.f32 %v1027_v40, %v3113_v13  ;;  %v1477_v52 = vadd.f32 %v1476_v30, %v3115_v58 }
 0x20f   :  { %1811 = vst [vmem:[#allocation2 + $0x2e0] sm:$0xff] %v1026_v31  ;;  %1813 = vst [vmem:[#allocation2 + $0x2f0] sm:$0xff] %v1475_v37 }
 0x210   :  { %1812 = vst [vmem:[#allocation2 + $0x2e8] sm:$0xff] %v1028_v39  ;;  %1814 = vst [vmem:[#allocation2 + $0x2f8] sm:$0xff] %v1477_v52  ;;  %v1031_v57 = vpop.f32.mrb[80].mxu1  ;;  %v1480_v46 = vpop.f32.mrb[80].mxu0 }
 0x211   :  { %v1032_v36 = vadd.f32 %v1031_v57, %v3107_v0  ;;  %v1481_v45 = vadd.f32 %v1480_v46, %v3109_v8  ;;  %v1033_v9 = vpop.f32.mrb[81].mxu1  ;;  %v1482_v43 = vpop.f32.mrb[81].mxu0 }
 0x212   :  { %v1034_v62 = vadd.f32 %v1033_v9, %v3113_v13  ;;  %v1483_v25 = vadd.f32 %v1482_v43, %v3115_v58 }
 0x213   :  { %1815 = vst [vmem:[#allocation2 + $0x300] sm:$0xff] %v1032_v36  ;;  %1817 = vst [vmem:[#allocation2 + $0x310] sm:$0xff] %v1481_v45 }
 0x214   :  { %1816 = vst [vmem:[#allocation2 + $0x308] sm:$0xff] %v1034_v62  ;;  %1818 = vst [vmem:[#allocation2 + $0x318] sm:$0xff] %v1483_v25  ;;  %v1037_v3 = vpop.f32.mrb[82].mxu1  ;;  %v1486_v56 = vpop.f32.mrb[82].mxu0 }
 0x215   :  { %v1038_v42 = vadd.f32 %v1037_v3, %v3107_v0  ;;  %v1487_v51 = vadd.f32 %v1486_v56, %v3109_v8  ;;  %v1039_v55 = vpop.f32.mrb[83].mxu1  ;;  %v1488_v4 = vpop.f32.mrb[83].mxu0 }
 0x216   :  { %v1040_v7 = vadd.f32 %v1039_v55, %v3113_v13  ;;  %v1489_v14 = vadd.f32 %v1488_v4, %v3115_v58 }
 0x217   :  { %1819 = vst [vmem:[#allocation2 + $0x320] sm:$0xff] %v1038_v42  ;;  %1821 = vst [vmem:[#allocation2 + $0x330] sm:$0xff] %v1487_v51 }
 0x218   :  { %1820 = vst [vmem:[#allocation2 + $0x328] sm:$0xff] %v1040_v7  ;;  %1822 = vst [vmem:[#allocation2 + $0x338] sm:$0xff] %v1489_v14  ;;  %v1043_v33 = vpop.f32.mrb[84].mxu1  ;;  %v1492_v50 = vpop.f32.mrb[84].mxu0 }
 0x219   :  { %v1044_v61 = vadd.f32 %v1043_v33, %v3107_v0  ;;  %v1493_v48 = vadd.f32 %v1492_v50, %v3109_v8  ;;  %v1045_v15 = vpop.f32.mrb[85].mxu1  ;;  %v1494_v63 = vpop.f32.mrb[85].mxu0 }
 0x21a   :  { %v1046_v17 = vadd.f32 %v1045_v15, %v3113_v13  ;;  %v1495_v47 = vadd.f32 %v1494_v63, %v3115_v58 }
 0x21b   :  { %1823 = vst [vmem:[#allocation2 + $0x340] sm:$0xff] %v1044_v61  ;;  %1825 = vst [vmem:[#allocation2 + $0x350] sm:$0xff] %v1493_v48 }
 0x21c   :  { %1824 = vst [vmem:[#allocation2 + $0x348] sm:$0xff] %v1046_v17  ;;  %1826 = vst [vmem:[#allocation2 + $0x358] sm:$0xff] %v1495_v47  ;;  %v1049_v54 = vpop.f32.mrb[86].mxu1  ;;  %v1498_v19 = vpop.f32.mrb[86].mxu0 }
 0x21d   :  { %v1050_v16 = vadd.f32 %v1049_v54, %v3107_v0  ;;  %v1499_v26 = vadd.f32 %v1498_v19, %v3109_v8  ;;  %v1051_v53 = vpop.f32.mrb[87].mxu1  ;;  %v1500_v60 = vpop.f32.mrb[87].mxu0 }
 0x21e   :  { %v1052_v6 = vadd.f32 %v1051_v53, %v3113_v13  ;;  %v1501_v27 = vadd.f32 %v1500_v60, %v3115_v58 }
 0x21f   :  { %1827 = vst [vmem:[#allocation2 + $0x360] sm:$0xff] %v1050_v16  ;;  %1829 = vst [vmem:[#allocation2 + $0x370] sm:$0xff] %v1499_v26 }
 0x220   :  { %1828 = vst [vmem:[#allocation2 + $0x368] sm:$0xff] %v1052_v6  ;;  %1830 = vst [vmem:[#allocation2 + $0x378] sm:$0xff] %v1501_v27  ;;  %v1055_v18 = vpop.f32.mrb[88].mxu1  ;;  %v1504_v59 = vpop.f32.mrb[88].mxu0 }
 0x221   :  { %v1056_v2 = vadd.f32 %v1055_v18, %v3107_v0  ;;  %v1505_v35 = vadd.f32 %v1504_v59, %v3109_v8  ;;  %v1057_v34 = vpop.f32.mrb[89].mxu1  ;;  %v1506_v23 = vpop.f32.mrb[89].mxu0 }
 0x222   :  { %v1058_v38 = vadd.f32 %v1057_v34, %v3113_v13  ;;  %v1507_v1 = vadd.f32 %v1506_v23, %v3115_v58 }
 0x223   :  { %1831 = vst [vmem:[#allocation2 + $0x380] sm:$0xff] %v1056_v2  ;;  %1833 = vst [vmem:[#allocation2 + $0x390] sm:$0xff] %v1505_v35 }
 0x224   :  { %1832 = vst [vmem:[#allocation2 + $0x388] sm:$0xff] %v1058_v38  ;;  %1834 = vst [vmem:[#allocation2 + $0x398] sm:$0xff] %v1507_v1  ;;  %v1061_v12 = vpop.f32.mrb[90].mxu1  ;;  %v1510_v41 = vpop.f32.mrb[90].mxu0 }
 0x225   :  { %v1062_v5 = vadd.f32 %v1061_v12, %v3107_v0  ;;  %v1511_v24 = vadd.f32 %v1510_v41, %v3109_v8  ;;  %v1063_v11 = vpop.f32.mrb[91].mxu1  ;;  %v1512_v22 = vpop.f32.mrb[91].mxu0 }
 0x226   :  { %v1064_v29 = vadd.f32 %v1063_v11, %v3113_v13  ;;  %v1513_v20 = vadd.f32 %v1512_v22, %v3115_v58 }
 0x227   :  { %1835 = vst [vmem:[#allocation2 + $0x3a0] sm:$0xff] %v1062_v5  ;;  %1837 = vst [vmem:[#allocation2 + $0x3b0] sm:$0xff] %v1511_v24 }
 0x228   :  { %1836 = vst [vmem:[#allocation2 + $0x3a8] sm:$0xff] %v1064_v29  ;;  %1838 = vst [vmem:[#allocation2 + $0x3b8] sm:$0xff] %v1513_v20  ;;  %v1067_v44 = vpop.f32.mrb[92].mxu1  ;;  %v1516_v21 = vpop.f32.mrb[92].mxu0 }
 0x229   :  { %v1068_v32 = vadd.f32 %v1067_v44, %v3107_v0  ;;  %v1517_v49 = vadd.f32 %v1516_v21, %v3109_v8  ;;  %v1069_v28 = vpop.f32.mrb[93].mxu1  ;;  %v1518_v10 = vpop.f32.mrb[93].mxu0 }
 0x22a   :  { %v1070_v31 = vadd.f32 %v1069_v28, %v3113_v13  ;;  %v1519_v37 = vadd.f32 %v1518_v10, %v3115_v58 }
 0x22b   :  { %1839 = vst [vmem:[#allocation2 + $0x3c0] sm:$0xff] %v1068_v32  ;;  %1841 = vst [vmem:[#allocation2 + $0x3d0] sm:$0xff] %v1517_v49 }
 0x22c   :  { %1840 = vst [vmem:[#allocation2 + $0x3c8] sm:$0xff] %v1070_v31  ;;  %1842 = vst [vmem:[#allocation2 + $0x3d8] sm:$0xff] %v1519_v37  ;;  %v1073_v40 = vpop.f32.mrb[94].mxu1  ;;  %v1522_v30 = vpop.f32.mrb[94].mxu0 }
 0x22d   :  { %v1074_v39 = vadd.f32 %v1073_v40, %v3107_v0  ;;  %v1523_v52 = vadd.f32 %v1522_v30, %v3109_v8  ;;  %v1075_v57 = vpop.f32.mrb[95].mxu1  ;;  %v1524_v46 = vpop.f32.mrb[95].mxu0 }
 0x22e   :  { %v1076_v36 = vadd.f32 %v1075_v57, %v3113_v13  ;;  %v1525_v45 = vadd.f32 %v1524_v46, %v3115_v58 }
 0x22f   :  { %1843 = vst [vmem:[#allocation2 + $0x3e0] sm:$0xff] %v1074_v39  ;;  %1845 = vst [vmem:[#allocation2 + $0x3f0] sm:$0xff] %v1523_v52 }
 0x230   :  { %1844 = vst [vmem:[#allocation2 + $0x3e8] sm:$0xff] %v1076_v36  ;;  %1846 = vst [vmem:[#allocation2 + $0x3f8] sm:$0xff] %v1525_v45  ;;  %v1079_v9 = vpop.f32.mrb[96].mxu1  ;;  %v1528_v43 = vpop.f32.mrb[96].mxu0 }
 0x231   :  { %v1080_v62 = vadd.f32 %v1079_v9, %v3107_v0  ;;  %v1529_v25 = vadd.f32 %v1528_v43, %v3109_v8  ;;  %v1081_v3 = vpop.f32.mrb[97].mxu1  ;;  %v1530_v56 = vpop.f32.mrb[97].mxu0 }
 0x232   :  { %v1082_v42 = vadd.f32 %v1081_v3, %v3113_v13  ;;  %v1531_v51 = vadd.f32 %v1530_v56, %v3115_v58 }
 0x233   :  { %1847 = vst [vmem:[#allocation2 + $0x400] sm:$0xff] %v1080_v62  ;;  %1849 = vst [vmem:[#allocation2 + $0x410] sm:$0xff] %v1529_v25 }
 0x234   :  { %1848 = vst [vmem:[#allocation2 + $0x408] sm:$0xff] %v1082_v42  ;;  %1850 = vst [vmem:[#allocation2 + $0x418] sm:$0xff] %v1531_v51  ;;  %v1085_v55 = vpop.f32.mrb[98].mxu1  ;;  %v1534_v4 = vpop.f32.mrb[98].mxu0 }
 0x235   :  { %v1086_v7 = vadd.f32 %v1085_v55, %v3107_v0  ;;  %v1535_v14 = vadd.f32 %v1534_v4, %v3109_v8  ;;  %v1087_v33 = vpop.f32.mrb[99].mxu1  ;;  %v1536_v50 = vpop.f32.mrb[99].mxu0 }
 0x236   :  { %v1088_v61 = vadd.f32 %v1087_v33, %v3113_v13  ;;  %v1537_v48 = vadd.f32 %v1536_v50, %v3115_v58 }
 0x237   :  { %1851 = vst [vmem:[#allocation2 + $0x420] sm:$0xff] %v1086_v7  ;;  %1853 = vst [vmem:[#allocation2 + $0x430] sm:$0xff] %v1535_v14 }
 0x238   :  { %1852 = vst [vmem:[#allocation2 + $0x428] sm:$0xff] %v1088_v61  ;;  %1854 = vst [vmem:[#allocation2 + $0x438] sm:$0xff] %v1537_v48  ;;  %v1091_v15 = vpop.f32.mrb[100].mxu1  ;;  %v1540_v63 = vpop.f32.mrb[100].mxu0 }
 0x239   :  { %v1092_v17 = vadd.f32 %v1091_v15, %v3107_v0  ;;  %v1541_v47 = vadd.f32 %v1540_v63, %v3109_v8  ;;  %v1093_v54 = vpop.f32.mrb[101].mxu1  ;;  %v1542_v19 = vpop.f32.mrb[101].mxu0 }
 0x23a   :  { %v1094_v16 = vadd.f32 %v1093_v54, %v3113_v13  ;;  %v1543_v26 = vadd.f32 %v1542_v19, %v3115_v58 }
 0x23b   :  { %1855 = vst [vmem:[#allocation2 + $0x440] sm:$0xff] %v1092_v17  ;;  %1857 = vst [vmem:[#allocation2 + $0x450] sm:$0xff] %v1541_v47 }
 0x23c   :  { %1856 = vst [vmem:[#allocation2 + $0x448] sm:$0xff] %v1094_v16  ;;  %1858 = vst [vmem:[#allocation2 + $0x458] sm:$0xff] %v1543_v26  ;;  %v1097_v53 = vpop.f32.mrb[102].mxu1  ;;  %v1546_v60 = vpop.f32.mrb[102].mxu0 }
 0x23d   :  { %v1098_v6 = vadd.f32 %v1097_v53, %v3107_v0  ;;  %v1547_v27 = vadd.f32 %v1546_v60, %v3109_v8  ;;  %v1099_v18 = vpop.f32.mrb[103].mxu1  ;;  %v1548_v59 = vpop.f32.mrb[103].mxu0 }
 0x23e   :  { %v1100_v2 = vadd.f32 %v1099_v18, %v3113_v13  ;;  %v1549_v35 = vadd.f32 %v1548_v59, %v3115_v58 }
 0x23f   :  { %1859 = vst [vmem:[#allocation2 + $0x460] sm:$0xff] %v1098_v6  ;;  %1861 = vst [vmem:[#allocation2 + $0x470] sm:$0xff] %v1547_v27 }
 0x240   :  { %1860 = vst [vmem:[#allocation2 + $0x468] sm:$0xff] %v1100_v2  ;;  %1862 = vst [vmem:[#allocation2 + $0x478] sm:$0xff] %v1549_v35  ;;  %v1103_v34 = vpop.f32.mrb[104].mxu1  ;;  %v1552_v23 = vpop.f32.mrb[104].mxu0 }
 0x241   :  { %v1104_v38 = vadd.f32 %v1103_v34, %v3107_v0  ;;  %v1553_v1 = vadd.f32 %v1552_v23, %v3109_v8  ;;  %v1105_v12 = vpop.f32.mrb[105].mxu1  ;;  %v1554_v41 = vpop.f32.mrb[105].mxu0 }
 0x242   :  { %v1106_v5 = vadd.f32 %v1105_v12, %v3113_v13  ;;  %v1555_v24 = vadd.f32 %v1554_v41, %v3115_v58 }
 0x243   :  { %1863 = vst [vmem:[#allocation2 + $0x480] sm:$0xff] %v1104_v38  ;;  %1865 = vst [vmem:[#allocation2 + $0x490] sm:$0xff] %v1553_v1 }
 0x244   :  { %1864 = vst [vmem:[#allocation2 + $0x488] sm:$0xff] %v1106_v5  ;;  %1866 = vst [vmem:[#allocation2 + $0x498] sm:$0xff] %v1555_v24  ;;  %v1109_v11 = vpop.f32.mrb[106].mxu1  ;;  %v1558_v22 = vpop.f32.mrb[106].mxu0 }
 0x245   :  { %v1110_v29 = vadd.f32 %v1109_v11, %v3107_v0  ;;  %v1559_v20 = vadd.f32 %v1558_v22, %v3109_v8  ;;  %v1111_v44 = vpop.f32.mrb[107].mxu1  ;;  %v1560_v21 = vpop.f32.mrb[107].mxu0 }
 0x246   :  { %v1112_v32 = vadd.f32 %v1111_v44, %v3113_v13  ;;  %v1561_v49 = vadd.f32 %v1560_v21, %v3115_v58 }
 0x247   :  { %1867 = vst [vmem:[#allocation2 + $0x4a0] sm:$0xff] %v1110_v29  ;;  %1869 = vst [vmem:[#allocation2 + $0x4b0] sm:$0xff] %v1559_v20 }
 0x248   :  { %1868 = vst [vmem:[#allocation2 + $0x4a8] sm:$0xff] %v1112_v32  ;;  %1870 = vst [vmem:[#allocation2 + $0x4b8] sm:$0xff] %v1561_v49  ;;  %v1115_v28 = vpop.f32.mrb[108].mxu1  ;;  %v1564_v10 = vpop.f32.mrb[108].mxu0 }
 0x249   :  { %v1116_v31 = vadd.f32 %v1115_v28, %v3107_v0  ;;  %v1565_v37 = vadd.f32 %v1564_v10, %v3109_v8  ;;  %v1117_v40 = vpop.f32.mrb[109].mxu1  ;;  %v1566_v30 = vpop.f32.mrb[109].mxu0 }
 0x24a   :  { %v1118_v39 = vadd.f32 %v1117_v40, %v3113_v13  ;;  %v1567_v52 = vadd.f32 %v1566_v30, %v3115_v58 }
 0x24b   :  { %1871 = vst [vmem:[#allocation2 + $0x4c0] sm:$0xff] %v1116_v31  ;;  %1873 = vst [vmem:[#allocation2 + $0x4d0] sm:$0xff] %v1565_v37 }
 0x24c   :  { %1872 = vst [vmem:[#allocation2 + $0x4c8] sm:$0xff] %v1118_v39  ;;  %1874 = vst [vmem:[#allocation2 + $0x4d8] sm:$0xff] %v1567_v52  ;;  %v1121_v57 = vpop.f32.mrb[110].mxu1  ;;  %v1570_v46 = vpop.f32.mrb[110].mxu0 }
 0x24d   :  { %v1122_v36 = vadd.f32 %v1121_v57, %v3107_v0  ;;  %v1571_v45 = vadd.f32 %v1570_v46, %v3109_v8  ;;  %v1123_v9 = vpop.f32.mrb[111].mxu1  ;;  %v1572_v43 = vpop.f32.mrb[111].mxu0 }
 0x24e   :  { %v1124_v62 = vadd.f32 %v1123_v9, %v3113_v13  ;;  %v1573_v25 = vadd.f32 %v1572_v43, %v3115_v58 }
 0x24f   :  { %1875 = vst [vmem:[#allocation2 + $0x4e0] sm:$0xff] %v1122_v36  ;;  %1877 = vst [vmem:[#allocation2 + $0x4f0] sm:$0xff] %v1571_v45 }
 0x250   :  { %1876 = vst [vmem:[#allocation2 + $0x4e8] sm:$0xff] %v1124_v62  ;;  %1878 = vst [vmem:[#allocation2 + $0x4f8] sm:$0xff] %v1573_v25  ;;  %v1127_v3 = vpop.f32.mrb[112].mxu1  ;;  %v1576_v56 = vpop.f32.mrb[112].mxu0 }
 0x251   :  { %v1128_v42 = vadd.f32 %v1127_v3, %v3107_v0  ;;  %v1577_v51 = vadd.f32 %v1576_v56, %v3109_v8  ;;  %v1129_v55 = vpop.f32.mrb[113].mxu1  ;;  %v1578_v4 = vpop.f32.mrb[113].mxu0 }
 0x252   :  { %v1130_v7 = vadd.f32 %v1129_v55, %v3113_v13  ;;  %v1579_v14 = vadd.f32 %v1578_v4, %v3115_v58 }
 0x253   :  { %1879 = vst [vmem:[#allocation2 + $0x500] sm:$0xff] %v1128_v42  ;;  %1881 = vst [vmem:[#allocation2 + $0x510] sm:$0xff] %v1577_v51 }
 0x254   :  { %1880 = vst [vmem:[#allocation2 + $0x508] sm:$0xff] %v1130_v7  ;;  %1882 = vst [vmem:[#allocation2 + $0x518] sm:$0xff] %v1579_v14  ;;  %v1133_v33 = vpop.f32.mrb[114].mxu1  ;;  %v1582_v50 = vpop.f32.mrb[114].mxu0 }
 0x255   :  { %v1134_v61 = vadd.f32 %v1133_v33, %v3107_v0  ;;  %v1583_v48 = vadd.f32 %v1582_v50, %v3109_v8  ;;  %v1135_v15 = vpop.f32.mrb[115].mxu1  ;;  %v1584_v63 = vpop.f32.mrb[115].mxu0 }
 0x256   :  { %v1136_v17 = vadd.f32 %v1135_v15, %v3113_v13  ;;  %v1585_v47 = vadd.f32 %v1584_v63, %v3115_v58 }
 0x257   :  { %1883 = vst [vmem:[#allocation2 + $0x520] sm:$0xff] %v1134_v61  ;;  %1885 = vst [vmem:[#allocation2 + $0x530] sm:$0xff] %v1583_v48 }
 0x258   :  { %1884 = vst [vmem:[#allocation2 + $0x528] sm:$0xff] %v1136_v17  ;;  %1886 = vst [vmem:[#allocation2 + $0x538] sm:$0xff] %v1585_v47  ;;  %v1139_v54 = vpop.f32.mrb[116].mxu1  ;;  %v1588_v19 = vpop.f32.mrb[116].mxu0 }
 0x259   :  { %v1140_v16 = vadd.f32 %v1139_v54, %v3107_v0  ;;  %v1589_v26 = vadd.f32 %v1588_v19, %v3109_v8  ;;  %v1141_v53 = vpop.f32.mrb[117].mxu1  ;;  %v1590_v60 = vpop.f32.mrb[117].mxu0 }
 0x25a   :  { %v1142_v6 = vadd.f32 %v1141_v53, %v3113_v13  ;;  %v1591_v27 = vadd.f32 %v1590_v60, %v3115_v58 }
 0x25b   :  { %1887 = vst [vmem:[#allocation2 + $0x540] sm:$0xff] %v1140_v16  ;;  %1889 = vst [vmem:[#allocation2 + $0x550] sm:$0xff] %v1589_v26 }
 0x25c   :  { %1888 = vst [vmem:[#allocation2 + $0x548] sm:$0xff] %v1142_v6  ;;  %1890 = vst [vmem:[#allocation2 + $0x558] sm:$0xff] %v1591_v27  ;;  %v1145_v18 = vpop.f32.mrb[118].mxu1  ;;  %v1594_v59 = vpop.f32.mrb[118].mxu0 }
 0x25d   :  { %v1146_v2 = vadd.f32 %v1145_v18, %v3107_v0  ;;  %v1595_v35 = vadd.f32 %v1594_v59, %v3109_v8  ;;  %v1147_v34 = vpop.f32.mrb[119].mxu1  ;;  %v1596_v23 = vpop.f32.mrb[119].mxu0 }
 0x25e   :  { %v1148_v38 = vadd.f32 %v1147_v34, %v3113_v13  ;;  %v1597_v1 = vadd.f32 %v1596_v23, %v3115_v58 }
 0x25f   :  { %1891 = vst [vmem:[#allocation2 + $0x560] sm:$0xff] %v1146_v2  ;;  %1893 = vst [vmem:[#allocation2 + $0x570] sm:$0xff] %v1595_v35 }
 0x260   :  { %1892 = vst [vmem:[#allocation2 + $0x568] sm:$0xff] %v1148_v38  ;;  %1894 = vst [vmem:[#allocation2 + $0x578] sm:$0xff] %v1597_v1  ;;  %v1151_v12 = vpop.f32.mrb[120].mxu1  ;;  %v1600_v41 = vpop.f32.mrb[120].mxu0 }
 0x261   :  { %v1152_v5 = vadd.f32 %v1151_v12, %v3107_v0  ;;  %v1601_v24 = vadd.f32 %v1600_v41, %v3109_v8  ;;  %v1153_v11 = vpop.f32.mrb[121].mxu1  ;;  %v1602_v22 = vpop.f32.mrb[121].mxu0 }
 0x262   :  { %v1154_v29 = vadd.f32 %v1153_v11, %v3113_v13  ;;  %v1603_v20 = vadd.f32 %v1602_v22, %v3115_v58 }
 0x263   :  { %1895 = vst [vmem:[#allocation2 + $0x580] sm:$0xff] %v1152_v5  ;;  %1897 = vst [vmem:[#allocation2 + $0x590] sm:$0xff] %v1601_v24 }
 0x264   :  { %1896 = vst [vmem:[#allocation2 + $0x588] sm:$0xff] %v1154_v29  ;;  %1898 = vst [vmem:[#allocation2 + $0x598] sm:$0xff] %v1603_v20  ;;  %v1157_v44 = vpop.f32.mrb[122].mxu1  ;;  %v1606_v21 = vpop.f32.mrb[122].mxu0 }
 0x265   :  { %v1158_v32 = vadd.f32 %v1157_v44, %v3107_v0  ;;  %v1607_v49 = vadd.f32 %v1606_v21, %v3109_v8  ;;  %v1159_v28 = vpop.f32.mrb[123].mxu1  ;;  %v1608_v10 = vpop.f32.mrb[123].mxu0 }
 0x266   :  { %v1160_v31 = vadd.f32 %v1159_v28, %v3113_v13  ;;  %v1609_v37 = vadd.f32 %v1608_v10, %v3115_v58 }
 0x267   :  { %1899 = vst [vmem:[#allocation2 + $0x5a0] sm:$0xff] %v1158_v32  ;;  %1901 = vst [vmem:[#allocation2 + $0x5b0] sm:$0xff] %v1607_v49 }
 0x268   :  { %1900 = vst [vmem:[#allocation2 + $0x5a8] sm:$0xff] %v1160_v31  ;;  %1902 = vst [vmem:[#allocation2 + $0x5b8] sm:$0xff] %v1609_v37  ;;  %v1163_v40 = vpop.f32.mrb[124].mxu1  ;;  %v1612_v30 = vpop.f32.mrb[124].mxu0 }
 0x269   :  { %v1164_v39 = vadd.f32 %v1163_v40, %v3107_v0  ;;  %v1613_v52 = vadd.f32 %v1612_v30, %v3109_v8  ;;  %v1165_v57 = vpop.f32.mrb[125].mxu1  ;;  %v1614_v46 = vpop.f32.mrb[125].mxu0 }
 0x26a   :  { %v1166_v36 = vadd.f32 %v1165_v57, %v3113_v13  ;;  %v1615_v45 = vadd.f32 %v1614_v46, %v3115_v58 }
 0x26b   :  { %1903 = vst [vmem:[#allocation2 + $0x5c0] sm:$0xff] %v1164_v39  ;;  %1905 = vst [vmem:[#allocation2 + $0x5d0] sm:$0xff] %v1613_v52 }
 0x26c   :  { %1904 = vst [vmem:[#allocation2 + $0x5c8] sm:$0xff] %v1166_v36  ;;  %1906 = vst [vmem:[#allocation2 + $0x5d8] sm:$0xff] %v1615_v45  ;;  %v1169_v9 = vpop.f32.mrb[126].mxu1  ;;  %v1618_v43 = vpop.f32.mrb[126].mxu0 }
 0x26d   :  { %v1170_v62 = vadd.f32 %v1169_v9, %v3107_v0  ;;  %v1619_v25 = vadd.f32 %v1618_v43, %v3109_v8  ;;  %v1171_v3 = vpop.f32.mrb[127].mxu1  ;;  %v1620_v56 = vpop.f32.mrb[127].mxu0 }
 0x26e   :  { %v1172_v42 = vadd.f32 %v1171_v3, %v3113_v13  ;;  %v1621_v51 = vadd.f32 %v1620_v56, %v3115_v58 }
 0x26f   :  { %1907 = vst [vmem:[#allocation2 + $0x5e0] sm:$0xff] %v1170_v62  ;;  %1909 = vst [vmem:[#allocation2 + $0x5f0] sm:$0xff] %v1619_v25 }
 0x270   :  { %1908 = vst [vmem:[#allocation2 + $0x5e8] sm:$0xff] %v1172_v42  ;;  %1910 = vst [vmem:[#allocation2 + $0x5f8] sm:$0xff] %v1621_v51  ;;  %v1175_v55 = vpop.f32.mrb[128].mxu1  ;;  %v1624_v4 = vpop.f32.mrb[128].mxu0 }
 0x271   :  { %v1176_v7 = vadd.f32 %v1175_v55, %v3107_v0  ;;  %v1625_v14 = vadd.f32 %v1624_v4, %v3109_v8  ;;  %v1177_v33 = vpop.f32.mrb[129].mxu1  ;;  %v1626_v50 = vpop.f32.mrb[129].mxu0 }
 0x272   :  { %v1178_v61 = vadd.f32 %v1177_v33, %v3113_v13  ;;  %v1627_v48 = vadd.f32 %v1626_v50, %v3115_v58 }
 0x273   :  { %1911 = vst [vmem:[#allocation2 + $0x600] sm:$0xff] %v1176_v7  ;;  %1913 = vst [vmem:[#allocation2 + $0x610] sm:$0xff] %v1625_v14 }
 0x274   :  { %1912 = vst [vmem:[#allocation2 + $0x608] sm:$0xff] %v1178_v61  ;;  %1914 = vst [vmem:[#allocation2 + $0x618] sm:$0xff] %v1627_v48  ;;  %v1181_v15 = vpop.f32.mrb[130].mxu1  ;;  %v1630_v63 = vpop.f32.mrb[130].mxu0 }
 0x275   :  { %v1182_v17 = vadd.f32 %v1181_v15, %v3107_v0  ;;  %v1631_v47 = vadd.f32 %v1630_v63, %v3109_v8  ;;  %v1183_v54 = vpop.f32.mrb[131].mxu1  ;;  %v1632_v19 = vpop.f32.mrb[131].mxu0 }
 0x276   :  { %v1184_v16 = vadd.f32 %v1183_v54, %v3113_v13  ;;  %v1633_v26 = vadd.f32 %v1632_v19, %v3115_v58 }
 0x277   :  { %1915 = vst [vmem:[#allocation2 + $0x620] sm:$0xff] %v1182_v17  ;;  %1917 = vst [vmem:[#allocation2 + $0x630] sm:$0xff] %v1631_v47 }
 0x278   :  { %1916 = vst [vmem:[#allocation2 + $0x628] sm:$0xff] %v1184_v16  ;;  %1918 = vst [vmem:[#allocation2 + $0x638] sm:$0xff] %v1633_v26  ;;  %v1187_v53 = vpop.f32.mrb[132].mxu1  ;;  %v1636_v60 = vpop.f32.mrb[132].mxu0 }
 0x279   :  { %v1188_v6 = vadd.f32 %v1187_v53, %v3107_v0  ;;  %v1637_v27 = vadd.f32 %v1636_v60, %v3109_v8  ;;  %v1189_v18 = vpop.f32.mrb[133].mxu1  ;;  %v1638_v59 = vpop.f32.mrb[133].mxu0 }
 0x27a   :  { %v1190_v2 = vadd.f32 %v1189_v18, %v3113_v13  ;;  %v1639_v35 = vadd.f32 %v1638_v59, %v3115_v58 }
 0x27b   :  { %1919 = vst [vmem:[#allocation2 + $0x640] sm:$0xff] %v1188_v6  ;;  %1921 = vst [vmem:[#allocation2 + $0x650] sm:$0xff] %v1637_v27 }
 0x27c   :  { %1920 = vst [vmem:[#allocation2 + $0x648] sm:$0xff] %v1190_v2  ;;  %1922 = vst [vmem:[#allocation2 + $0x658] sm:$0xff] %v1639_v35  ;;  %v1193_v34 = vpop.f32.mrb[134].mxu1  ;;  %v1642_v23 = vpop.f32.mrb[134].mxu0 }
 0x27d   :  { %v1194_v38 = vadd.f32 %v1193_v34, %v3107_v0  ;;  %v1643_v1 = vadd.f32 %v1642_v23, %v3109_v8  ;;  %v1195_v12 = vpop.f32.mrb[135].mxu1  ;;  %v1644_v41 = vpop.f32.mrb[135].mxu0 }
 0x27e   :  { %v1196_v5 = vadd.f32 %v1195_v12, %v3113_v13  ;;  %v1645_v24 = vadd.f32 %v1644_v41, %v3115_v58 }
 0x27f   :  { %1923 = vst [vmem:[#allocation2 + $0x660] sm:$0xff] %v1194_v38  ;;  %1925 = vst [vmem:[#allocation2 + $0x670] sm:$0xff] %v1643_v1 }
 0x280   :  { %1924 = vst [vmem:[#allocation2 + $0x668] sm:$0xff] %v1196_v5  ;;  %1926 = vst [vmem:[#allocation2 + $0x678] sm:$0xff] %v1645_v24  ;;  %v1199_v11 = vpop.f32.mrb[136].mxu1  ;;  %v1648_v22 = vpop.f32.mrb[136].mxu0 }
 0x281   :  { %v1200_v29 = vadd.f32 %v1199_v11, %v3107_v0  ;;  %v1649_v20 = vadd.f32 %v1648_v22, %v3109_v8  ;;  %v1201_v44 = vpop.f32.mrb[137].mxu1  ;;  %v1650_v21 = vpop.f32.mrb[137].mxu0 }
 0x282   :  { %v1202_v32 = vadd.f32 %v1201_v44, %v3113_v13  ;;  %v1651_v49 = vadd.f32 %v1650_v21, %v3115_v58 }
 0x283   :  { %1927 = vst [vmem:[#allocation2 + $0x680] sm:$0xff] %v1200_v29  ;;  %1929 = vst [vmem:[#allocation2 + $0x690] sm:$0xff] %v1649_v20 }
 0x284   :  { %1928 = vst [vmem:[#allocation2 + $0x688] sm:$0xff] %v1202_v32  ;;  %1930 = vst [vmem:[#allocation2 + $0x698] sm:$0xff] %v1651_v49  ;;  %v1205_v28 = vpop.f32.mrb[138].mxu1  ;;  %v1654_v10 = vpop.f32.mrb[138].mxu0 }
 0x285   :  { %v1206_v31 = vadd.f32 %v1205_v28, %v3107_v0  ;;  %v1655_v37 = vadd.f32 %v1654_v10, %v3109_v8  ;;  %v1207_v40 = vpop.f32.mrb[139].mxu1  ;;  %v1656_v30 = vpop.f32.mrb[139].mxu0 }
 0x286   :  { %v1208_v39 = vadd.f32 %v1207_v40, %v3113_v13  ;;  %v1657_v52 = vadd.f32 %v1656_v30, %v3115_v58 }
 0x287   :  { %1931 = vst [vmem:[#allocation2 + $0x6a0] sm:$0xff] %v1206_v31  ;;  %1933 = vst [vmem:[#allocation2 + $0x6b0] sm:$0xff] %v1655_v37 }
 0x288   :  { %1932 = vst [vmem:[#allocation2 + $0x6a8] sm:$0xff] %v1208_v39  ;;  %1934 = vst [vmem:[#allocation2 + $0x6b8] sm:$0xff] %v1657_v52  ;;  %v1211_v57 = vpop.f32.mrb[140].mxu1  ;;  %v1660_v46 = vpop.f32.mrb[140].mxu0 }
 0x289   :  { %v1212_v36 = vadd.f32 %v1211_v57, %v3107_v0  ;;  %v1661_v45 = vadd.f32 %v1660_v46, %v3109_v8  ;;  %v1213_v9 = vpop.f32.mrb[141].mxu1  ;;  %v1662_v43 = vpop.f32.mrb[141].mxu0 }
 0x28a   :  { %v1214_v62 = vadd.f32 %v1213_v9, %v3113_v13  ;;  %v1663_v25 = vadd.f32 %v1662_v43, %v3115_v58 }
 0x28b   :  { %1935 = vst [vmem:[#allocation2 + $0x6c0] sm:$0xff] %v1212_v36  ;;  %1937 = vst [vmem:[#allocation2 + $0x6d0] sm:$0xff] %v1661_v45 }
 0x28c   :  { %1936 = vst [vmem:[#allocation2 + $0x6c8] sm:$0xff] %v1214_v62  ;;  %1938 = vst [vmem:[#allocation2 + $0x6d8] sm:$0xff] %v1663_v25  ;;  %v1217_v3 = vpop.f32.mrb[142].mxu1  ;;  %v1666_v56 = vpop.f32.mrb[142].mxu0 }
 0x28d   :  { %v1218_v42 = vadd.f32 %v1217_v3, %v3107_v0  ;;  %v1667_v51 = vadd.f32 %v1666_v56, %v3109_v8  ;;  %v1219_v55 = vpop.f32.mrb[143].mxu1  ;;  %v1668_v4 = vpop.f32.mrb[143].mxu0 }
 0x28e   :  { %v1220_v7 = vadd.f32 %v1219_v55, %v3113_v13  ;;  %v1669_v14 = vadd.f32 %v1668_v4, %v3115_v58 }
 0x28f   :  { %1939 = vst [vmem:[#allocation2 + $0x6e0] sm:$0xff] %v1218_v42  ;;  %1941 = vst [vmem:[#allocation2 + $0x6f0] sm:$0xff] %v1667_v51 }
 0x290   :  { %1940 = vst [vmem:[#allocation2 + $0x6e8] sm:$0xff] %v1220_v7  ;;  %1942 = vst [vmem:[#allocation2 + $0x6f8] sm:$0xff] %v1669_v14  ;;  %v1223_v33 = vpop.f32.mrb[144].mxu1  ;;  %v1672_v50 = vpop.f32.mrb[144].mxu0 }
 0x291   :  { %v1224_v61 = vadd.f32 %v1223_v33, %v3107_v0  ;;  %v1673_v48 = vadd.f32 %v1672_v50, %v3109_v8  ;;  %v1225_v15 = vpop.f32.mrb[145].mxu1  ;;  %v1674_v63 = vpop.f32.mrb[145].mxu0 }
 0x292   :  { %v1226_v17 = vadd.f32 %v1225_v15, %v3113_v13  ;;  %v1675_v47 = vadd.f32 %v1674_v63, %v3115_v58 }
 0x293   :  { %1943 = vst [vmem:[#allocation2 + $0x700] sm:$0xff] %v1224_v61  ;;  %1945 = vst [vmem:[#allocation2 + $0x710] sm:$0xff] %v1673_v48 }
 0x294   :  { %1944 = vst [vmem:[#allocation2 + $0x708] sm:$0xff] %v1226_v17  ;;  %1946 = vst [vmem:[#allocation2 + $0x718] sm:$0xff] %v1675_v47  ;;  %v1229_v54 = vpop.f32.mrb[146].mxu1  ;;  %v1678_v19 = vpop.f32.mrb[146].mxu0 }
 0x295   :  { %v1230_v16 = vadd.f32 %v1229_v54, %v3107_v0  ;;  %v1679_v26 = vadd.f32 %v1678_v19, %v3109_v8  ;;  %v1231_v53 = vpop.f32.mrb[147].mxu1  ;;  %v1680_v60 = vpop.f32.mrb[147].mxu0 }
 0x296   :  { %v1232_v6 = vadd.f32 %v1231_v53, %v3113_v13  ;;  %v1681_v27 = vadd.f32 %v1680_v60, %v3115_v58 }
 0x297   :  { %1947 = vst [vmem:[#allocation2 + $0x720] sm:$0xff] %v1230_v16  ;;  %1949 = vst [vmem:[#allocation2 + $0x730] sm:$0xff] %v1679_v26 }
 0x298   :  { %1948 = vst [vmem:[#allocation2 + $0x728] sm:$0xff] %v1232_v6  ;;  %1950 = vst [vmem:[#allocation2 + $0x738] sm:$0xff] %v1681_v27  ;;  %v1235_v18 = vpop.f32.mrb[148].mxu1  ;;  %v1684_v59 = vpop.f32.mrb[148].mxu0 }
 0x299   :  { %v1236_v2 = vadd.f32 %v1235_v18, %v3107_v0  ;;  %v1685_v35 = vadd.f32 %v1684_v59, %v3109_v8  ;;  %v1237_v34 = vpop.f32.mrb[149].mxu1  ;;  %v1686_v23 = vpop.f32.mrb[149].mxu0 }
 0x29a   :  { %v1238_v38 = vadd.f32 %v1237_v34, %v3113_v13  ;;  %v1687_v1 = vadd.f32 %v1686_v23, %v3115_v58 }
 0x29b   :  { %1951 = vst [vmem:[#allocation2 + $0x740] sm:$0xff] %v1236_v2  ;;  %1953 = vst [vmem:[#allocation2 + $0x750] sm:$0xff] %v1685_v35 }
 0x29c   :  { %1952 = vst [vmem:[#allocation2 + $0x748] sm:$0xff] %v1238_v38  ;;  %1954 = vst [vmem:[#allocation2 + $0x758] sm:$0xff] %v1687_v1  ;;  %v1241_v12 = vpop.f32.mrb[150].mxu1  ;;  %v1690_v41 = vpop.f32.mrb[150].mxu0 }
 0x29d   :  { %v1242_v5 = vadd.f32 %v1241_v12, %v3107_v0  ;;  %v1691_v24 = vadd.f32 %v1690_v41, %v3109_v8  ;;  %v1243_v11 = vpop.f32.mrb[151].mxu1  ;;  %v1692_v22 = vpop.f32.mrb[151].mxu0 }
 0x29e   :  { %v1244_v29 = vadd.f32 %v1243_v11, %v3113_v13  ;;  %v1693_v20 = vadd.f32 %v1692_v22, %v3115_v58 }
 0x29f   :  { %1955 = vst [vmem:[#allocation2 + $0x760] sm:$0xff] %v1242_v5  ;;  %1957 = vst [vmem:[#allocation2 + $0x770] sm:$0xff] %v1691_v24 }
 0x2a0   :  { %1956 = vst [vmem:[#allocation2 + $0x768] sm:$0xff] %v1244_v29  ;;  %1958 = vst [vmem:[#allocation2 + $0x778] sm:$0xff] %v1693_v20  ;;  %v1247_v44 = vpop.f32.mrb[152].mxu1  ;;  %v1696_v21 = vpop.f32.mrb[152].mxu0 }
 0x2a1   :  { %v1248_v32 = vadd.f32 %v1247_v44, %v3107_v0  ;;  %v1697_v49 = vadd.f32 %v1696_v21, %v3109_v8  ;;  %v1249_v28 = vpop.f32.mrb[153].mxu1  ;;  %v1698_v10 = vpop.f32.mrb[153].mxu0 }
 0x2a2   :  { %v1250_v31 = vadd.f32 %v1249_v28, %v3113_v13  ;;  %v1699_v37 = vadd.f32 %v1698_v10, %v3115_v58 }
 0x2a3   :  { %1959 = vst [vmem:[#allocation2 + $0x780] sm:$0xff] %v1248_v32  ;;  %1961 = vst [vmem:[#allocation2 + $0x790] sm:$0xff] %v1697_v49 }
 0x2a4   :  { %1960 = vst [vmem:[#allocation2 + $0x788] sm:$0xff] %v1250_v31  ;;  %1962 = vst [vmem:[#allocation2 + $0x798] sm:$0xff] %v1699_v37  ;;  %v1253_v40 = vpop.f32.mrb[154].mxu1  ;;  %v1702_v30 = vpop.f32.mrb[154].mxu0 }
 0x2a5   :  { %v1254_v39 = vadd.f32 %v1253_v40, %v3107_v0  ;;  %v1703_v52 = vadd.f32 %v1702_v30, %v3109_v8  ;;  %v1255_v57 = vpop.f32.mrb[155].mxu1  ;;  %v1704_v46 = vpop.f32.mrb[155].mxu0 }
 0x2a6   :  { %v1256_v36 = vadd.f32 %v1255_v57, %v3113_v13  ;;  %v1705_v45 = vadd.f32 %v1704_v46, %v3115_v58 }
 0x2a7   :  { %1963 = vst [vmem:[#allocation2 + $0x7a0] sm:$0xff] %v1254_v39  ;;  %1965 = vst [vmem:[#allocation2 + $0x7b0] sm:$0xff] %v1703_v52 }
 0x2a8   :  { %1964 = vst [vmem:[#allocation2 + $0x7a8] sm:$0xff] %v1256_v36  ;;  %1966 = vst [vmem:[#allocation2 + $0x7b8] sm:$0xff] %v1705_v45  ;;  %v1259_v9 = vpop.f32.mrb[156].mxu1  ;;  %v1708_v43 = vpop.f32.mrb[156].mxu0 }
 0x2a9   :  { %v1260_v62 = vadd.f32 %v1259_v9, %v3107_v0  ;;  %v1709_v25 = vadd.f32 %v1708_v43, %v3109_v8  ;;  %v1261_v3 = vpop.f32.mrb[157].mxu1  ;;  %v1710_v56 = vpop.f32.mrb[157].mxu0 }
 0x2aa   :  { %v1262_v42 = vadd.f32 %v1261_v3, %v3113_v13  ;;  %v1711_v51 = vadd.f32 %v1710_v56, %v3115_v58 }
 0x2ab   :  { %1967 = vst [vmem:[#allocation2 + $0x7c0] sm:$0xff] %v1260_v62  ;;  %1969 = vst [vmem:[#allocation2 + $0x7d0] sm:$0xff] %v1709_v25 }
 0x2ac   :  { %1968 = vst [vmem:[#allocation2 + $0x7c8] sm:$0xff] %v1262_v42  ;;  %1970 = vst [vmem:[#allocation2 + $0x7d8] sm:$0xff] %v1711_v51  ;;  %v1265_v55 = vpop.f32.mrb[158].mxu1  ;;  %v1714_v4 = vpop.f32.mrb[158].mxu0 }
 0x2ad   :  { %v1266_v7 = vadd.f32 %v1265_v55, %v3107_v0  ;;  %v1715_v14 = vadd.f32 %v1714_v4, %v3109_v8  ;;  %v1267_v33 = vpop.f32.mrb[159].mxu1  ;;  %v1716_v50 = vpop.f32.mrb[159].mxu0 }
 0x2ae   :  { %v1268_v61 = vadd.f32 %v1267_v33, %v3113_v13  ;;  %v1717_v48 = vadd.f32 %v1716_v50, %v3115_v58 }
 0x2af   :  { %1971 = vst [vmem:[#allocation2 + $0x7e0] sm:$0xff] %v1266_v7  ;;  %1973 = vst [vmem:[#allocation2 + $0x7f0] sm:$0xff] %v1715_v14 }
 0x2b0   :  { %1972 = vst [vmem:[#allocation2 + $0x7e8] sm:$0xff] %v1268_v61  ;;  %1974 = vst [vmem:[#allocation2 + $0x7f8] sm:$0xff] %v1717_v48 }
 0x2b1   :  { %2301 = shalt.err (!%p2298_p4)
}
 0x2b2   :  { %s2302_s22 = scalar_lea.hbm %s3430_s5, 32768 }
 0x2b3   :  { %p2303_p5 = scmp.ne.s32.totalorder %s3430_s5, %s2302_s22  ;;  %p2306_p6 = scmp.lt.u32.totalorder %s2302_s22, %s3430_s5 }
 0x2b5   :  { %p2308_p7 = pnand %p2306_p6, %p2303_p5 }
 0x2b7   :  { %2311 = shalt.err (!%p2308_p7)
}
 0x2b8   :  { %s2316_s26 = smov 512   ;;  %s2317_s3 = smov 32  }
 0x2b9   :  { %1986 = dma.vmem_to_hbm [thread:$0]  %s1981_s18, 32768, %s3430_s5, [#allocation3], %s2316_s26, %s2316_s26, %s2317_s3  }
 0x2ba   :  { %2312 = dma.done.wait [#allocation3], 32768  }
 0x2bb   :  { %2313 = vsyncadd [#allocation3], 4294934528 }
 0x2bc   :  { %1990 = vsyncpa [#allocation3], 1 }

</bundles_post_ra>
